<compile_context>
chip_gen: v5e
topology: v5e:2x2
jax: 0.10.0
libtpu: 0.0.40
codegen_flags: <defaults>
</compile_context>

<pallas_src>
import jax
import jax.numpy as jnp
import numpy as np
from jax.experimental import pallas as pl
from jax.experimental.pallas import tpu as pltpu


# ---------------------------------------------------------------------------
# Fused flash-style kernel: shared-W_q projection + multi-head attention.
# One grid step == (batch block, q tile, kv tile).
# ---------------------------------------------------------------------------
def _flash_attn_kernel(q_ref, k_ref, v_ref, w_ref, b_ref, o_ref,
                       qs_ref, m_ref, l_ref, acc_ref, *,
                       head_num, scale, k_is_q, v_is_k):
    """q_ref: (Bb, Tq, dim); k_ref/v_ref: (Bb, Tk, dim) (may alias q_ref/k_ref).
       w_ref: (dim, dim) bf16 pre-transposed (in, out); b_ref: (1, dim) f32.
       o_ref: (Bb, Tq, dim) output block, written on the last kv step.
       qs_ref: (Bb*Tq, dim) bf16 scaled-q scratch; m/l: (Bb*h, Tq, 1) f32 stats;
       acc_ref: (Bb, Tq, dim) f32 running context."""
    dim = w_ref.shape[0]
    d_k = dim // head_num
    bb, tq = q_ref.shape[0], q_ref.shape[1]
    tk = k_ref.shape[1]
    ki = pl.program_id(2)
    nk = pl.num_programs(2)

    w = w_ref[...]                       # bf16 (dim_in, dim_out)
    bias = b_ref[...]                    # f32  (1, dim)

    def project(ref):
        # bf16 operands -> MXU-native; f32 accumulation; bias add in f32.
        x = ref[...].reshape(-1, dim).astype(jnp.bfloat16)
        return jnp.dot(x, w, preferred_element_type=jnp.float32) + bias

    # Key projection for this kv tile (needed every step; also reused for q/v
    # when the wrapper proved the inputs alias).
    kp_f32 = project(k_ref)                                  # (Bb*Tk, dim) f32

    # First kv step: scaled q projection (scale folded lane-dense) + stat init.
    @pl.when(ki == 0)
    def _():
        qp = kp_f32 if k_is_q else project(q_ref)            # (Bb*Tq, dim)
        qs_ref[...] = (qp * scale).astype(jnp.bfloat16)
        m_ref[...] = jnp.full_like(m_ref, -jnp.inf)
        l_ref[...] = jnp.zeros_like(l_ref)
        acc_ref[...] = jnp.zeros_like(acc_ref)

    kp = kp_f32.astype(jnp.bfloat16)
    vp = kp if v_is_k else project(v_ref).astype(jnp.bfloat16)
    qs = qs_ref[...]                                          # (Bb*Tq, dim) bf16

    # Online softmax. Static unroll over the batch block and heads keeps every
    # matmul lane-dense and avoids (L, h, d_k) relayouts; the accumulator is
    # read/written as one dense (Tq, dim) slab per batch element per step.
    for b in range(bb):
        q_rows = qs[b * tq:(b + 1) * tq]                      # (Tq, dim)
        k_rows = kp[b * tk:(b + 1) * tk]                      # (Tk, dim)
        v_rows = vp[b * tk:(b + 1) * tk]
        acc_prev = acc_ref[b]                                 # (Tq, dim) f32
        new_cols = []
        for h in range(head_num):
            c0, c1 = h * d_k, (h + 1) * d_k
            idx = b * head_num + h
            # QK^T with the contraction on the shared last axis (no transpose).
            s = jax.lax.dot_general(
                q_rows[:, c0:c1], k_rows[:, c0:c1],
                (((1,), (1,)), ((), ())),
                preferred_element_type=jnp.float32)           # (Tq, Tk)
            m_prev = m_ref[idx]                               # (Tq, 1)
            m_new = jnp.maximum(m_prev, jnp.max(s, axis=-1, keepdims=True))
            alpha = jnp.exp(m_prev - m_new)                   # (Tq, 1)
            p = jnp.exp(s - m_new)                            # (Tq, Tk) f32
            l_ref[idx] = alpha * l_ref[idx] + jnp.sum(p, axis=-1, keepdims=True)
            m_ref[idx] = m_new
            pv = jnp.dot(p.astype(jnp.bfloat16), v_rows[:, c0:c1],
                         preferred_element_type=jnp.float32)  # (Tq, d_k)
            new_cols.append(alpha * acc_prev[:, c0:c1] + pv)
        acc_ref[b] = jnp.concatenate(new_cols, axis=-1)       # dense store

    # Last kv step: normalize per head (exact reciprocal, tiny) and store a
    # lane-dense (Bb, Tq, dim) output slab.
    @pl.when(ki == nk - 1)
    def _():
        for b in range(bb):
            acc = acc_ref[b]
            cols = []
            for h in range(head_num):
                c0, c1 = h * d_k, (h + 1) * d_k
                inv = pl.reciprocal(l_ref[b * head_num + h], approx=False)
                cols.append(acc[:, c0:c1] * inv)
            o_ref[b] = jnp.concatenate(cols, axis=-1).astype(o_ref.dtype)


# ---------------------------------------------------------------------------
# Tiling / budget heuristics
# ---------------------------------------------------------------------------
def _pick_seq_tile(length, target):
    """Largest power-of-two-ish tile <= target that divides `length`, else full."""
    if length <= target:
        return length
    t = target
    while t >= 8:
        if length % t == 0:
            return t
        t //= 2
    return length


def _pick_batch_block(batch, n_q_tiles, tile_q, target_rows):
    """Batch elements per grid step: fatten the MXU M-dim for short sequences
    while keeping >=2 'parallel' grid steps when possible (v7x has 2 TCs)."""
    divisors = [d for d in range(1, batch + 1) if batch % d == 0]
    fits = [d for d in divisors if d * tile_q <= target_rows] or [1]
    par = [d for d in fits if (batch // d) * n_q_tiles >= 2]
    return max(par or fits)


def _vmem_limit_bytes():
    """Generation-aware VMEM budget: ~48 MiB on v7x (64 MiB physical),
    ~96 MiB on v5e/v6e (128 MiB physical)."""
    cap = None
    try:
        cap = getattr(pltpu.get_tpu_info(), "vmem_capacity_bytes", None)
    except Exception:
        cap = None
    if not cap:
        cap = 64 * 1024 * 1024
    return min(int(cap * 3 // 4), 110 * 1024 * 1024)


# ---------------------------------------------------------------------------
# Module wrapper
# ---------------------------------------------------------------------------
def scaled_dot_product_attention(query, key, value, params, head_num, *,
                                 block_q=None, block_k=None, block_b=None,
                                 row_target=256):
    """Matches ScaledDotProductAttention.forward (concatenated context output).

    Inputs may be f32 or bf16; MXU math is bf16 with f32 accumulation either
    way, and the output dtype follows `query.dtype` (pass bf16 to halve DMA).
    """
    w_q, b_q = params["W_q"]
    B, Lq, dim = query.shape
    _, Lk, _ = key.shape
    assert dim % head_num == 0
    scale = 1.0 / float(np.sqrt(dim))      # matches self.sqrt_dim = sqrt(dim)

    # Host-side weight transpose + bf16 cast: once, not per grid step.
    w_t = jnp.asarray(w_q, jnp.float32).T.astype(jnp.bfloat16)   # (in, out)
    bias = jnp.asarray(b_q, jnp.float32).reshape(1, dim)

    # Tile selection (256-row MXU targets; 256 is also 128-aligned for v5e).
    tq = block_q if block_q is not None else _pick_seq_tile(Lq, row_target)
    tk = block_k if block_k is not None else _pick_seq_tile(Lk, row_target)
    assert Lq % tq == 0 and Lk % tk == 0
    nq, nk = Lq // tq, Lk // tk
    bb = block_b if block_b is not None else _pick_batch_block(B, nq, tq, row_target)
    assert B % bb == 0
    nb = B // bb

    # Trace-time aliasing: drop DMA streams (and projections) that are
    # guaranteed identical. Self-attention with a single q/kv tile needs only
    # one input stream; value-is-key always drops the value stream.
    share_k = (key is query) and nq == 1 and nk == 1 and Lq == Lk
    share_v = (value is key) or (share_k and value is query)

    q_spec = pl.BlockSpec((bb, tq, dim), lambda b, qi, ki: (b, qi, 0))
    k_spec = pl.BlockSpec((bb, tk, dim), lambda b, qi, ki: (b, ki, 0))
    v_spec = pl.BlockSpec((bb, tk, dim), lambda b, qi, ki: (b, ki, 0))

    inputs = [query]
    data_specs = [q_spec]
    if not share_k:
        inputs.append(key)
        data_specs.append(k_spec)
    if not share_v:
        inputs.append(value)
        data_specs.append(v_spec)
    inputs += [w_t, bias]

    def kernel(*refs):
        i = 0
        q_ref = refs[i]; i += 1
        k_ref = q_ref if share_k else refs[i]
        i += 0 if share_k else 1
        v_ref = k_ref if share_v else refs[i]
        i += 0 if share_v else 1
        w_ref, b_ref, o_ref = refs[i], refs[i + 1], refs[i + 2]
        qs_ref, m_ref, l_ref, acc_ref = refs[i + 3:i + 7]
        _flash_attn_kernel(q_ref, k_ref, v_ref, w_ref, b_ref, o_ref,
                           qs_ref, m_ref, l_ref, acc_ref,
                           head_num=head_num, scale=scale,
                           k_is_q=share_k, v_is_k=share_v)

    def run(single_buffer_invariants):
        # Grid-invariant operands: index_map is constant so they are fetched
        # once; single-buffering them also avoids the second VMEM buffer.
        inv_kwargs = ({"pipeline_mode": pl.Buffered(1)}
                      if single_buffer_invariants else {})
        w_spec = pl.BlockSpec((dim, dim), lambda b, qi, ki: (0, 0), **inv_kwargs)
        b_spec = pl.BlockSpec((1, dim), lambda b, qi, ki: (0, 0), **inv_kwargs)
        return pl.pallas_call(
            kernel,
            out_shape=jax.ShapeDtypeStruct((B, Lq, dim), query.dtype),
            grid=(nb, nq, nk),
            in_specs=data_specs + [w_spec, b_spec],
            out_specs=pl.BlockSpec((bb, tq, dim), lambda b, qi, ki: (b, qi, 0)),
            scratch_shapes=[
                pltpu.VMEM((bb * tq, dim), jnp.bfloat16),           # scaled q proj
                pltpu.VMEM((bb * head_num, tq, 1), jnp.float32),    # running max
                pltpu.VMEM((bb * head_num, tq, 1), jnp.float32),    # running denom
                pltpu.VMEM((bb, tq, dim), jnp.float32),             # context acc
            ],
            compiler_params=pltpu.CompilerParams(
                dimension_semantics=("parallel", "parallel", "arbitrary"),
                vmem_limit_bytes=_vmem_limit_bytes(),
            ),
        )(*inputs)

    try:
        return run(True)
    except Exception:
        # Fallback if this toolchain rejects single-buffered operands.
        return run(False)


# ---------------------------------------------------------------------------
# Pure-JAX f32 reference for correctness checks
# ---------------------------------------------------------------------------
def _reference(query, key, value, params, head_num):
    w_q, b_q = params["W_q"]
    B, Lq, dim = query.shape
    d_k = dim // head_num
    scale = 1.0 / float(np.sqrt(dim))

    def project(x):
        return x @ w_q.T + b_q

    def split_heads(x):
        b_, l_, _ = x.shape
        return (x.reshape(b_, l_, head_num, d_k)
                 .transpose(0, 2, 1, 3)
                 .reshape(b_ * head_num, l_, d_k))

    q = split_heads(project(query))
    k = split_heads(project(key))
    v = split_heads(project(value))
    s = jnp.einsum("bqd,bkd->bqk", q, k) * scale
    attn = jax.nn.softmax(s, axis=-1)
    ctx = jnp.einsum("bqk,bkd->bqd", attn, v)
    return (ctx.reshape(B, head_num, Lq, d_k)
               .transpose(0, 2, 1, 3)
               .reshape(B, Lq, dim))


if __name__ == "__main__":
    # Small deterministic config consistent with the module.
    batch, seq, dim, head_num = 2, 16, 32, 4

    root = jax.random.PRNGKey(0)
    k_q, k_k, k_v, k_w, k_b = jax.random.split(root, 5)

    x = jax.random.normal(k_q, (batch, seq, dim), dtype=jnp.float32)
    key_x = jax.random.normal(k_k, (batch, seq // 2, dim), dtype=jnp.float32)
    val_x = jax.random.normal(k_v, (batch, seq // 2, dim), dtype=jnp.float32)

    # Deterministic nn.Linear-style init (uniform in +-1/sqrt(dim)).
    bound = 1.0 / np.sqrt(dim)
    params = {
        "W_q": (
            jax.random.uniform(k_w, (dim, dim), jnp.float32, -bound, bound),
            jax.random.uniform(k_b, (dim,), jnp.float32, -bound, bound),
        ),
        # W_k, W_v, W_o exist in the module __init__ but are unused in forward.
    }

    ref_self = _reference(x, x, x, params, head_num)

    # 1) Self-attention with explicit small tiles: exercises batch blocking,
    #    the multi-step kv loop (flash accumulation), and the value-is-key dedup.
    out1 = jax.block_until_ready(
        scaled_dot_product_attention(x, x, x, params, head_num,
                                     block_q=8, block_k=8, block_b=2))
    np.testing.assert_allclose(np.asarray(out1), np.asarray(ref_self),
                               rtol=2e-2, atol=2e-2)

    # 2) Self-attention with auto tiling: single q/kv tile -> only one input
    #    stream is DMA'd (key and value specs fold away entirely).
    out2 = jax.block_until_ready(
        scaled_dot_product_attention(x, x, x, params, head_num))
    np.testing.assert_allclose(np.asarray(out2), np.asarray(ref_self),
                               rtol=2e-2, atol=2e-2)

    # 3) Cross-attention with distinct key/value tensors (full 3-input path).
    out3 = jax.block_until_ready(
        scaled_dot_product_attention(x, key_x, val_x, params, head_num))
    ref3 = _reference(x, key_x, val_x, params, head_num)
    np.testing.assert_allclose(np.asarray(out3), np.asarray(ref3),
                               rtol=2e-2, atol=2e-2)

    assert out1.shape == (batch, seq, dim)
    print("KERNEL_OK")
</pallas_src>

<mosaic_0001>
module attributes {stable_mosaic.version = 11 : i64} {
  func.func @kernel(%arg0: i32, %arg1: i32, %arg2: i32, %arg3: memref<2x8x32xf32, #tpu.memory_space<vmem>>, %arg4: memref<2x8x32xf32, #tpu.memory_space<vmem>>, %arg5: memref<32x32xbf16, #tpu.memory_space<vmem>>, %arg6: memref<1x32xf32, #tpu.memory_space<vmem>>, %arg7: memref<2x8x32xf32, #tpu.memory_space<vmem>>, %arg8: memref<16x32xbf16, #tpu.memory_space<vmem>>, %arg9: memref<8x8x1xf32, #tpu.memory_space<vmem>>, %arg10: memref<8x8x1xf32, #tpu.memory_space<vmem>>, %arg11: memref<2x8x32xf32, #tpu.memory_space<vmem>>) attributes {dimension_semantics = [#tpu.dimension_semantics<parallel>, #tpu.dimension_semantics<parallel>, #tpu.dimension_semantics<arbitrary>], iteration_bounds = array<i64: 1, 2, 2>, scalar_prefetch = 0 : i64, scratch_operands = 4 : i64, tpu.core_type = #tpu.core_type<tc>, window_params = [{transform_indices = @transform_0, window_bounds = array<i64: 2, 8, 32>}, {transform_indices = @transform_1, window_bounds = array<i64: 2, 8, 32>}, {pipeline_mode = #tpu.pipeline_mode<synchronous>, transform_indices = @transform_2, window_bounds = array<i64: 32, 32>}, {pipeline_mode = #tpu.pipeline_mode<synchronous>, transform_indices = @transform_3, window_bounds = array<i64: 1, 32>}, {transform_indices = @transform_4, window_bounds = array<i64: 2, 8, 32>}]} {
    %c0 = arith.constant 0 : index
    %c0_0 = arith.constant 0 : index
    %0 = vector.load %arg5[%c0, %c0_0] : memref<32x32xbf16, #tpu.memory_space<vmem>>, vector<32x32xbf16>
    %c0_1 = arith.constant 0 : index
    %c0_2 = arith.constant 0 : index
    %1 = vector.load %arg6[%c0_1, %c0_2] : memref<1x32xf32, #tpu.memory_space<vmem>>, vector<1x32xf32>
    %c0_3 = arith.constant 0 : index
    %c0_4 = arith.constant 0 : index
    %c0_5 = arith.constant 0 : index
    %2 = vector.load %arg4[%c0_3, %c0_4, %c0_5] : memref<2x8x32xf32, #tpu.memory_space<vmem>>, vector<2x8x32xf32>
    %3 = vector.shape_cast %2 : vector<2x8x32xf32> to vector<16x32xf32>
    %4 = arith.truncf %3 : vector<16x32xf32> to vector<16x32xbf16>
    %cst = arith.constant dense<0.000000e+00> : vector<16x32xf32>
    %5 = tpu.matmul %4, %0, %cst {dimension_numbers = #tpu.dot_dimension_numbers<[1], [0], [0], [1], [0, 0, 1, 1], [], []>} : vector<16x32xbf16>, vector<32x32xbf16>, vector<16x32xf32> -> vector<16x32xf32>
    %6 = vector.broadcast %1 : vector<1x32xf32> to vector<16x32xf32>
    %7 = arith.addf %5, %6 : vector<16x32xf32>
    %c0_i32 = arith.constant 0 : i32
    %8 = arith.cmpi eq, %arg2, %c0_i32 : i32
    %9 = arith.extui %8 : i1 to i32
    %c0_i32_6 = arith.constant 0 : i32
    %10 = arith.cmpi ne, %9, %c0_i32_6 : i32
    scf.if %10 {
      %c0_143 = arith.constant 0 : index
      %c0_144 = arith.constant 0 : index
      %c0_145 = arith.constant 0 : index
      %290 = vector.load %arg3[%c0_143, %c0_144, %c0_145] : memref<2x8x32xf32, #tpu.memory_space<vmem>>, vector<2x8x32xf32>
      %291 = vector.shape_cast %290 : vector<2x8x32xf32> to vector<16x32xf32>
      %292 = arith.truncf %291 : vector<16x32xf32> to vector<16x32xbf16>
      %cst_146 = arith.constant dense<0.000000e+00> : vector<16x32xf32>
      %293 = tpu.matmul %292, %0, %cst_146 {dimension_numbers = #tpu.dot_dimension_numbers<[1], [0], [0], [1], [0, 0, 1, 1], [], []>} : vector<16x32xbf16>, vector<32x32xbf16>, vector<16x32xf32> -> vector<16x32xf32>
      %294 = vector.broadcast %1 : vector<1x32xf32> to vector<16x32xf32>
      %295 = arith.addf %293, %294 : vector<16x32xf32>
      %cst_147 = arith.constant 0.176776692 : f32
      %296 = vector.broadcast %cst_147 : f32 to vector<16x32xf32>
      %297 = arith.mulf %295, %296 : vector<16x32xf32>
      %298 = arith.truncf %297 : vector<16x32xf32> to vector<16x32xbf16>
      %c0_148 = arith.constant 0 : index
      %c0_149 = arith.constant 0 : index
      %299 = vector.load %arg8[%c0_148, %c0_149] : memref<16x32xbf16, #tpu.memory_space<vmem>>, vector<16x32xbf16>
      tpu.vector_store %arg8[%c0_148, %c0_149], %298 {strides = array<i32>} : memref<16x32xbf16, #tpu.memory_space<vmem>>, vector<16x32xbf16>,
      %cst_150 = arith.constant 0xFF800000 : f32
      %300 = vector.broadcast %cst_150 : f32 to vector<8x8x1xf32>
      %c0_151 = arith.constant 0 : index
      %c0_152 = arith.constant 0 : index
      %c0_153 = arith.constant 0 : index
      %301 = vector.load %arg9[%c0_151, %c0_152, %c0_153] : memref<8x8x1xf32, #tpu.memory_space<vmem>>, vector<8x8x1xf32>
      tpu.vector_store %arg9[%c0_151, %c0_152, %c0_153], %300 {strides = array<i32>} : memref<8x8x1xf32, #tpu.memory_space<vmem>>, vector<8x8x1xf32>,
      %cst_154 = arith.constant 0.000000e+00 : f32
      %302 = vector.broadcast %cst_154 : f32 to vector<8x8x1xf32>
      %c0_155 = arith.constant 0 : index
      %c0_156 = arith.constant 0 : index
      %c0_157 = arith.constant 0 : index
      %303 = vector.load %arg10[%c0_155, %c0_156, %c0_157] : memref<8x8x1xf32, #tpu.memory_space<vmem>>, vector<8x8x1xf32>
      tpu.vector_store %arg10[%c0_155, %c0_156, %c0_157], %302 {strides = array<i32>} : memref<8x8x1xf32, #tpu.memory_space<vmem>>, vector<8x8x1xf32>,
      %cst_158 = arith.constant 0.000000e+00 : f32
      %304 = vector.broadcast %cst_158 : f32 to vector<2x8x32xf32>
      %c0_159 = arith.constant 0 : index
      %c0_160 = arith.constant 0 : index
      %c0_161 = arith.constant 0 : index
      %305 = vector.load %arg11[%c0_159, %c0_160, %c0_161] : memref<2x8x32xf32, #tpu.memory_space<vmem>>, vector<2x8x32xf32>
      tpu.vector_store %arg11[%c0_159, %c0_160, %c0_161], %304 {strides = array<i32>} : memref<2x8x32xf32, #tpu.memory_space<vmem>>, vector<2x8x32xf32>,
    } else {
    }
    %11 = arith.truncf %7 : vector<16x32xf32> to vector<16x32xbf16>
    %c0_7 = arith.constant 0 : index
    %c0_8 = arith.constant 0 : index
    %12 = vector.load %arg8[%c0_7, %c0_8] : memref<16x32xbf16, #tpu.memory_space<vmem>>, vector<16x32xbf16>
    %13 = vector.extract_strided_slice %12 {offsets = [0, 0], sizes = [8, 32], strides = [1, 1]} : vector<16x32xbf16> to vector<8x32xbf16>
    %14 = vector.extract_strided_slice %11 {offsets = [0, 0], sizes = [8, 32], strides = [1, 1]} : vector<16x32xbf16> to vector<8x32xbf16>
    %15 = vector.extract_strided_slice %11 {offsets = [0, 0], sizes = [8, 32], strides = [1, 1]} : vector<16x32xbf16> to vector<8x32xbf16>
    %c0_9 = arith.constant 0 : index
    %c0_10 = arith.constant 0 : index
    %c0_11 = arith.constant 0 : index
    %16 = vector.load %arg11[%c0_9, %c0_10, %c0_11] : memref<2x8x32xf32, #tpu.memory_space<vmem>>, vector<1x8x32xf32>
    %17 = vector.shape_cast %16 : vector<1x8x32xf32> to vector<8x32xf32>
    %18 = vector.extract_strided_slice %13 {offsets = [0, 0], sizes = [8, 8], strides = [1, 1]} : vector<8x32xbf16> to vector<8x8xbf16>
    %19 = vector.extract_strided_slice %14 {offsets = [0, 0], sizes = [8, 8], strides = [1, 1]} : vector<8x32xbf16> to vector<8x8xbf16>
    %cst_12 = arith.constant dense<0.000000e+00> : vector<8x8xf32>
    %20 = tpu.matmul %18, %19, %cst_12 {dimension_numbers = #tpu.dot_dimension_numbers<[1], [1], [0], [0], [0, 0, 1, 0], [], []>} : vector<8x8xbf16>, vector<8x8xbf16>, vector<8x8xf32> -> vector<8x8xf32>
    %c0_13 = arith.constant 0 : index
    %c0_14 = arith.constant 0 : index
    %c0_15 = arith.constant 0 : index
    %21 = vector.load %arg9[%c0_13, %c0_14, %c0_15] : memref<8x8x1xf32, #tpu.memory_space<vmem>>, vector<1x8x1xf32>
    %22 = vector.shape_cast %21 : vector<1x8x1xf32> to vector<8x1xf32>
    %cst_16 = arith.constant dense<0xFF800000> : vector<8xf32>
    %23 = vector.multi_reduction <maximumf>, %20, %cst_16 [1] : vector<8x8xf32> to vector<8xf32>
    %24 = vector.shape_cast %23 : vector<8xf32> to vector<8x1xf32>
    %25 = arith.maximumf %22, %24 : vector<8x1xf32>
    %26 = arith.subf %22, %25 : vector<8x1xf32>
    %27 = math.exp %26 : vector<8x1xf32>
    %28 = vector.broadcast %25 : vector<8x1xf32> to vector<8x8xf32>
    %29 = arith.subf %20, %28 : vector<8x8xf32>
    %30 = math.exp %29 : vector<8x8xf32>
    %c0_17 = arith.constant 0 : index
    %c0_18 = arith.constant 0 : index
    %c0_19 = arith.constant 0 : index
    %31 = vector.load %arg10[%c0_17, %c0_18, %c0_19] : memref<8x8x1xf32, #tpu.memory_space<vmem>>, vector<1x8x1xf32>
    %32 = vector.shape_cast %31 : vector<1x8x1xf32> to vector<8x1xf32>
    %33 = arith.mulf %27, %32 : vector<8x1xf32>
    %cst_20 = arith.constant dense<0.000000e+00> : vector<8xf32>
    %34 = vector.multi_reduction <add>, %30, %cst_20 [1] : vector<8x8xf32> to vector<8xf32>
    %35 = vector.shape_cast %34 : vector<8xf32> to vector<8x1xf32>
    %36 = arith.addf %33, %35 : vector<8x1xf32>
    %c0_21 = arith.constant 0 : index
    %c0_22 = arith.constant 0 : index
    %c0_23 = arith.constant 0 : index
    %37 = vector.load %arg10[%c0_21, %c0_22, %c0_23] : memref<8x8x1xf32, #tpu.memory_space<vmem>>, vector<1x8x1xf32>
    %38 = vector.shape_cast %37 : vector<1x8x1xf32> to vector<8x1xf32>
    %39 = vector.shape_cast %36 : vector<8x1xf32> to vector<1x8x1xf32>
    tpu.vector_store %arg10[%c0_21, %c0_22, %c0_23], %39 {strides = array<i32>} : memref<8x8x1xf32, #tpu.memory_space<vmem>>, vector<1x8x1xf32>,
    %c0_24 = arith.constant 0 : index
    %c0_25 = arith.constant 0 : index
    %c0_26 = arith.constant 0 : index
    %40 = vector.load %arg9[%c0_24, %c0_25, %c0_26] : memref<8x8x1xf32, #tpu.memory_space<vmem>>, vector<1x8x1xf32>
    %41 = vector.shape_cast %40 : vector<1x8x1xf32> to vector<8x1xf32>
    %42 = vector.shape_cast %25 : vector<8x1xf32> to vector<1x8x1xf32>
    tpu.vector_store %arg9[%c0_24, %c0_25, %c0_26], %42 {strides = array<i32>} : memref<8x8x1xf32, #tpu.memory_space<vmem>>, vector<1x8x1xf32>,
    %43 = arith.truncf %30 : vector<8x8xf32> to vector<8x8xbf16>
    %44 = vector.extract_strided_slice %15 {offsets = [0, 0], sizes = [8, 8], strides = [1, 1]} : vector<8x32xbf16> to vector<8x8xbf16>
    %cst_27 = arith.constant dense<0.000000e+00> : vector<8x8xf32>
    %45 = tpu.matmul %43, %44, %cst_27 {dimension_numbers = #tpu.dot_dimension_numbers<[1], [0], [0], [1], [0, 0, 1, 1], [], []>} : vector<8x8xbf16>, vector<8x8xbf16>, vector<8x8xf32> -> vector<8x8xf32>
    %46 = vector.extract_strided_slice %17 {offsets = [0, 0], sizes = [8, 8], strides = [1, 1]} : vector<8x32xf32> to vector<8x8xf32>
    %47 = vector.broadcast %27 : vector<8x1xf32> to vector<8x8xf32>
    %48 = arith.mulf %47, %46 : vector<8x8xf32>
    %49 = arith.addf %48, %45 : vector<8x8xf32>
    %50 = vector.extract_strided_slice %13 {offsets = [0, 8], sizes = [8, 8], strides = [1, 1]} : vector<8x32xbf16> to vector<8x8xbf16>
    %51 = vector.extract_strided_slice %14 {offsets = [0, 8], sizes = [8, 8], strides = [1, 1]} : vector<8x32xbf16> to vector<8x8xbf16>
    %cst_28 = arith.constant dense<0.000000e+00> : vector<8x8xf32>
    %52 = tpu.matmul %50, %51, %cst_28 {dimension_numbers = #tpu.dot_dimension_numbers<[1], [1], [0], [0], [0, 0, 1, 0], [], []>} : vector<8x8xbf16>, vector<8x8xbf16>, vector<8x8xf32> -> vector<8x8xf32>
    %c1 = arith.constant 1 : index
    %c0_29 = arith.constant 0 : index
    %c0_30 = arith.constant 0 : index
    %53 = vector.load %arg9[%c1, %c0_29, %c0_30] : memref<8x8x1xf32, #tpu.memory_space<vmem>>, vector<1x8x1xf32>
    %54 = vector.shape_cast %53 : vector<1x8x1xf32> to vector<8x1xf32>
    %cst_31 = arith.constant dense<0xFF800000> : vector<8xf32>
    %55 = vector.multi_reduction <maximumf>, %52, %cst_31 [1] : vector<8x8xf32> to vector<8xf32>
    %56 = vector.shape_cast %55 : vector<8xf32> to vector<8x1xf32>
    %57 = arith.maximumf %54, %56 : vector<8x1xf32>
    %58 = arith.subf %54, %57 : vector<8x1xf32>
    %59 = math.exp %58 : vector<8x1xf32>
    %60 = vector.broadcast %57 : vector<8x1xf32> to vector<8x8xf32>
    %61 = arith.subf %52, %60 : vector<8x8xf32>
    %62 = math.exp %61 : vector<8x8xf32>
    %c1_32 = arith.constant 1 : index
    %c0_33 = arith.constant 0 : index
    %c0_34 = arith.constant 0 : index
    %63 = vector.load %arg10[%c1_32, %c0_33, %c0_34] : memref<8x8x1xf32, #tpu.memory_space<vmem>>, vector<1x8x1xf32>
    %64 = vector.shape_cast %63 : vector<1x8x1xf32> to vector<8x1xf32>
    %65 = arith.mulf %59, %64 : vector<8x1xf32>
    %cst_35 = arith.constant dense<0.000000e+00> : vector<8xf32>
    %66 = vector.multi_reduction <add>, %62, %cst_35 [1] : vector<8x8xf32> to vector<8xf32>
    %67 = vector.shape_cast %66 : vector<8xf32> to vector<8x1xf32>
    %68 = arith.addf %65, %67 : vector<8x1xf32>
    %c1_36 = arith.constant 1 : index
    %c0_37 = arith.constant 0 : index
    %c0_38 = arith.constant 0 : index
    %69 = vector.load %arg10[%c1_36, %c0_37, %c0_38] : memref<8x8x1xf32, #tpu.memory_space<vmem>>, vector<1x8x1xf32>
    %70 = vector.shape_cast %69 : vector<1x8x1xf32> to vector<8x1xf32>
    %71 = vector.shape_cast %68 : vector<8x1xf32> to vector<1x8x1xf32>
    tpu.vector_store %arg10[%c1_36, %c0_37, %c0_38], %71 {strides = array<i32>} : memref<8x8x1xf32, #tpu.memory_space<vmem>>, vector<1x8x1xf32>,
    %c1_39 = arith.constant 1 : index
    %c0_40 = arith.constant 0 : index
    %c0_41 = arith.constant 0 : index
    %72 = vector.load %arg9[%c1_39, %c0_40, %c0_41] : memref<8x8x1xf32, #tpu.memory_space<vmem>>, vector<1x8x1xf32>
    %73 = vector.shape_cast %72 : vector<1x8x1xf32> to vector<8x1xf32>
    %74 = vector.shape_cast %57 : vector<8x1xf32> to vector<1x8x1xf32>
    tpu.vector_store %arg9[%c1_39, %c0_40, %c0_41], %74 {strides = array<i32>} : memref<8x8x1xf32, #tpu.memory_space<vmem>>, vector<1x8x1xf32>,
    %75 = arith.truncf %62 : vector<8x8xf32> to vector<8x8xbf16>
    %76 = vector.extract_strided_slice %15 {offsets = [0, 8], sizes = [8, 8], strides = [1, 1]} : vector<8x32xbf16> to vector<8x8xbf16>
    %cst_42 = arith.constant dense<0.000000e+00> : vector<8x8xf32>
    %77 = tpu.matmul %75, %76, %cst_42 {dimension_numbers = #tpu.dot_dimension_numbers<[1], [0], [0], [1], [0, 0, 1, 1], [], []>} : vector<8x8xbf16>, vector<8x8xbf16>, vector<8x8xf32> -> vector<8x8xf32>
    %78 = vector.extract_strided_slice %17 {offsets = [0, 8], sizes = [8, 8], strides = [1, 1]} : vector<8x32xf32> to vector<8x8xf32>
    %79 = vector.broadcast %59 : vector<8x1xf32> to vector<8x8xf32>
    %80 = arith.mulf %79, %78 : vector<8x8xf32>
    %81 = arith.addf %80, %77 : vector<8x8xf32>
    %82 = vector.extract_strided_slice %13 {offsets = [0, 16], sizes = [8, 8], strides = [1, 1]} : vector<8x32xbf16> to vector<8x8xbf16>
    %83 = vector.extract_strided_slice %14 {offsets = [0, 16], sizes = [8, 8], strides = [1, 1]} : vector<8x32xbf16> to vector<8x8xbf16>
    %cst_43 = arith.constant dense<0.000000e+00> : vector<8x8xf32>
    %84 = tpu.matmul %82, %83, %cst_43 {dimension_numbers = #tpu.dot_dimension_numbers<[1], [1], [0], [0], [0, 0, 1, 0], [], []>} : vector<8x8xbf16>, vector<8x8xbf16>, vector<8x8xf32> -> vector<8x8xf32>
    %c2 = arith.constant 2 : index
    %c0_44 = arith.constant 0 : index
    %c0_45 = arith.constant 0 : index
    %85 = vector.load %arg9[%c2, %c0_44, %c0_45] : memref<8x8x1xf32, #tpu.memory_space<vmem>>, vector<1x8x1xf32>
    %86 = vector.shape_cast %85 : vector<1x8x1xf32> to vector<8x1xf32>
    %cst_46 = arith.constant dense<0xFF800000> : vector<8xf32>
    %87 = vector.multi_reduction <maximumf>, %84, %cst_46 [1] : vector<8x8xf32> to vector<8xf32>
    %88 = vector.shape_cast %87 : vector<8xf32> to vector<8x1xf32>
    %89 = arith.maximumf %86, %88 : vector<8x1xf32>
    %90 = arith.subf %86, %89 : vector<8x1xf32>
    %91 = math.exp %90 : vector<8x1xf32>
    %92 = vector.broadcast %89 : vector<8x1xf32> to vector<8x8xf32>
    %93 = arith.subf %84, %92 : vector<8x8xf32>
    %94 = math.exp %93 : vector<8x8xf32>
    %c2_47 = arith.constant 2 : index
    %c0_48 = arith.constant 0 : index
    %c0_49 = arith.constant 0 : index
    %95 = vector.load %arg10[%c2_47, %c0_48, %c0_49] : memref<8x8x1xf32, #tpu.memory_space<vmem>>, vector<1x8x1xf32>
    %96 = vector.shape_cast %95 : vector<1x8x1xf32> to vector<8x1xf32>
    %97 = arith.mulf %91, %96 : vector<8x1xf32>
    %cst_50 = arith.constant dense<0.000000e+00> : vector<8xf32>
    %98 = vector.multi_reduction <add>, %94, %cst_50 [1] : vector<8x8xf32> to vector<8xf32>
    %99 = vector.shape_cast %98 : vector<8xf32> to vector<8x1xf32>
    %100 = arith.addf %97, %99 : vector<8x1xf32>
    %c2_51 = arith.constant 2 : index
    %c0_52 = arith.constant 0 : index
    %c0_53 = arith.constant 0 : index
    %101 = vector.load %arg10[%c2_51, %c0_52, %c0_53] : memref<8x8x1xf32, #tpu.memory_space<vmem>>, vector<1x8x1xf32>
    %102 = vector.shape_cast %101 : vector<1x8x1xf32> to vector<8x1xf32>
    %103 = vector.shape_cast %100 : vector<8x1xf32> to vector<1x8x1xf32>
    tpu.vector_store %arg10[%c2_51, %c0_52, %c0_53], %103 {strides = array<i32>} : memref<8x8x1xf32, #tpu.memory_space<vmem>>, vector<1x8x1xf32>,
    %c2_54 = arith.constant 2 : index
    %c0_55 = arith.constant 0 : index
    %c0_56 = arith.constant 0 : index
    %104 = vector.load %arg9[%c2_54, %c0_55, %c0_56] : memref<8x8x1xf32, #tpu.memory_space<vmem>>, vector<1x8x1xf32>
    %105 = vector.shape_cast %104 : vector<1x8x1xf32> to vector<8x1xf32>
    %106 = vector.shape_cast %89 : vector<8x1xf32> to vector<1x8x1xf32>
    tpu.vector_store %arg9[%c2_54, %c0_55, %c0_56], %106 {strides = array<i32>} : memref<8x8x1xf32, #tpu.memory_space<vmem>>, vector<1x8x1xf32>,
    %107 = arith.truncf %94 : vector<8x8xf32> to vector<8x8xbf16>
    %108 = vector.extract_strided_slice %15 {offsets = [0, 16], sizes = [8, 8], strides = [1, 1]} : vector<8x32xbf16> to vector<8x8xbf16>
    %cst_57 = arith.constant dense<0.000000e+00> : vector<8x8xf32>
    %109 = tpu.matmul %107, %108, %cst_57 {dimension_numbers = #tpu.dot_dimension_numbers<[1], [0], [0], [1], [0, 0, 1, 1], [], []>} : vector<8x8xbf16>, vector<8x8xbf16>, vector<8x8xf32> -> vector<8x8xf32>
    %110 = vector.extract_strided_slice %17 {offsets = [0, 16], sizes = [8, 8], strides = [1, 1]} : vector<8x32xf32> to vector<8x8xf32>
    %111 = vector.broadcast %91 : vector<8x1xf32> to vector<8x8xf32>
    %112 = arith.mulf %111, %110 : vector<8x8xf32>
    %113 = arith.addf %112, %109 : vector<8x8xf32>
    %114 = vector.extract_strided_slice %13 {offsets = [0, 24], sizes = [8, 8], strides = [1, 1]} : vector<8x32xbf16> to vector<8x8xbf16>
    %115 = vector.extract_strided_slice %14 {offsets = [0, 24], sizes = [8, 8], strides = [1, 1]} : vector<8x32xbf16> to vector<8x8xbf16>
    %cst_58 = arith.constant dense<0.000000e+00> : vector<8x8xf32>
    %116 = tpu.matmul %114, %115, %cst_58 {dimension_numbers = #tpu.dot_dimension_numbers<[1], [1], [0], [0], [0, 0, 1, 0], [], []>} : vector<8x8xbf16>, vector<8x8xbf16>, vector<8x8xf32> -> vector<8x8xf32>
    %c3 = arith.constant 3 : index
    %c0_59 = arith.constant 0 : index
    %c0_60 = arith.constant 0 : index
    %117 = vector.load %arg9[%c3, %c0_59, %c0_60] : memref<8x8x1xf32, #tpu.memory_space<vmem>>, vector<1x8x1xf32>
    %118 = vector.shape_cast %117 : vector<1x8x1xf32> to vector<8x1xf32>
    %cst_61 = arith.constant dense<0xFF800000> : vector<8xf32>
    %119 = vector.multi_reduction <maximumf>, %116, %cst_61 [1] : vector<8x8xf32> to vector<8xf32>
    %120 = vector.shape_cast %119 : vector<8xf32> to vector<8x1xf32>
    %121 = arith.maximumf %118, %120 : vector<8x1xf32>
    %122 = arith.subf %118, %121 : vector<8x1xf32>
    %123 = math.exp %122 : vector<8x1xf32>
    %124 = vector.broadcast %121 : vector<8x1xf32> to vector<8x8xf32>
    %125 = arith.subf %116, %124 : vector<8x8xf32>
    %126 = math.exp %125 : vector<8x8xf32>
    %c3_62 = arith.constant 3 : index
    %c0_63 = arith.constant 0 : index
    %c0_64 = arith.constant 0 : index
    %127 = vector.load %arg10[%c3_62, %c0_63, %c0_64] : memref<8x8x1xf32, #tpu.memory_space<vmem>>, vector<1x8x1xf32>
    %128 = vector.shape_cast %127 : vector<1x8x1xf32> to vector<8x1xf32>
    %129 = arith.mulf %123, %128 : vector<8x1xf32>
    %cst_65 = arith.constant dense<0.000000e+00> : vector<8xf32>
    %130 = vector.multi_reduction <add>, %126, %cst_65 [1] : vector<8x8xf32> to vector<8xf32>
    %131 = vector.shape_cast %130 : vector<8xf32> to vector<8x1xf32>
    %132 = arith.addf %129, %131 : vector<8x1xf32>
    %c3_66 = arith.constant 3 : index
    %c0_67 = arith.constant 0 : index
    %c0_68 = arith.constant 0 : index
    %133 = vector.load %arg10[%c3_66, %c0_67, %c0_68] : memref<8x8x1xf32, #tpu.memory_space<vmem>>, vector<1x8x1xf32>
    %134 = vector.shape_cast %133 : vector<1x8x1xf32> to vector<8x1xf32>
    %135 = vector.shape_cast %132 : vector<8x1xf32> to vector<1x8x1xf32>
    tpu.vector_store %arg10[%c3_66, %c0_67, %c0_68], %135 {strides = array<i32>} : memref<8x8x1xf32, #tpu.memory_space<vmem>>, vector<1x8x1xf32>,
    %c3_69 = arith.constant 3 : index
    %c0_70 = arith.constant 0 : index
    %c0_71 = arith.constant 0 : index
    %136 = vector.load %arg9[%c3_69, %c0_70, %c0_71] : memref<8x8x1xf32, #tpu.memory_space<vmem>>, vector<1x8x1xf32>
    %137 = vector.shape_cast %136 : vector<1x8x1xf32> to vector<8x1xf32>
    %138 = vector.shape_cast %121 : vector<8x1xf32> to vector<1x8x1xf32>
    tpu.vector_store %arg9[%c3_69, %c0_70, %c0_71], %138 {strides = array<i32>} : memref<8x8x1xf32, #tpu.memory_space<vmem>>, vector<1x8x1xf32>,
    %139 = arith.truncf %126 : vector<8x8xf32> to vector<8x8xbf16>
    %140 = vector.extract_strided_slice %15 {offsets = [0, 24], sizes = [8, 8], strides = [1, 1]} : vector<8x32xbf16> to vector<8x8xbf16>
    %cst_72 = arith.constant dense<0.000000e+00> : vector<8x8xf32>
    %141 = tpu.matmul %139, %140, %cst_72 {dimension_numbers = #tpu.dot_dimension_numbers<[1], [0], [0], [1], [0, 0, 1, 1], [], []>} : vector<8x8xbf16>, vector<8x8xbf16>, vector<8x8xf32> -> vector<8x8xf32>
    %142 = vector.extract_strided_slice %17 {offsets = [0, 24], sizes = [8, 8], strides = [1, 1]} : vector<8x32xf32> to vector<8x8xf32>
    %143 = vector.broadcast %123 : vector<8x1xf32> to vector<8x8xf32>
    %144 = arith.mulf %143, %142 : vector<8x8xf32>
    %145 = arith.addf %144, %141 : vector<8x8xf32>
    %146 = tpu.concatenate %49, %81, %113, %145 in 1 : vector<8x8xf32>, vector<8x8xf32>, vector<8x8xf32>, vector<8x8xf32> -> vector<8x32xf32>
    %c0_73 = arith.constant 0 : index
    %c0_74 = arith.constant 0 : index
    %c0_75 = arith.constant 0 : index
    %147 = vector.load %arg11[%c0_73, %c0_74, %c0_75] : memref<2x8x32xf32, #tpu.memory_space<vmem>>, vector<1x8x32xf32>
    %148 = vector.shape_cast %147 : vector<1x8x32xf32> to vector<8x32xf32>
    %149 = vector.shape_cast %146 : vector<8x32xf32> to vector<1x8x32xf32>
    tpu.vector_store %arg11[%c0_73, %c0_74, %c0_75], %149 {strides = array<i32>} : memref<2x8x32xf32, #tpu.memory_space<vmem>>, vector<1x8x32xf32>,
    %150 = vector.extract_strided_slice %12 {offsets = [8, 0], sizes = [8, 32], strides = [1, 1]} : vector<16x32xbf16> to vector<8x32xbf16>
    %151 = vector.extract_strided_slice %11 {offsets = [8, 0], sizes = [8, 32], strides = [1, 1]} : vector<16x32xbf16> to vector<8x32xbf16>
    %152 = vector.extract_strided_slice %11 {offsets = [8, 0], sizes = [8, 32], strides = [1, 1]} : vector<16x32xbf16> to vector<8x32xbf16>
    %c1_76 = arith.constant 1 : index
    %c0_77 = arith.constant 0 : index
    %c0_78 = arith.constant 0 : index
    %153 = vector.load %arg11[%c1_76, %c0_77, %c0_78] : memref<2x8x32xf32, #tpu.memory_space<vmem>>, vector<1x8x32xf32>
    %154 = vector.shape_cast %153 : vector<1x8x32xf32> to vector<8x32xf32>
    %155 = vector.extract_strided_slice %150 {offsets = [0, 0], sizes = [8, 8], strides = [1, 1]} : vector<8x32xbf16> to vector<8x8xbf16>
    %156 = vector.extract_strided_slice %151 {offsets = [0, 0], sizes = [8, 8], strides = [1, 1]} : vector<8x32xbf16> to vector<8x8xbf16>
    %cst_79 = arith.constant dense<0.000000e+00> : vector<8x8xf32>
    %157 = tpu.matmul %155, %156, %cst_79 {dimension_numbers = #tpu.dot_dimension_numbers<[1], [1], [0], [0], [0, 0, 1, 0], [], []>} : vector<8x8xbf16>, vector<8x8xbf16>, vector<8x8xf32> -> vector<8x8xf32>
    %c4 = arith.constant 4 : index
    %c0_80 = arith.constant 0 : index
    %c0_81 = arith.constant 0 : index
    %158 = vector.load %arg9[%c4, %c0_80, %c0_81] : memref<8x8x1xf32, #tpu.memory_space<vmem>>, vector<1x8x1xf32>
    %159 = vector.shape_cast %158 : vector<1x8x1xf32> to vector<8x1xf32>
    %cst_82 = arith.constant dense<0xFF800000> : vector<8xf32>
    %160 = vector.multi_reduction <maximumf>, %157, %cst_82 [1] : vector<8x8xf32> to vector<8xf32>
    %161 = vector.shape_cast %160 : vector<8xf32> to vector<8x1xf32>
    %162 = arith.maximumf %159, %161 : vector<8x1xf32>
    %163 = arith.subf %159, %162 : vector<8x1xf32>
    %164 = math.exp %163 : vector<8x1xf32>
    %165 = vector.broadcast %162 : vector<8x1xf32> to vector<8x8xf32>
    %166 = arith.subf %157, %165 : vector<8x8xf32>
    %167 = math.exp %166 : vector<8x8xf32>
    %c4_83 = arith.constant 4 : index
    %c0_84 = arith.constant 0 : index
    %c0_85 = arith.constant 0 : index
    %168 = vector.load %arg10[%c4_83, %c0_84, %c0_85] : memref<8x8x1xf32, #tpu.memory_space<vmem>>, vector<1x8x1xf32>
    %169 = vector.shape_cast %168 : vector<1x8x1xf32> to vector<8x1xf32>
    %170 = arith.mulf %164, %169 : vector<8x1xf32>
    %cst_86 = arith.constant dense<0.000000e+00> : vector<8xf32>
    %171 = vector.multi_reduction <add>, %167, %cst_86 [1] : vector<8x8xf32> to vector<8xf32>
    %172 = vector.shape_cast %171 : vector<8xf32> to vector<8x1xf32>
    %173 = arith.addf %170, %172 : vector<8x1xf32>
    %c4_87 = arith.constant 4 : index
    %c0_88 = arith.constant 0 : index
    %c0_89 = arith.constant 0 : index
    %174 = vector.load %arg10[%c4_87, %c0_88, %c0_89] : memref<8x8x1xf32, #tpu.memory_space<vmem>>, vector<1x8x1xf32>
    %175 = vector.shape_cast %174 : vector<1x8x1xf32> to vector<8x1xf32>
    %176 = vector.shape_cast %173 : vector<8x1xf32> to vector<1x8x1xf32>
    tpu.vector_store %arg10[%c4_87, %c0_88, %c0_89], %176 {strides = array<i32>} : memref<8x8x1xf32, #tpu.memory_space<vmem>>, vector<1x8x1xf32>,
    %c4_90 = arith.constant 4 : index
    %c0_91 = arith.constant 0 : index
    %c0_92 = arith.constant 0 : index
    %177 = vector.load %arg9[%c4_90, %c0_91, %c0_92] : memref<8x8x1xf32, #tpu.memory_space<vmem>>, vector<1x8x1xf32>
    %178 = vector.shape_cast %177 : vector<1x8x1xf32> to vector<8x1xf32>
    %179 = vector.shape_cast %162 : vector<8x1xf32> to vector<1x8x1xf32>
    tpu.vector_store %arg9[%c4_90, %c0_91, %c0_92], %179 {strides = array<i32>} : memref<8x8x1xf32, #tpu.memory_space<vmem>>, vector<1x8x1xf32>,
    %180 = arith.truncf %167 : vector<8x8xf32> to vector<8x8xbf16>
    %181 = vector.extract_strided_slice %152 {offsets = [0, 0], sizes = [8, 8], strides = [1, 1]} : vector<8x32xbf16> to vector<8x8xbf16>
    %cst_93 = arith.constant dense<0.000000e+00> : vector<8x8xf32>
    %182 = tpu.matmul %180, %181, %cst_93 {dimension_numbers = #tpu.dot_dimension_numbers<[1], [0], [0], [1], [0, 0, 1, 1], [], []>} : vector<8x8xbf16>, vector<8x8xbf16>, vector<8x8xf32> -> vector<8x8xf32>
    %183 = vector.extract_strided_slice %154 {offsets = [0, 0], sizes = [8, 8], strides = [1, 1]} : vector<8x32xf32> to vector<8x8xf32>
    %184 = vector.broadcast %164 : vector<8x1xf32> to vector<8x8xf32>
    %185 = arith.mulf %184, %183 : vector<8x8xf32>
    %186 = arith.addf %185, %182 : vector<8x8xf32>
    %187 = vector.extract_strided_slice %150 {offsets = [0, 8], sizes = [8, 8], strides = [1, 1]} : vector<8x32xbf16> to vector<8x8xbf16>
    %188 = vector.extract_strided_slice %151 {offsets = [0, 8], sizes = [8, 8], strides = [1, 1]} : vector<8x32xbf16> to vector<8x8xbf16>
    %cst_94 = arith.constant dense<0.000000e+00> : vector<8x8xf32>
    %189 = tpu.matmul %187, %188, %cst_94 {dimension_numbers = #tpu.dot_dimension_numbers<[1], [1], [0], [0], [0, 0, 1, 0], [], []>} : vector<8x8xbf16>, vector<8x8xbf16>, vector<8x8xf32> -> vector<8x8xf32>
    %c5 = arith.constant 5 : index
    %c0_95 = arith.constant 0 : index
    %c0_96 = arith.constant 0 : index
    %190 = vector.load %arg9[%c5, %c0_95, %c0_96] : memref<8x8x1xf32, #tpu.memory_space<vmem>>, vector<1x8x1xf32>
    %191 = vector.shape_cast %190 : vector<1x8x1xf32> to vector<8x1xf32>
    %cst_97 = arith.constant dense<0xFF800000> : vector<8xf32>
    %192 = vector.multi_reduction <maximumf>, %189, %cst_97 [1] : vector<8x8xf32> to vector<8xf32>
    %193 = vector.shape_cast %192 : vector<8xf32> to vector<8x1xf32>
    %194 = arith.maximumf %191, %193 : vector<8x1xf32>
    %195 = arith.subf %191, %194 : vector<8x1xf32>
    %196 = math.exp %195 : vector<8x1xf32>
    %197 = vector.broadcast %194 : vector<8x1xf32> to vector<8x8xf32>
    %198 = arith.subf %189, %197 : vector<8x8xf32>
    %199 = math.exp %198 : vector<8x8xf32>
    %c5_98 = arith.constant 5 : index
    %c0_99 = arith.constant 0 : index
    %c0_100 = arith.constant 0 : index
    %200 = vector.load %arg10[%c5_98, %c0_99, %c0_100] : memref<8x8x1xf32, #tpu.memory_space<vmem>>, vector<1x8x1xf32>
    %201 = vector.shape_cast %200 : vector<1x8x1xf32> to vector<8x1xf32>
    %202 = arith.mulf %196, %201 : vector<8x1xf32>
    %cst_101 = arith.constant dense<0.000000e+00> : vector<8xf32>
    %203 = vector.multi_reduction <add>, %199, %cst_101 [1] : vector<8x8xf32> to vector<8xf32>
    %204 = vector.shape_cast %203 : vector<8xf32> to vector<8x1xf32>
    %205 = arith.addf %202, %204 : vector<8x1xf32>
    %c5_102 = arith.constant 5 : index
    %c0_103 = arith.constant 0 : index
    %c0_104 = arith.constant 0 : index
    %206 = vector.load %arg10[%c5_102, %c0_103, %c0_104] : memref<8x8x1xf32, #tpu.memory_space<vmem>>, vector<1x8x1xf32>
    %207 = vector.shape_cast %206 : vector<1x8x1xf32> to vector<8x1xf32>
    %208 = vector.shape_cast %205 : vector<8x1xf32> to vector<1x8x1xf32>
    tpu.vector_store %arg10[%c5_102, %c0_103, %c0_104], %208 {strides = array<i32>} : memref<8x8x1xf32, #tpu.memory_space<vmem>>, vector<1x8x1xf32>,
    %c5_105 = arith.constant 5 : index
    %c0_106 = arith.constant 0 : index
    %c0_107 = arith.constant 0 : index
    %209 = vector.load %arg9[%c5_105, %c0_106, %c0_107] : memref<8x8x1xf32, #tpu.memory_space<vmem>>, vector<1x8x1xf32>
    %210 = vector.shape_cast %209 : vector<1x8x1xf32> to vector<8x1xf32>
    %211 = vector.shape_cast %194 : vector<8x1xf32> to vector<1x8x1xf32>
    tpu.vector_store %arg9[%c5_105, %c0_106, %c0_107], %211 {strides = array<i32>} : memref<8x8x1xf32, #tpu.memory_space<vmem>>, vector<1x8x1xf32>,
    %212 = arith.truncf %199 : vector<8x8xf32> to vector<8x8xbf16>
    %213 = vector.extract_strided_slice %152 {offsets = [0, 8], sizes = [8, 8], strides = [1, 1]} : vector<8x32xbf16> to vector<8x8xbf16>
    %cst_108 = arith.constant dense<0.000000e+00> : vector<8x8xf32>
    %214 = tpu.matmul %212, %213, %cst_108 {dimension_numbers = #tpu.dot_dimension_numbers<[1], [0], [0], [1], [0, 0, 1, 1], [], []>} : vector<8x8xbf16>, vector<8x8xbf16>, vector<8x8xf32> -> vector<8x8xf32>
    %215 = vector.extract_strided_slice %154 {offsets = [0, 8], sizes = [8, 8], strides = [1, 1]} : vector<8x32xf32> to vector<8x8xf32>
    %216 = vector.broadcast %196 : vector<8x1xf32> to vector<8x8xf32>
    %217 = arith.mulf %216, %215 : vector<8x8xf32>
    %218 = arith.addf %217, %214 : vector<8x8xf32>
    %219 = vector.extract_strided_slice %150 {offsets = [0, 16], sizes = [8, 8], strides = [1, 1]} : vector<8x32xbf16> to vector<8x8xbf16>
    %220 = vector.extract_strided_slice %151 {offsets = [0, 16], sizes = [8, 8], strides = [1, 1]} : vector<8x32xbf16> to vector<8x8xbf16>
    %cst_109 = arith.constant dense<0.000000e+00> : vector<8x8xf32>
    %221 = tpu.matmul %219, %220, %cst_109 {dimension_numbers = #tpu.dot_dimension_numbers<[1], [1], [0], [0], [0, 0, 1, 0], [], []>} : vector<8x8xbf16>, vector<8x8xbf16>, vector<8x8xf32> -> vector<8x8xf32>
    %c6 = arith.constant 6 : index
    %c0_110 = arith.constant 0 : index
    %c0_111 = arith.constant 0 : index
    %222 = vector.load %arg9[%c6, %c0_110, %c0_111] : memref<8x8x1xf32, #tpu.memory_space<vmem>>, vector<1x8x1xf32>
    %223 = vector.shape_cast %222 : vector<1x8x1xf32> to vector<8x1xf32>
    %cst_112 = arith.constant dense<0xFF800000> : vector<8xf32>
    %224 = vector.multi_reduction <maximumf>, %221, %cst_112 [1] : vector<8x8xf32> to vector<8xf32>
    %225 = vector.shape_cast %224 : vector<8xf32> to vector<8x1xf32>
    %226 = arith.maximumf %223, %225 : vector<8x1xf32>
    %227 = arith.subf %223, %226 : vector<8x1xf32>
    %228 = math.exp %227 : vector<8x1xf32>
    %229 = vector.broadcast %226 : vector<8x1xf32> to vector<8x8xf32>
    %230 = arith.subf %221, %229 : vector<8x8xf32>
    %231 = math.exp %230 : vector<8x8xf32>
    %c6_113 = arith.constant 6 : index
    %c0_114 = arith.constant 0 : index
    %c0_115 = arith.constant 0 : index
    %232 = vector.load %arg10[%c6_113, %c0_114, %c0_115] : memref<8x8x1xf32, #tpu.memory_space<vmem>>, vector<1x8x1xf32>
    %233 = vector.shape_cast %232 : vector<1x8x1xf32> to vector<8x1xf32>
    %234 = arith.mulf %228, %233 : vector<8x1xf32>
    %cst_116 = arith.constant dense<0.000000e+00> : vector<8xf32>
    %235 = vector.multi_reduction <add>, %231, %cst_116 [1] : vector<8x8xf32> to vector<8xf32>
    %236 = vector.shape_cast %235 : vector<8xf32> to vector<8x1xf32>
    %237 = arith.addf %234, %236 : vector<8x1xf32>
    %c6_117 = arith.constant 6 : index
    %c0_118 = arith.constant 0 : index
    %c0_119 = arith.constant 0 : index
    %238 = vector.load %arg10[%c6_117, %c0_118, %c0_119] : memref<8x8x1xf32, #tpu.memory_space<vmem>>, vector<1x8x1xf32>
    %239 = vector.shape_cast %238 : vector<1x8x1xf32> to vector<8x1xf32>
    %240 = vector.shape_cast %237 : vector<8x1xf32> to vector<1x8x1xf32>
    tpu.vector_store %arg10[%c6_117, %c0_118, %c0_119], %240 {strides = array<i32>} : memref<8x8x1xf32, #tpu.memory_space<vmem>>, vector<1x8x1xf32>,
    %c6_120 = arith.constant 6 : index
    %c0_121 = arith.constant 0 : index
    %c0_122 = arith.constant 0 : index
    %241 = vector.load %arg9[%c6_120, %c0_121, %c0_122] : memref<8x8x1xf32, #tpu.memory_space<vmem>>, vector<1x8x1xf32>
    %242 = vector.shape_cast %241 : vector<1x8x1xf32> to vector<8x1xf32>
    %243 = vector.shape_cast %226 : vector<8x1xf32> to vector<1x8x1xf32>
    tpu.vector_store %arg9[%c6_120, %c0_121, %c0_122], %243 {strides = array<i32>} : memref<8x8x1xf32, #tpu.memory_space<vmem>>, vector<1x8x1xf32>,
    %244 = arith.truncf %231 : vector<8x8xf32> to vector<8x8xbf16>
    %245 = vector.extract_strided_slice %152 {offsets = [0, 16], sizes = [8, 8], strides = [1, 1]} : vector<8x32xbf16> to vector<8x8xbf16>
    %cst_123 = arith.constant dense<0.000000e+00> : vector<8x8xf32>
    %246 = tpu.matmul %244, %245, %cst_123 {dimension_numbers = #tpu.dot_dimension_numbers<[1], [0], [0], [1], [0, 0, 1, 1], [], []>} : vector<8x8xbf16>, vector<8x8xbf16>, vector<8x8xf32> -> vector<8x8xf32>
    %247 = vector.extract_strided_slice %154 {offsets = [0, 16], sizes = [8, 8], strides = [1, 1]} : vector<8x32xf32> to vector<8x8xf32>
    %248 = vector.broadcast %228 : vector<8x1xf32> to vector<8x8xf32>
    %249 = arith.mulf %248, %247 : vector<8x8xf32>
    %250 = arith.addf %249, %246 : vector<8x8xf32>
    %251 = vector.extract_strided_slice %150 {offsets = [0, 24], sizes = [8, 8], strides = [1, 1]} : vector<8x32xbf16> to vector<8x8xbf16>
    %252 = vector.extract_strided_slice %151 {offsets = [0, 24], sizes = [8, 8], strides = [1, 1]} : vector<8x32xbf16> to vector<8x8xbf16>
    %cst_124 = arith.constant dense<0.000000e+00> : vector<8x8xf32>
    %253 = tpu.matmul %251, %252, %cst_124 {dimension_numbers = #tpu.dot_dimension_numbers<[1], [1], [0], [0], [0, 0, 1, 0], [], []>} : vector<8x8xbf16>, vector<8x8xbf16>, vector<8x8xf32> -> vector<8x8xf32>
    %c7 = arith.constant 7 : index
    %c0_125 = arith.constant 0 : index
    %c0_126 = arith.constant 0 : index
    %254 = vector.load %arg9[%c7, %c0_125, %c0_126] : memref<8x8x1xf32, #tpu.memory_space<vmem>>, vector<1x8x1xf32>
    %255 = vector.shape_cast %254 : vector<1x8x1xf32> to vector<8x1xf32>
    %cst_127 = arith.constant dense<0xFF800000> : vector<8xf32>
    %256 = vector.multi_reduction <maximumf>, %253, %cst_127 [1] : vector<8x8xf32> to vector<8xf32>
    %257 = vector.shape_cast %256 : vector<8xf32> to vector<8x1xf32>
    %258 = arith.maximumf %255, %257 : vector<8x1xf32>
    %259 = arith.subf %255, %258 : vector<8x1xf32>
    %260 = math.exp %259 : vector<8x1xf32>
    %261 = vector.broadcast %258 : vector<8x1xf32> to vector<8x8xf32>
    %262 = arith.subf %253, %261 : vector<8x8xf32>
    %263 = math.exp %262 : vector<8x8xf32>
    %c7_128 = arith.constant 7 : index
    %c0_129 = arith.constant 0 : index
    %c0_130 = arith.constant 0 : index
    %264 = vector.load %arg10[%c7_128, %c0_129, %c0_130] : memref<8x8x1xf32, #tpu.memory_space<vmem>>, vector<1x8x1xf32>
    %265 = vector.shape_cast %264 : vector<1x8x1xf32> to vector<8x1xf32>
    %266 = arith.mulf %260, %265 : vector<8x1xf32>
    %cst_131 = arith.constant dense<0.000000e+00> : vector<8xf32>
    %267 = vector.multi_reduction <add>, %263, %cst_131 [1] : vector<8x8xf32> to vector<8xf32>
    %268 = vector.shape_cast %267 : vector<8xf32> to vector<8x1xf32>
    %269 = arith.addf %266, %268 : vector<8x1xf32>
    %c7_132 = arith.constant 7 : index
    %c0_133 = arith.constant 0 : index
    %c0_134 = arith.constant 0 : index
    %270 = vector.load %arg10[%c7_132, %c0_133, %c0_134] : memref<8x8x1xf32, #tpu.memory_space<vmem>>, vector<1x8x1xf32>
    %271 = vector.shape_cast %270 : vector<1x8x1xf32> to vector<8x1xf32>
    %272 = vector.shape_cast %269 : vector<8x1xf32> to vector<1x8x1xf32>
    tpu.vector_store %arg10[%c7_132, %c0_133, %c0_134], %272 {strides = array<i32>} : memref<8x8x1xf32, #tpu.memory_space<vmem>>, vector<1x8x1xf32>,
    %c7_135 = arith.constant 7 : index
    %c0_136 = arith.constant 0 : index
    %c0_137 = arith.constant 0 : index
    %273 = vector.load %arg9[%c7_135, %c0_136, %c0_137] : memref<8x8x1xf32, #tpu.memory_space<vmem>>, vector<1x8x1xf32>
    %274 = vector.shape_cast %273 : vector<1x8x1xf32> to vector<8x1xf32>
    %275 = vector.shape_cast %258 : vector<8x1xf32> to vector<1x8x1xf32>
    tpu.vector_store %arg9[%c7_135, %c0_136, %c0_137], %275 {strides = array<i32>} : memref<8x8x1xf32, #tpu.memory_space<vmem>>, vector<1x8x1xf32>,
    %276 = arith.truncf %263 : vector<8x8xf32> to vector<8x8xbf16>
    %277 = vector.extract_strided_slice %152 {offsets = [0, 24], sizes = [8, 8], strides = [1, 1]} : vector<8x32xbf16> to vector<8x8xbf16>
    %cst_138 = arith.constant dense<0.000000e+00> : vector<8x8xf32>
    %278 = tpu.matmul %276, %277, %cst_138 {dimension_numbers = #tpu.dot_dimension_numbers<[1], [0], [0], [1], [0, 0, 1, 1], [], []>} : vector<8x8xbf16>, vector<8x8xbf16>, vector<8x8xf32> -> vector<8x8xf32>
    %279 = vector.extract_strided_slice %154 {offsets = [0, 24], sizes = [8, 8], strides = [1, 1]} : vector<8x32xf32> to vector<8x8xf32>
    %280 = vector.broadcast %260 : vector<8x1xf32> to vector<8x8xf32>
    %281 = arith.mulf %280, %279 : vector<8x8xf32>
    %282 = arith.addf %281, %278 : vector<8x8xf32>
    %283 = tpu.concatenate %186, %218, %250, %282 in 1 : vector<8x8xf32>, vector<8x8xf32>, vector<8x8xf32>, vector<8x8xf32> -> vector<8x32xf32>
    %c1_139 = arith.constant 1 : index
    %c0_140 = arith.constant 0 : index
    %c0_141 = arith.constant 0 : index
    %284 = vector.load %arg11[%c1_139, %c0_140, %c0_141] : memref<2x8x32xf32, #tpu.memory_space<vmem>>, vector<1x8x32xf32>
    %285 = vector.shape_cast %284 : vector<1x8x32xf32> to vector<8x32xf32>
    %286 = vector.shape_cast %283 : vector<8x32xf32> to vector<1x8x32xf32>
    tpu.vector_store %arg11[%c1_139, %c0_140, %c0_141], %286 {strides = array<i32>} : memref<2x8x32xf32, #tpu.memory_space<vmem>>, vector<1x8x32xf32>,
    %c1_i32 = arith.constant 1 : i32
    %287 = arith.cmpi eq, %arg2, %c1_i32 : i32
    %288 = arith.extui %287 : i1 to i32
    %c0_i32_142 = arith.constant 0 : i32
    %289 = arith.cmpi ne, %288, %c0_i32_142 : i32
    scf.if %289 {
      %c0_143 = arith.constant 0 : index
      %c0_144 = arith.constant 0 : index
      %c0_145 = arith.constant 0 : index
      %290 = vector.load %arg11[%c0_143, %c0_144, %c0_145] : memref<2x8x32xf32, #tpu.memory_space<vmem>>, vector<1x8x32xf32>
      %291 = vector.shape_cast %290 : vector<1x8x32xf32> to vector<8x32xf32>
      %c0_146 = arith.constant 0 : index
      %c0_147 = arith.constant 0 : index
      %c0_148 = arith.constant 0 : index
      %292 = vector.load %arg10[%c0_146, %c0_147, %c0_148] : memref<8x8x1xf32, #tpu.memory_space<vmem>>, vector<1x8x1xf32>
      %293 = vector.shape_cast %292 : vector<1x8x1xf32> to vector<8x1xf32>
      %294 = tpu.reciprocal %293 : vector<8x1xf32> -> vector<8x1xf32>
      %295 = vector.extract_strided_slice %291 {offsets = [0, 0], sizes = [8, 8], strides = [1, 1]} : vector<8x32xf32> to vector<8x8xf32>
      %296 = vector.broadcast %294 : vector<8x1xf32> to vector<8x8xf32>
      %297 = arith.mulf %295, %296 : vector<8x8xf32>
      %c1_149 = arith.constant 1 : index
      %c0_150 = arith.constant 0 : index
      %c0_151 = arith.constant 0 : index
      %298 = vector.load %arg10[%c1_149, %c0_150, %c0_151] : memref<8x8x1xf32, #tpu.memory_space<vmem>>, vector<1x8x1xf32>
      %299 = vector.shape_cast %298 : vector<1x8x1xf32> to vector<8x1xf32>
      %300 = tpu.reciprocal %299 : vector<8x1xf32> -> vector<8x1xf32>
      %301 = vector.extract_strided_slice %291 {offsets = [0, 8], sizes = [8, 8], strides = [1, 1]} : vector<8x32xf32> to vector<8x8xf32>
      %302 = vector.broadcast %300 : vector<8x1xf32> to vector<8x8xf32>
      %303 = arith.mulf %301, %302 : vector<8x8xf32>
      %c2_152 = arith.constant 2 : index
      %c0_153 = arith.constant 0 : index
      %c0_154 = arith.constant 0 : index
      %304 = vector.load %arg10[%c2_152, %c0_153, %c0_154] : memref<8x8x1xf32, #tpu.memory_space<vmem>>, vector<1x8x1xf32>
      %305 = vector.shape_cast %304 : vector<1x8x1xf32> to vector<8x1xf32>
      %306 = tpu.reciprocal %305 : vector<8x1xf32> -> vector<8x1xf32>
      %307 = vector.extract_strided_slice %291 {offsets = [0, 16], sizes = [8, 8], strides = [1, 1]} : vector<8x32xf32> to vector<8x8xf32>
      %308 = vector.broadcast %306 : vector<8x1xf32> to vector<8x8xf32>
      %309 = arith.mulf %307, %308 : vector<8x8xf32>
      %c3_155 = arith.constant 3 : index
      %c0_156 = arith.constant 0 : index
      %c0_157 = arith.constant 0 : index
      %310 = vector.load %arg10[%c3_155, %c0_156, %c0_157] : memref<8x8x1xf32, #tpu.memory_space<vmem>>, vector<1x8x1xf32>
      %311 = vector.shape_cast %310 : vector<1x8x1xf32> to vector<8x1xf32>
      %312 = tpu.reciprocal %311 : vector<8x1xf32> -> vector<8x1xf32>
      %313 = vector.extract_strided_slice %291 {offsets = [0, 24], sizes = [8, 8], strides = [1, 1]} : vector<8x32xf32> to vector<8x8xf32>
      %314 = vector.broadcast %312 : vector<8x1xf32> to vector<8x8xf32>
      %315 = arith.mulf %313, %314 : vector<8x8xf32>
      %316 = tpu.concatenate %297, %303, %309, %315 in 1 : vector<8x8xf32>, vector<8x8xf32>, vector<8x8xf32>, vector<8x8xf32> -> vector<8x32xf32>
      %c0_158 = arith.constant 0 : index
      %c0_159 = arith.constant 0 : index
      %c0_160 = arith.constant 0 : index
      %317 = vector.load %arg7[%c0_158, %c0_159, %c0_160] : memref<2x8x32xf32, #tpu.memory_space<vmem>>, vector<1x8x32xf32>
      %318 = vector.shape_cast %317 : vector<1x8x32xf32> to vector<8x32xf32>
      %319 = vector.shape_cast %316 : vector<8x32xf32> to vector<1x8x32xf32>
      tpu.vector_store %arg7[%c0_158, %c0_159, %c0_160], %319 {strides = array<i32>} : memref<2x8x32xf32, #tpu.memory_space<vmem>>, vector<1x8x32xf32>,
      %c1_161 = arith.constant 1 : index
      %c0_162 = arith.constant 0 : index
      %c0_163 = arith.constant 0 : index
      %320 = vector.load %arg11[%c1_161, %c0_162, %c0_163] : memref<2x8x32xf32, #tpu.memory_space<vmem>>, vector<1x8x32xf32>
      %321 = vector.shape_cast %320 : vector<1x8x32xf32> to vector<8x32xf32>
      %c4_164 = arith.constant 4 : index
      %c0_165 = arith.constant 0 : index
      %c0_166 = arith.constant 0 : index
      %322 = vector.load %arg10[%c4_164, %c0_165, %c0_166] : memref<8x8x1xf32, #tpu.memory_space<vmem>>, vector<1x8x1xf32>
      %323 = vector.shape_cast %322 : vector<1x8x1xf32> to vector<8x1xf32>
      %324 = tpu.reciprocal %323 : vector<8x1xf32> -> vector<8x1xf32>
      %325 = vector.extract_strided_slice %321 {offsets = [0, 0], sizes = [8, 8], strides = [1, 1]} : vector<8x32xf32> to vector<8x8xf32>
      %326 = vector.broadcast %324 : vector<8x1xf32> to vector<8x8xf32>
      %327 = arith.mulf %325, %326 : vector<8x8xf32>
      %c5_167 = arith.constant 5 : index
      %c0_168 = arith.constant 0 : index
      %c0_169 = arith.constant 0 : index
      %328 = vector.load %arg10[%c5_167, %c0_168, %c0_169] : memref<8x8x1xf32, #tpu.memory_space<vmem>>, vector<1x8x1xf32>
      %329 = vector.shape_cast %328 : vector<1x8x1xf32> to vector<8x1xf32>
      %330 = tpu.reciprocal %329 : vector<8x1xf32> -> vector<8x1xf32>
      %331 = vector.extract_strided_slice %321 {offsets = [0, 8], sizes = [8, 8], strides = [1, 1]} : vector<8x32xf32> to vector<8x8xf32>
      %332 = vector.broadcast %330 : vector<8x1xf32> to vector<8x8xf32>
      %333 = arith.mulf %331, %332 : vector<8x8xf32>
      %c6_170 = arith.constant 6 : index
      %c0_171 = arith.constant 0 : index
      %c0_172 = arith.constant 0 : index
      %334 = vector.load %arg10[%c6_170, %c0_171, %c0_172] : memref<8x8x1xf32, #tpu.memory_space<vmem>>, vector<1x8x1xf32>
      %335 = vector.shape_cast %334 : vector<1x8x1xf32> to vector<8x1xf32>
      %336 = tpu.reciprocal %335 : vector<8x1xf32> -> vector<8x1xf32>
      %337 = vector.extract_strided_slice %321 {offsets = [0, 16], sizes = [8, 8], strides = [1, 1]} : vector<8x32xf32> to vector<8x8xf32>
      %338 = vector.broadcast %336 : vector<8x1xf32> to vector<8x8xf32>
      %339 = arith.mulf %337, %338 : vector<8x8xf32>
      %c7_173 = arith.constant 7 : index
      %c0_174 = arith.constant 0 : index
      %c0_175 = arith.constant 0 : index
      %340 = vector.load %arg10[%c7_173, %c0_174, %c0_175] : memref<8x8x1xf32, #tpu.memory_space<vmem>>, vector<1x8x1xf32>
      %341 = vector.shape_cast %340 : vector<1x8x1xf32> to vector<8x1xf32>
      %342 = tpu.reciprocal %341 : vector<8x1xf32> -> vector<8x1xf32>
      %343 = vector.extract_strided_slice %321 {offsets = [0, 24], sizes = [8, 8], strides = [1, 1]} : vector<8x32xf32> to vector<8x8xf32>
      %344 = vector.broadcast %342 : vector<8x1xf32> to vector<8x8xf32>
      %345 = arith.mulf %343, %344 : vector<8x8xf32>
      %346 = tpu.concatenate %327, %333, %339, %345 in 1 : vector<8x8xf32>, vector<8x8xf32>, vector<8x8xf32>, vector<8x8xf32> -> vector<8x32xf32>
      %c1_176 = arith.constant 1 : index
      %c0_177 = arith.constant 0 : index
      %c0_178 = arith.constant 0 : index
      %347 = vector.load %arg7[%c1_176, %c0_177, %c0_178] : memref<2x8x32xf32, #tpu.memory_space<vmem>>, vector<1x8x32xf32>
      %348 = vector.shape_cast %347 : vector<1x8x32xf32> to vector<8x32xf32>
      %349 = vector.shape_cast %346 : vector<8x32xf32> to vector<1x8x32xf32>
      tpu.vector_store %arg7[%c1_176, %c0_177, %c0_178], %349 {strides = array<i32>} : memref<2x8x32xf32, #tpu.memory_space<vmem>>, vector<1x8x32xf32>,
    } else {
    }
    return
  }
  func.func @transform_0(%arg0: i32, %arg1: i32, %arg2: i32) -> (i32, i32, i32) {
    %c0_i32 = arith.constant 0 : i32
    %c0_i32_0 = arith.constant 0 : i32
    return %arg0, %arg1, %c0_i32 : i32, i32, i32
  }
  func.func @transform_1(%arg0: i32, %arg1: i32, %arg2: i32) -> (i32, i32, i32) {
    %c0_i32 = arith.constant 0 : i32
    %c0_i32_0 = arith.constant 0 : i32
    return %arg0, %arg2, %c0_i32 : i32, i32, i32
  }
  func.func @transform_2(%arg0: i32, %arg1: i32, %arg2: i32) -> (i32, i32) {
    %c0_i32 = arith.constant 0 : i32
    %c0_i32_0 = arith.constant 0 : i32
    %c0_i32_1 = arith.constant 0 : i32
    return %c0_i32, %c0_i32_0 : i32, i32
  }
  func.func @transform_3(%arg0: i32, %arg1: i32, %arg2: i32) -> (i32, i32) {
    %c0_i32 = arith.constant 0 : i32
    %c0_i32_0 = arith.constant 0 : i32
    %c0_i32_1 = arith.constant 0 : i32
    return %c0_i32, %c0_i32_0 : i32, i32
  }
  func.func @transform_4(%arg0: i32, %arg1: i32, %arg2: i32) -> (i32, i32, i32) {
    %c0_i32 = arith.constant 0 : i32
    %c0_i32_0 = arith.constant 0 : i32
    return %arg0, %arg1, %c0_i32 : i32, i32, i32
  }
}

module attributes {stable_mosaic.version = 11 : i64} {
  func.func @kernel(%arg0: i32, %arg1: i32, %arg2: i32, %arg3: memref<2x8x32xf32, #tpu.memory_space<vmem>>, %arg4: memref<2x8x32xf32, #tpu.memory_space<vmem>>, %arg5: memref<32x32xbf16, #tpu.memory_space<vmem>>, %arg6: memref<1x32xf32, #tpu.memory_space<vmem>>, %arg7: memref<2x8x32xf32, #tpu.memory_space<vmem>>, %arg8: memref<16x32xbf16, #tpu.memory_space<vmem>>, %arg9: memref<8x8x1xf32, #tpu.memory_space<vmem>>, %arg10: memref<8x8x1xf32, #tpu.memory_space<vmem>>, %arg11: memref<2x8x32xf32, #tpu.memory_space<vmem>>) attributes {dimension_semantics = [#tpu.dimension_semantics<parallel>, #tpu.dimension_semantics<parallel>, #tpu.dimension_semantics<arbitrary>], iteration_bounds = array<i64: 1, 2, 2>, scalar_prefetch = 0 : i64, scratch_operands = 4 : i64, tpu.core_type = #tpu.core_type<tc>, window_params = [{transform_indices = @transform_0, window_bounds = array<i64: 2, 8, 32>}, {transform_indices = @transform_1, window_bounds = array<i64: 2, 8, 32>}, {pipeline_mode = #tpu.pipeline_mode<synchronous>, transform_indices = @transform_2, window_bounds = array<i64: 32, 32>}, {pipeline_mode = #tpu.pipeline_mode<synchronous>, transform_indices = @transform_3, window_bounds = array<i64: 1, 32>}, {transform_indices = @transform_4, window_bounds = array<i64: 2, 8, 32>}]} {
    %c0 = arith.constant 0 : index
    %c0_0 = arith.constant 0 : index
    %0 = vector.load %arg5[%c0, %c0_0] : memref<32x32xbf16, #tpu.memory_space<vmem>>, vector<32x32xbf16>
    %c0_1 = arith.constant 0 : index
    %c0_2 = arith.constant 0 : index
    %1 = vector.load %arg6[%c0_1, %c0_2] : memref<1x32xf32, #tpu.memory_space<vmem>>, vector<1x32xf32>
    %c0_3 = arith.constant 0 : index
    %c0_4 = arith.constant 0 : index
    %c0_5 = arith.constant 0 : index
    %2 = vector.load %arg4[%c0_3, %c0_4, %c0_5] : memref<2x8x32xf32, #tpu.memory_space<vmem>>, vector<2x8x32xf32>
    %3 = vector.shape_cast %2 : vector<2x8x32xf32> to vector<16x32xf32>
    %4 = arith.truncf %3 : vector<16x32xf32> to vector<16x32xbf16>
    %cst = arith.constant dense<0.000000e+00> : vector<16x32xf32>
    %5 = tpu.matmul %4, %0, %cst {dimension_numbers = #tpu.dot_dimension_numbers<[1], [0], [0], [1], [0, 0, 1, 1], [], []>} : vector<16x32xbf16>, vector<32x32xbf16>, vector<16x32xf32> -> vector<16x32xf32>
    %6 = vector.broadcast %1 : vector<1x32xf32> to vector<16x32xf32>
    %7 = arith.addf %5, %6 : vector<16x32xf32>
    %c0_i32 = arith.constant 0 : i32
    %8 = arith.cmpi eq, %arg2, %c0_i32 : i32
    %9 = arith.extui %8 : i1 to i32
    %c0_i32_6 = arith.constant 0 : i32
    %10 = arith.cmpi ne, %9, %c0_i32_6 : i32
    scf.if %10 {
      %c0_143 = arith.constant 0 : index
      %c0_144 = arith.constant 0 : index
      %c0_145 = arith.constant 0 : index
      %290 = vector.load %arg3[%c0_143, %c0_144, %c0_145] : memref<2x8x32xf32, #tpu.memory_space<vmem>>, vector<2x8x32xf32>
      %291 = vector.shape_cast %290 : vector<2x8x32xf32> to vector<16x32xf32>
      %292 = arith.truncf %291 : vector<16x32xf32> to vector<16x32xbf16>
      %cst_146 = arith.constant dense<0.000000e+00> : vector<16x32xf32>
      %293 = tpu.matmul %292, %0, %cst_146 {dimension_numbers = #tpu.dot_dimension_numbers<[1], [0], [0], [1], [0, 0, 1, 1], [], []>} : vector<16x32xbf16>, vector<32x32xbf16>, vector<16x32xf32> -> vector<16x32xf32>
      %294 = vector.broadcast %1 : vector<1x32xf32> to vector<16x32xf32>
      %295 = arith.addf %293, %294 : vector<16x32xf32>
      %cst_147 = arith.constant 0.176776692 : f32
      %296 = vector.broadcast %cst_147 : f32 to vector<16x32xf32>
      %297 = arith.mulf %295, %296 : vector<16x32xf32>
      %298 = arith.truncf %297 : vector<16x32xf32> to vector<16x32xbf16>
      %c0_148 = arith.constant 0 : index
      %c0_149 = arith.constant 0 : index
      %299 = vector.load %arg8[%c0_148, %c0_149] : memref<16x32xbf16, #tpu.memory_space<vmem>>, vector<16x32xbf16>
      tpu.vector_store %arg8[%c0_148, %c0_149], %298 {strides = array<i32>} : memref<16x32xbf16, #tpu.memory_space<vmem>>, vector<16x32xbf16>,
      %cst_150 = arith.constant 0xFF800000 : f32
      %300 = vector.broadcast %cst_150 : f32 to vector<8x8x1xf32>
      %c0_151 = arith.constant 0 : index
      %c0_152 = arith.constant 0 : index
      %c0_153 = arith.constant 0 : index
      %301 = vector.load %arg9[%c0_151, %c0_152, %c0_153] : memref<8x8x1xf32, #tpu.memory_space<vmem>>, vector<8x8x1xf32>
      tpu.vector_store %arg9[%c0_151, %c0_152, %c0_153], %300 {strides = array<i32>} : memref<8x8x1xf32, #tpu.memory_space<vmem>>, vector<8x8x1xf32>,
      %cst_154 = arith.constant 0.000000e+00 : f32
      %302 = vector.broadcast %cst_154 : f32 to vector<8x8x1xf32>
      %c0_155 = arith.constant 0 : index
      %c0_156 = arith.constant 0 : index
      %c0_157 = arith.constant 0 : index
      %303 = vector.load %arg10[%c0_155, %c0_156, %c0_157] : memref<8x8x1xf32, #tpu.memory_space<vmem>>, vector<8x8x1xf32>
      tpu.vector_store %arg10[%c0_155, %c0_156, %c0_157], %302 {strides = array<i32>} : memref<8x8x1xf32, #tpu.memory_space<vmem>>, vector<8x8x1xf32>,
      %cst_158 = arith.constant 0.000000e+00 : f32
      %304 = vector.broadcast %cst_158 : f32 to vector<2x8x32xf32>
      %c0_159 = arith.constant 0 : index
      %c0_160 = arith.constant 0 : index
      %c0_161 = arith.constant 0 : index
      %305 = vector.load %arg11[%c0_159, %c0_160, %c0_161] : memref<2x8x32xf32, #tpu.memory_space<vmem>>, vector<2x8x32xf32>
      tpu.vector_store %arg11[%c0_159, %c0_160, %c0_161], %304 {strides = array<i32>} : memref<2x8x32xf32, #tpu.memory_space<vmem>>, vector<2x8x32xf32>,
    } else {
    }
    %11 = arith.truncf %7 : vector<16x32xf32> to vector<16x32xbf16>
    %c0_7 = arith.constant 0 : index
    %c0_8 = arith.constant 0 : index
    %12 = vector.load %arg8[%c0_7, %c0_8] : memref<16x32xbf16, #tpu.memory_space<vmem>>, vector<16x32xbf16>
    %13 = vector.extract_strided_slice %12 {offsets = [0, 0], sizes = [8, 32], strides = [1, 1]} : vector<16x32xbf16> to vector<8x32xbf16>
    %14 = vector.extract_strided_slice %11 {offsets = [0, 0], sizes = [8, 32], strides = [1, 1]} : vector<16x32xbf16> to vector<8x32xbf16>
    %15 = vector.extract_strided_slice %11 {offsets = [0, 0], sizes = [8, 32], strides = [1, 1]} : vector<16x32xbf16> to vector<8x32xbf16>
    %c0_9 = arith.constant 0 : index
    %c0_10 = arith.constant 0 : index
    %c0_11 = arith.constant 0 : index
    %16 = vector.load %arg11[%c0_9, %c0_10, %c0_11] : memref<2x8x32xf32, #tpu.memory_space<vmem>>, vector<1x8x32xf32>
    %17 = vector.shape_cast %16 : vector<1x8x32xf32> to vector<8x32xf32>
    %18 = vector.extract_strided_slice %13 {offsets = [0, 0], sizes = [8, 8], strides = [1, 1]} : vector<8x32xbf16> to vector<8x8xbf16>
    %19 = vector.extract_strided_slice %14 {offsets = [0, 0], sizes = [8, 8], strides = [1, 1]} : vector<8x32xbf16> to vector<8x8xbf16>
    %cst_12 = arith.constant dense<0.000000e+00> : vector<8x8xf32>
    %20 = tpu.matmul %18, %19, %cst_12 {dimension_numbers = #tpu.dot_dimension_numbers<[1], [1], [0], [0], [0, 0, 1, 0], [], []>} : vector<8x8xbf16>, vector<8x8xbf16>, vector<8x8xf32> -> vector<8x8xf32>
    %c0_13 = arith.constant 0 : index
    %c0_14 = arith.constant 0 : index
    %c0_15 = arith.constant 0 : index
    %21 = vector.load %arg9[%c0_13, %c0_14, %c0_15] : memref<8x8x1xf32, #tpu.memory_space<vmem>>, vector<1x8x1xf32>
    %22 = vector.shape_cast %21 : vector<1x8x1xf32> to vector<8x1xf32>
    %cst_16 = arith.constant dense<0xFF800000> : vector<8xf32>
    %23 = vector.multi_reduction <maximumf>, %20, %cst_16 [1] : vector<8x8xf32> to vector<8xf32>
    %24 = vector.shape_cast %23 : vector<8xf32> to vector<8x1xf32>
    %25 = arith.maximumf %22, %24 : vector<8x1xf32>
    %26 = arith.subf %22, %25 : vector<8x1xf32>
    %27 = math.exp %26 : vector<8x1xf32>
    %28 = vector.broadcast %25 : vector<8x1xf32> to vector<8x8xf32>
    %29 = arith.subf %20, %28 : vector<8x8xf32>
    %30 = math.exp %29 : vector<8x8xf32>
    %c0_17 = arith.constant 0 : index
    %c0_18 = arith.constant 0 : index
    %c0_19 = arith.constant 0 : index
    %31 = vector.load %arg10[%c0_17, %c0_18, %c0_19] : memref<8x8x1xf32, #tpu.memory_space<vmem>>, vector<1x8x1xf32>
    %32 = vector.shape_cast %31 : vector<1x8x1xf32> to vector<8x1xf32>
    %33 = arith.mulf %27, %32 : vector<8x1xf32>
    %cst_20 = arith.constant dense<0.000000e+00> : vector<8xf32>
    %34 = vector.multi_reduction <add>, %30, %cst_20 [1] : vector<8x8xf32> to vector<8xf32>
    %35 = vector.shape_cast %34 : vector<8xf32> to vector<8x1xf32>
    %36 = arith.addf %33, %35 : vector<8x1xf32>
    %c0_21 = arith.constant 0 : index
    %c0_22 = arith.constant 0 : index
    %c0_23 = arith.constant 0 : index
    %37 = vector.load %arg10[%c0_21, %c0_22, %c0_23] : memref<8x8x1xf32, #tpu.memory_space<vmem>>, vector<1x8x1xf32>
    %38 = vector.shape_cast %37 : vector<1x8x1xf32> to vector<8x1xf32>
    %39 = vector.shape_cast %36 : vector<8x1xf32> to vector<1x8x1xf32>
    tpu.vector_store %arg10[%c0_21, %c0_22, %c0_23], %39 {strides = array<i32>} : memref<8x8x1xf32, #tpu.memory_space<vmem>>, vector<1x8x1xf32>,
    %c0_24 = arith.constant 0 : index
    %c0_25 = arith.constant 0 : index
    %c0_26 = arith.constant 0 : index
    %40 = vector.load %arg9[%c0_24, %c0_25, %c0_26] : memref<8x8x1xf32, #tpu.memory_space<vmem>>, vector<1x8x1xf32>
    %41 = vector.shape_cast %40 : vector<1x8x1xf32> to vector<8x1xf32>
    %42 = vector.shape_cast %25 : vector<8x1xf32> to vector<1x8x1xf32>
    tpu.vector_store %arg9[%c0_24, %c0_25, %c0_26], %42 {strides = array<i32>} : memref<8x8x1xf32, #tpu.memory_space<vmem>>, vector<1x8x1xf32>,
    %43 = arith.truncf %30 : vector<8x8xf32> to vector<8x8xbf16>
    %44 = vector.extract_strided_slice %15 {offsets = [0, 0], sizes = [8, 8], strides = [1, 1]} : vector<8x32xbf16> to vector<8x8xbf16>
    %cst_27 = arith.constant dense<0.000000e+00> : vector<8x8xf32>
    %45 = tpu.matmul %43, %44, %cst_27 {dimension_numbers = #tpu.dot_dimension_numbers<[1], [0], [0], [1], [0, 0, 1, 1], [], []>} : vector<8x8xbf16>, vector<8x8xbf16>, vector<8x8xf32> -> vector<8x8xf32>
    %46 = vector.extract_strided_slice %17 {offsets = [0, 0], sizes = [8, 8], strides = [1, 1]} : vector<8x32xf32> to vector<8x8xf32>
    %47 = vector.broadcast %27 : vector<8x1xf32> to vector<8x8xf32>
    %48 = arith.mulf %47, %46 : vector<8x8xf32>
    %49 = arith.addf %48, %45 : vector<8x8xf32>
    %50 = vector.extract_strided_slice %13 {offsets = [0, 8], sizes = [8, 8], strides = [1, 1]} : vector<8x32xbf16> to vector<8x8xbf16>
    %51 = vector.extract_strided_slice %14 {offsets = [0, 8], sizes = [8, 8], strides = [1, 1]} : vector<8x32xbf16> to vector<8x8xbf16>
    %cst_28 = arith.constant dense<0.000000e+00> : vector<8x8xf32>
    %52 = tpu.matmul %50, %51, %cst_28 {dimension_numbers = #tpu.dot_dimension_numbers<[1], [1], [0], [0], [0, 0, 1, 0], [], []>} : vector<8x8xbf16>, vector<8x8xbf16>, vector<8x8xf32> -> vector<8x8xf32>
    %c1 = arith.constant 1 : index
    %c0_29 = arith.constant 0 : index
    %c0_30 = arith.constant 0 : index
    %53 = vector.load %arg9[%c1, %c0_29, %c0_30] : memref<8x8x1xf32, #tpu.memory_space<vmem>>, vector<1x8x1xf32>
    %54 = vector.shape_cast %53 : vector<1x8x1xf32> to vector<8x1xf32>
    %cst_31 = arith.constant dense<0xFF800000> : vector<8xf32>
    %55 = vector.multi_reduction <maximumf>, %52, %cst_31 [1] : vector<8x8xf32> to vector<8xf32>
    %56 = vector.shape_cast %55 : vector<8xf32> to vector<8x1xf32>
    %57 = arith.maximumf %54, %56 : vector<8x1xf32>
    %58 = arith.subf %54, %57 : vector<8x1xf32>
    %59 = math.exp %58 : vector<8x1xf32>
    %60 = vector.broadcast %57 : vector<8x1xf32> to vector<8x8xf32>
    %61 = arith.subf %52, %60 : vector<8x8xf32>
    %62 = math.exp %61 : vector<8x8xf32>
    %c1_32 = arith.constant 1 : index
    %c0_33 = arith.constant 0 : index
    %c0_34 = arith.constant 0 : index
    %63 = vector.load %arg10[%c1_32, %c0_33, %c0_34] : memref<8x8x1xf32, #tpu.memory_space<vmem>>, vector<1x8x1xf32>
    %64 = vector.shape_cast %63 : vector<1x8x1xf32> to vector<8x1xf32>
    %65 = arith.mulf %59, %64 : vector<8x1xf32>
    %cst_35 = arith.constant dense<0.000000e+00> : vector<8xf32>
    %66 = vector.multi_reduction <add>, %62, %cst_35 [1] : vector<8x8xf32> to vector<8xf32>
    %67 = vector.shape_cast %66 : vector<8xf32> to vector<8x1xf32>
    %68 = arith.addf %65, %67 : vector<8x1xf32>
    %c1_36 = arith.constant 1 : index
    %c0_37 = arith.constant 0 : index
    %c0_38 = arith.constant 0 : index
    %69 = vector.load %arg10[%c1_36, %c0_37, %c0_38] : memref<8x8x1xf32, #tpu.memory_space<vmem>>, vector<1x8x1xf32>
    %70 = vector.shape_cast %69 : vector<1x8x1xf32> to vector<8x1xf32>
    %71 = vector.shape_cast %68 : vector<8x1xf32> to vector<1x8x1xf32>
    tpu.vector_store %arg10[%c1_36, %c0_37, %c0_38], %71 {strides = array<i32>} : memref<8x8x1xf32, #tpu.memory_space<vmem>>, vector<1x8x1xf32>,
    %c1_39 = arith.constant 1 : index
    %c0_40 = arith.constant 0 : index
    %c0_41 = arith.constant 0 : index
    %72 = vector.load %arg9[%c1_39, %c0_40, %c0_41] : memref<8x8x1xf32, #tpu.memory_space<vmem>>, vector<1x8x1xf32>
    %73 = vector.shape_cast %72 : vector<1x8x1xf32> to vector<8x1xf32>
    %74 = vector.shape_cast %57 : vector<8x1xf32> to vector<1x8x1xf32>
    tpu.vector_store %arg9[%c1_39, %c0_40, %c0_41], %74 {strides = array<i32>} : memref<8x8x1xf32, #tpu.memory_space<vmem>>, vector<1x8x1xf32>,
    %75 = arith.truncf %62 : vector<8x8xf32> to vector<8x8xbf16>
    %76 = vector.extract_strided_slice %15 {offsets = [0, 8], sizes = [8, 8], strides = [1, 1]} : vector<8x32xbf16> to vector<8x8xbf16>
    %cst_42 = arith.constant dense<0.000000e+00> : vector<8x8xf32>
    %77 = tpu.matmul %75, %76, %cst_42 {dimension_numbers = #tpu.dot_dimension_numbers<[1], [0], [0], [1], [0, 0, 1, 1], [], []>} : vector<8x8xbf16>, vector<8x8xbf16>, vector<8x8xf32> -> vector<8x8xf32>
    %78 = vector.extract_strided_slice %17 {offsets = [0, 8], sizes = [8, 8], strides = [1, 1]} : vector<8x32xf32> to vector<8x8xf32>
    %79 = vector.broadcast %59 : vector<8x1xf32> to vector<8x8xf32>
    %80 = arith.mulf %79, %78 : vector<8x8xf32>
    %81 = arith.addf %80, %77 : vector<8x8xf32>
    %82 = vector.extract_strided_slice %13 {offsets = [0, 16], sizes = [8, 8], strides = [1, 1]} : vector<8x32xbf16> to vector<8x8xbf16>
    %83 = vector.extract_strided_slice %14 {offsets = [0, 16], sizes = [8, 8], strides = [1, 1]} : vector<8x32xbf16> to vector<8x8xbf16>
    %cst_43 = arith.constant dense<0.000000e+00> : vector<8x8xf32>
    %84 = tpu.matmul %82, %83, %cst_43 {dimension_numbers = #tpu.dot_dimension_numbers<[1], [1], [0], [0], [0, 0, 1, 0], [], []>} : vector<8x8xbf16>, vector<8x8xbf16>, vector<8x8xf32> -> vector<8x8xf32>
    %c2 = arith.constant 2 : index
    %c0_44 = arith.constant 0 : index
    %c0_45 = arith.constant 0 : index
    %85 = vector.load %arg9[%c2, %c0_44, %c0_45] : memref<8x8x1xf32, #tpu.memory_space<vmem>>, vector<1x8x1xf32>
    %86 = vector.shape_cast %85 : vector<1x8x1xf32> to vector<8x1xf32>
    %cst_46 = arith.constant dense<0xFF800000> : vector<8xf32>
    %87 = vector.multi_reduction <maximumf>, %84, %cst_46 [1] : vector<8x8xf32> to vector<8xf32>
    %88 = vector.shape_cast %87 : vector<8xf32> to vector<8x1xf32>
    %89 = arith.maximumf %86, %88 : vector<8x1xf32>
    %90 = arith.subf %86, %89 : vector<8x1xf32>
    %91 = math.exp %90 : vector<8x1xf32>
    %92 = vector.broadcast %89 : vector<8x1xf32> to vector<8x8xf32>
    %93 = arith.subf %84, %92 : vector<8x8xf32>
    %94 = math.exp %93 : vector<8x8xf32>
    %c2_47 = arith.constant 2 : index
    %c0_48 = arith.constant 0 : index
    %c0_49 = arith.constant 0 : index
    %95 = vector.load %arg10[%c2_47, %c0_48, %c0_49] : memref<8x8x1xf32, #tpu.memory_space<vmem>>, vector<1x8x1xf32>
    %96 = vector.shape_cast %95 : vector<1x8x1xf32> to vector<8x1xf32>
    %97 = arith.mulf %91, %96 : vector<8x1xf32>
    %cst_50 = arith.constant dense<0.000000e+00> : vector<8xf32>
    %98 = vector.multi_reduction <add>, %94, %cst_50 [1] : vector<8x8xf32> to vector<8xf32>
    %99 = vector.shape_cast %98 : vector<8xf32> to vector<8x1xf32>
    %100 = arith.addf %97, %99 : vector<8x1xf32>
    %c2_51 = arith.constant 2 : index
    %c0_52 = arith.constant 0 : index
    %c0_53 = arith.constant 0 : index
    %101 = vector.load %arg10[%c2_51, %c0_52, %c0_53] : memref<8x8x1xf32, #tpu.memory_space<vmem>>, vector<1x8x1xf32>
    %102 = vector.shape_cast %101 : vector<1x8x1xf32> to vector<8x1xf32>
    %103 = vector.shape_cast %100 : vector<8x1xf32> to vector<1x8x1xf32>
    tpu.vector_store %arg10[%c2_51, %c0_52, %c0_53], %103 {strides = array<i32>} : memref<8x8x1xf32, #tpu.memory_space<vmem>>, vector<1x8x1xf32>,
    %c2_54 = arith.constant 2 : index
    %c0_55 = arith.constant 0 : index
    %c0_56 = arith.constant 0 : index
    %104 = vector.load %arg9[%c2_54, %c0_55, %c0_56] : memref<8x8x1xf32, #tpu.memory_space<vmem>>, vector<1x8x1xf32>
    %105 = vector.shape_cast %104 : vector<1x8x1xf32> to vector<8x1xf32>
    %106 = vector.shape_cast %89 : vector<8x1xf32> to vector<1x8x1xf32>
    tpu.vector_store %arg9[%c2_54, %c0_55, %c0_56], %106 {strides = array<i32>} : memref<8x8x1xf32, #tpu.memory_space<vmem>>, vector<1x8x1xf32>,
    %107 = arith.truncf %94 : vector<8x8xf32> to vector<8x8xbf16>
    %108 = vector.extract_strided_slice %15 {offsets = [0, 16], sizes = [8, 8], strides = [1, 1]} : vector<8x32xbf16> to vector<8x8xbf16>
    %cst_57 = arith.constant dense<0.000000e+00> : vector<8x8xf32>
    %109 = tpu.matmul %107, %108, %cst_57 {dimension_numbers = #tpu.dot_dimension_numbers<[1], [0], [0], [1], [0, 0, 1, 1], [], []>} : vector<8x8xbf16>, vector<8x8xbf16>, vector<8x8xf32> -> vector<8x8xf32>
    %110 = vector.extract_strided_slice %17 {offsets = [0, 16], sizes = [8, 8], strides = [1, 1]} : vector<8x32xf32> to vector<8x8xf32>
    %111 = vector.broadcast %91 : vector<8x1xf32> to vector<8x8xf32>
    %112 = arith.mulf %111, %110 : vector<8x8xf32>
    %113 = arith.addf %112, %109 : vector<8x8xf32>
    %114 = vector.extract_strided_slice %13 {offsets = [0, 24], sizes = [8, 8], strides = [1, 1]} : vector<8x32xbf16> to vector<8x8xbf16>
    %115 = vector.extract_strided_slice %14 {offsets = [0, 24], sizes = [8, 8], strides = [1, 1]} : vector<8x32xbf16> to vector<8x8xbf16>
    %cst_58 = arith.constant dense<0.000000e+00> : vector<8x8xf32>
    %116 = tpu.matmul %114, %115, %cst_58 {dimension_numbers = #tpu.dot_dimension_numbers<[1], [1], [0], [0], [0, 0, 1, 0], [], []>} : vector<8x8xbf16>, vector<8x8xbf16>, vector<8x8xf32> -> vector<8x8xf32>
    %c3 = arith.constant 3 : index
    %c0_59 = arith.constant 0 : index
    %c0_60 = arith.constant 0 : index
    %117 = vector.load %arg9[%c3, %c0_59, %c0_60] : memref<8x8x1xf32, #tpu.memory_space<vmem>>, vector<1x8x1xf32>
    %118 = vector.shape_cast %117 : vector<1x8x1xf32> to vector<8x1xf32>
    %cst_61 = arith.constant dense<0xFF800000> : vector<8xf32>
    %119 = vector.multi_reduction <maximumf>, %116, %cst_61 [1] : vector<8x8xf32> to vector<8xf32>
    %120 = vector.shape_cast %119 : vector<8xf32> to vector<8x1xf32>
    %121 = arith.maximumf %118, %120 : vector<8x1xf32>
    %122 = arith.subf %118, %121 : vector<8x1xf32>
    %123 = math.exp %122 : vector<8x1xf32>
    %124 = vector.broadcast %121 : vector<8x1xf32> to vector<8x8xf32>
    %125 = arith.subf %116, %124 : vector<8x8xf32>
    %126 = math.exp %125 : vector<8x8xf32>
    %c3_62 = arith.constant 3 : index
    %c0_63 = arith.constant 0 : index
    %c0_64 = arith.constant 0 : index
    %127 = vector.load %arg10[%c3_62, %c0_63, %c0_64] : memref<8x8x1xf32, #tpu.memory_space<vmem>>, vector<1x8x1xf32>
    %128 = vector.shape_cast %127 : vector<1x8x1xf32> to vector<8x1xf32>
    %129 = arith.mulf %123, %128 : vector<8x1xf32>
    %cst_65 = arith.constant dense<0.000000e+00> : vector<8xf32>
    %130 = vector.multi_reduction <add>, %126, %cst_65 [1] : vector<8x8xf32> to vector<8xf32>
    %131 = vector.shape_cast %130 : vector<8xf32> to vector<8x1xf32>
    %132 = arith.addf %129, %131 : vector<8x1xf32>
    %c3_66 = arith.constant 3 : index
    %c0_67 = arith.constant 0 : index
    %c0_68 = arith.constant 0 : index
    %133 = vector.load %arg10[%c3_66, %c0_67, %c0_68] : memref<8x8x1xf32, #tpu.memory_space<vmem>>, vector<1x8x1xf32>
    %134 = vector.shape_cast %133 : vector<1x8x1xf32> to vector<8x1xf32>
    %135 = vector.shape_cast %132 : vector<8x1xf32> to vector<1x8x1xf32>
    tpu.vector_store %arg10[%c3_66, %c0_67, %c0_68], %135 {strides = array<i32>} : memref<8x8x1xf32, #tpu.memory_space<vmem>>, vector<1x8x1xf32>,
    %c3_69 = arith.constant 3 : index
    %c0_70 = arith.constant 0 : index
    %c0_71 = arith.constant 0 : index
    %136 = vector.load %arg9[%c3_69, %c0_70, %c0_71] : memref<8x8x1xf32, #tpu.memory_space<vmem>>, vector<1x8x1xf32>
    %137 = vector.shape_cast %136 : vector<1x8x1xf32> to vector<8x1xf32>
    %138 = vector.shape_cast %121 : vector<8x1xf32> to vector<1x8x1xf32>
    tpu.vector_store %arg9[%c3_69, %c0_70, %c0_71], %138 {strides = array<i32>} : memref<8x8x1xf32, #tpu.memory_space<vmem>>, vector<1x8x1xf32>,
    %139 = arith.truncf %126 : vector<8x8xf32> to vector<8x8xbf16>
    %140 = vector.extract_strided_slice %15 {offsets = [0, 24], sizes = [8, 8], strides = [1, 1]} : vector<8x32xbf16> to vector<8x8xbf16>
    %cst_72 = arith.constant dense<0.000000e+00> : vector<8x8xf32>
    %141 = tpu.matmul %139, %140, %cst_72 {dimension_numbers = #tpu.dot_dimension_numbers<[1], [0], [0], [1], [0, 0, 1, 1], [], []>} : vector<8x8xbf16>, vector<8x8xbf16>, vector<8x8xf32> -> vector<8x8xf32>
    %142 = vector.extract_strided_slice %17 {offsets = [0, 24], sizes = [8, 8], strides = [1, 1]} : vector<8x32xf32> to vector<8x8xf32>
    %143 = vector.broadcast %123 : vector<8x1xf32> to vector<8x8xf32>
    %144 = arith.mulf %143, %142 : vector<8x8xf32>
    %145 = arith.addf %144, %141 : vector<8x8xf32>
    %146 = tpu.concatenate %49, %81, %113, %145 in 1 : vector<8x8xf32>, vector<8x8xf32>, vector<8x8xf32>, vector<8x8xf32> -> vector<8x32xf32>
    %c0_73 = arith.constant 0 : index
    %c0_74 = arith.constant 0 : index
    %c0_75 = arith.constant 0 : index
    %147 = vector.load %arg11[%c0_73, %c0_74, %c0_75] : memref<2x8x32xf32, #tpu.memory_space<vmem>>, vector<1x8x32xf32>
    %148 = vector.shape_cast %147 : vector<1x8x32xf32> to vector<8x32xf32>
    %149 = vector.shape_cast %146 : vector<8x32xf32> to vector<1x8x32xf32>
    tpu.vector_store %arg11[%c0_73, %c0_74, %c0_75], %149 {strides = array<i32>} : memref<2x8x32xf32, #tpu.memory_space<vmem>>, vector<1x8x32xf32>,
    %150 = vector.extract_strided_slice %12 {offsets = [8, 0], sizes = [8, 32], strides = [1, 1]} : vector<16x32xbf16> to vector<8x32xbf16>
    %151 = vector.extract_strided_slice %11 {offsets = [8, 0], sizes = [8, 32], strides = [1, 1]} : vector<16x32xbf16> to vector<8x32xbf16>
    %152 = vector.extract_strided_slice %11 {offsets = [8, 0], sizes = [8, 32], strides = [1, 1]} : vector<16x32xbf16> to vector<8x32xbf16>
    %c1_76 = arith.constant 1 : index
    %c0_77 = arith.constant 0 : index
    %c0_78 = arith.constant 0 : index
    %153 = vector.load %arg11[%c1_76, %c0_77, %c0_78] : memref<2x8x32xf32, #tpu.memory_space<vmem>>, vector<1x8x32xf32>
    %154 = vector.shape_cast %153 : vector<1x8x32xf32> to vector<8x32xf32>
    %155 = vector.extract_strided_slice %150 {offsets = [0, 0], sizes = [8, 8], strides = [1, 1]} : vector<8x32xbf16> to vector<8x8xbf16>
    %156 = vector.extract_strided_slice %151 {offsets = [0, 0], sizes = [8, 8], strides = [1, 1]} : vector<8x32xbf16> to vector<8x8xbf16>
    %cst_79 = arith.constant dense<0.000000e+00> : vector<8x8xf32>
    %157 = tpu.matmul %155, %156, %cst_79 {dimension_numbers = #tpu.dot_dimension_numbers<[1], [1], [0], [0], [0, 0, 1, 0], [], []>} : vector<8x8xbf16>, vector<8x8xbf16>, vector<8x8xf32> -> vector<8x8xf32>
    %c4 = arith.constant 4 : index
    %c0_80 = arith.constant 0 : index
    %c0_81 = arith.constant 0 : index
    %158 = vector.load %arg9[%c4, %c0_80, %c0_81] : memref<8x8x1xf32, #tpu.memory_space<vmem>>, vector<1x8x1xf32>
    %159 = vector.shape_cast %158 : vector<1x8x1xf32> to vector<8x1xf32>
    %cst_82 = arith.constant dense<0xFF800000> : vector<8xf32>
    %160 = vector.multi_reduction <maximumf>, %157, %cst_82 [1] : vector<8x8xf32> to vector<8xf32>
    %161 = vector.shape_cast %160 : vector<8xf32> to vector<8x1xf32>
    %162 = arith.maximumf %159, %161 : vector<8x1xf32>
    %163 = arith.subf %159, %162 : vector<8x1xf32>
    %164 = math.exp %163 : vector<8x1xf32>
    %165 = vector.broadcast %162 : vector<8x1xf32> to vector<8x8xf32>
    %166 = arith.subf %157, %165 : vector<8x8xf32>
    %167 = math.exp %166 : vector<8x8xf32>
    %c4_83 = arith.constant 4 : index
    %c0_84 = arith.constant 0 : index
    %c0_85 = arith.constant 0 : index
    %168 = vector.load %arg10[%c4_83, %c0_84, %c0_85] : memref<8x8x1xf32, #tpu.memory_space<vmem>>, vector<1x8x1xf32>
    %169 = vector.shape_cast %168 : vector<1x8x1xf32> to vector<8x1xf32>
    %170 = arith.mulf %164, %169 : vector<8x1xf32>
    %cst_86 = arith.constant dense<0.000000e+00> : vector<8xf32>
    %171 = vector.multi_reduction <add>, %167, %cst_86 [1] : vector<8x8xf32> to vector<8xf32>
    %172 = vector.shape_cast %171 : vector<8xf32> to vector<8x1xf32>
    %173 = arith.addf %170, %172 : vector<8x1xf32>
    %c4_87 = arith.constant 4 : index
    %c0_88 = arith.constant 0 : index
    %c0_89 = arith.constant 0 : index
    %174 = vector.load %arg10[%c4_87, %c0_88, %c0_89] : memref<8x8x1xf32, #tpu.memory_space<vmem>>, vector<1x8x1xf32>
    %175 = vector.shape_cast %174 : vector<1x8x1xf32> to vector<8x1xf32>
    %176 = vector.shape_cast %173 : vector<8x1xf32> to vector<1x8x1xf32>
    tpu.vector_store %arg10[%c4_87, %c0_88, %c0_89], %176 {strides = array<i32>} : memref<8x8x1xf32, #tpu.memory_space<vmem>>, vector<1x8x1xf32>,
    %c4_90 = arith.constant 4 : index
    %c0_91 = arith.constant 0 : index
    %c0_92 = arith.constant 0 : index
    %177 = vector.load %arg9[%c4_90, %c0_91, %c0_92] : memref<8x8x1xf32, #tpu.memory_space<vmem>>, vector<1x8x1xf32>
    %178 = vector.shape_cast %177 : vector<1x8x1xf32> to vector<8x1xf32>
    %179 = vector.shape_cast %162 : vector<8x1xf32> to vector<1x8x1xf32>
    tpu.vector_store %arg9[%c4_90, %c0_91, %c0_92], %179 {strides = array<i32>} : memref<8x8x1xf32, #tpu.memory_space<vmem>>, vector<1x8x1xf32>,
    %180 = arith.truncf %167 : vector<8x8xf32> to vector<8x8xbf16>
    %181 = vector.extract_strided_slice %152 {offsets = [0, 0], sizes = [8, 8], strides = [1, 1]} : vector<8x32xbf16> to vector<8x8xbf16>
    %cst_93 = arith.constant dense<0.000000e+00> : vector<8x8xf32>
    %182 = tpu.matmul %180, %181, %cst_93 {dimension_numbers = #tpu.dot_dimension_numbers<[1], [0], [0], [1], [0, 0, 1, 1], [], []>} : vector<8x8xbf16>, vector<8x8xbf16>, vector<8x8xf32> -> vector<8x8xf32>
    %183 = vector.extract_strided_slice %154 {offsets = [0, 0], sizes = [8, 8], strides = [1, 1]} : vector<8x32xf32> to vector<8x8xf32>
    %184 = vector.broadcast %164 : vector<8x1xf32> to vector<8x8xf32>
    %185 = arith.mulf %184, %183 : vector<8x8xf32>
    %186 = arith.addf %185, %182 : vector<8x8xf32>
    %187 = vector.extract_strided_slice %150 {offsets = [0, 8], sizes = [8, 8], strides = [1, 1]} : vector<8x32xbf16> to vector<8x8xbf16>
    %188 = vector.extract_strided_slice %151 {offsets = [0, 8], sizes = [8, 8], strides = [1, 1]} : vector<8x32xbf16> to vector<8x8xbf16>
    %cst_94 = arith.constant dense<0.000000e+00> : vector<8x8xf32>
    %189 = tpu.matmul %187, %188, %cst_94 {dimension_numbers = #tpu.dot_dimension_numbers<[1], [1], [0], [0], [0, 0, 1, 0], [], []>} : vector<8x8xbf16>, vector<8x8xbf16>, vector<8x8xf32> -> vector<8x8xf32>
    %c5 = arith.constant 5 : index
    %c0_95 = arith.constant 0 : index
    %c0_96 = arith.constant 0 : index
    %190 = vector.load %arg9[%c5, %c0_95, %c0_96] : memref<8x8x1xf32, #tpu.memory_space<vmem>>, vector<1x8x1xf32>
    %191 = vector.shape_cast %190 : vector<1x8x1xf32> to vector<8x1xf32>
    %cst_97 = arith.constant dense<0xFF800000> : vector<8xf32>
    %192 = vector.multi_reduction <maximumf>, %189, %cst_97 [1] : vector<8x8xf32> to vector<8xf32>
    %193 = vector.shape_cast %192 : vector<8xf32> to vector<8x1xf32>
    %194 = arith.maximumf %191, %193 : vector<8x1xf32>
    %195 = arith.subf %191, %194 : vector<8x1xf32>
    %196 = math.exp %195 : vector<8x1xf32>
    %197 = vector.broadcast %194 : vector<8x1xf32> to vector<8x8xf32>
    %198 = arith.subf %189, %197 : vector<8x8xf32>
    %199 = math.exp %198 : vector<8x8xf32>
    %c5_98 = arith.constant 5 : index
    %c0_99 = arith.constant 0 : index
    %c0_100 = arith.constant 0 : index
    %200 = vector.load %arg10[%c5_98, %c0_99, %c0_100] : memref<8x8x1xf32, #tpu.memory_space<vmem>>, vector<1x8x1xf32>
    %201 = vector.shape_cast %200 : vector<1x8x1xf32> to vector<8x1xf32>
    %202 = arith.mulf %196, %201 : vector<8x1xf32>
    %cst_101 = arith.constant dense<0.000000e+00> : vector<8xf32>
    %203 = vector.multi_reduction <add>, %199, %cst_101 [1] : vector<8x8xf32> to vector<8xf32>
    %204 = vector.shape_cast %203 : vector<8xf32> to vector<8x1xf32>
    %205 = arith.addf %202, %204 : vector<8x1xf32>
    %c5_102 = arith.constant 5 : index
    %c0_103 = arith.constant 0 : index
    %c0_104 = arith.constant 0 : index
    %206 = vector.load %arg10[%c5_102, %c0_103, %c0_104] : memref<8x8x1xf32, #tpu.memory_space<vmem>>, vector<1x8x1xf32>
    %207 = vector.shape_cast %206 : vector<1x8x1xf32> to vector<8x1xf32>
    %208 = vector.shape_cast %205 : vector<8x1xf32> to vector<1x8x1xf32>
    tpu.vector_store %arg10[%c5_102, %c0_103, %c0_104], %208 {strides = array<i32>} : memref<8x8x1xf32, #tpu.memory_space<vmem>>, vector<1x8x1xf32>,
    %c5_105 = arith.constant 5 : index
    %c0_106 = arith.constant 0 : index
    %c0_107 = arith.constant 0 : index
    %209 = vector.load %arg9[%c5_105, %c0_106, %c0_107] : memref<8x8x1xf32, #tpu.memory_space<vmem>>, vector<1x8x1xf32>
    %210 = vector.shape_cast %209 : vector<1x8x1xf32> to vector<8x1xf32>
    %211 = vector.shape_cast %194 : vector<8x1xf32> to vector<1x8x1xf32>
    tpu.vector_store %arg9[%c5_105, %c0_106, %c0_107], %211 {strides = array<i32>} : memref<8x8x1xf32, #tpu.memory_space<vmem>>, vector<1x8x1xf32>,
    %212 = arith.truncf %199 : vector<8x8xf32> to vector<8x8xbf16>
    %213 = vector.extract_strided_slice %152 {offsets = [0, 8], sizes = [8, 8], strides = [1, 1]} : vector<8x32xbf16> to vector<8x8xbf16>
    %cst_108 = arith.constant dense<0.000000e+00> : vector<8x8xf32>
    %214 = tpu.matmul %212, %213, %cst_108 {dimension_numbers = #tpu.dot_dimension_numbers<[1], [0], [0], [1], [0, 0, 1, 1], [], []>} : vector<8x8xbf16>, vector<8x8xbf16>, vector<8x8xf32> -> vector<8x8xf32>
    %215 = vector.extract_strided_slice %154 {offsets = [0, 8], sizes = [8, 8], strides = [1, 1]} : vector<8x32xf32> to vector<8x8xf32>
    %216 = vector.broadcast %196 : vector<8x1xf32> to vector<8x8xf32>
    %217 = arith.mulf %216, %215 : vector<8x8xf32>
    %218 = arith.addf %217, %214 : vector<8x8xf32>
    %219 = vector.extract_strided_slice %150 {offsets = [0, 16], sizes = [8, 8], strides = [1, 1]} : vector<8x32xbf16> to vector<8x8xbf16>
    %220 = vector.extract_strided_slice %151 {offsets = [0, 16], sizes = [8, 8], strides = [1, 1]} : vector<8x32xbf16> to vector<8x8xbf16>
    %cst_109 = arith.constant dense<0.000000e+00> : vector<8x8xf32>
    %221 = tpu.matmul %219, %220, %cst_109 {dimension_numbers = #tpu.dot_dimension_numbers<[1], [1], [0], [0], [0, 0, 1, 0], [], []>} : vector<8x8xbf16>, vector<8x8xbf16>, vector<8x8xf32> -> vector<8x8xf32>
    %c6 = arith.constant 6 : index
    %c0_110 = arith.constant 0 : index
    %c0_111 = arith.constant 0 : index
    %222 = vector.load %arg9[%c6, %c0_110, %c0_111] : memref<8x8x1xf32, #tpu.memory_space<vmem>>, vector<1x8x1xf32>
    %223 = vector.shape_cast %222 : vector<1x8x1xf32> to vector<8x1xf32>
    %cst_112 = arith.constant dense<0xFF800000> : vector<8xf32>
    %224 = vector.multi_reduction <maximumf>, %221, %cst_112 [1] : vector<8x8xf32> to vector<8xf32>
    %225 = vector.shape_cast %224 : vector<8xf32> to vector<8x1xf32>
    %226 = arith.maximumf %223, %225 : vector<8x1xf32>
    %227 = arith.subf %223, %226 : vector<8x1xf32>
    %228 = math.exp %227 : vector<8x1xf32>
    %229 = vector.broadcast %226 : vector<8x1xf32> to vector<8x8xf32>
    %230 = arith.subf %221, %229 : vector<8x8xf32>
    %231 = math.exp %230 : vector<8x8xf32>
    %c6_113 = arith.constant 6 : index
    %c0_114 = arith.constant 0 : index
    %c0_115 = arith.constant 0 : index
    %232 = vector.load %arg10[%c6_113, %c0_114, %c0_115] : memref<8x8x1xf32, #tpu.memory_space<vmem>>, vector<1x8x1xf32>
    %233 = vector.shape_cast %232 : vector<1x8x1xf32> to vector<8x1xf32>
    %234 = arith.mulf %228, %233 : vector<8x1xf32>
    %cst_116 = arith.constant dense<0.000000e+00> : vector<8xf32>
    %235 = vector.multi_reduction <add>, %231, %cst_116 [1] : vector<8x8xf32> to vector<8xf32>
    %236 = vector.shape_cast %235 : vector<8xf32> to vector<8x1xf32>
    %237 = arith.addf %234, %236 : vector<8x1xf32>
    %c6_117 = arith.constant 6 : index
    %c0_118 = arith.constant 0 : index
    %c0_119 = arith.constant 0 : index
    %238 = vector.load %arg10[%c6_117, %c0_118, %c0_119] : memref<8x8x1xf32, #tpu.memory_space<vmem>>, vector<1x8x1xf32>
    %239 = vector.shape_cast %238 : vector<1x8x1xf32> to vector<8x1xf32>
    %240 = vector.shape_cast %237 : vector<8x1xf32> to vector<1x8x1xf32>
    tpu.vector_store %arg10[%c6_117, %c0_118, %c0_119], %240 {strides = array<i32>} : memref<8x8x1xf32, #tpu.memory_space<vmem>>, vector<1x8x1xf32>,
    %c6_120 = arith.constant 6 : index
    %c0_121 = arith.constant 0 : index
    %c0_122 = arith.constant 0 : index
    %241 = vector.load %arg9[%c6_120, %c0_121, %c0_122] : memref<8x8x1xf32, #tpu.memory_space<vmem>>, vector<1x8x1xf32>
    %242 = vector.shape_cast %241 : vector<1x8x1xf32> to vector<8x1xf32>
    %243 = vector.shape_cast %226 : vector<8x1xf32> to vector<1x8x1xf32>
    tpu.vector_store %arg9[%c6_120, %c0_121, %c0_122], %243 {strides = array<i32>} : memref<8x8x1xf32, #tpu.memory_space<vmem>>, vector<1x8x1xf32>,
    %244 = arith.truncf %231 : vector<8x8xf32> to vector<8x8xbf16>
    %245 = vector.extract_strided_slice %152 {offsets = [0, 16], sizes = [8, 8], strides = [1, 1]} : vector<8x32xbf16> to vector<8x8xbf16>
    %cst_123 = arith.constant dense<0.000000e+00> : vector<8x8xf32>
    %246 = tpu.matmul %244, %245, %cst_123 {dimension_numbers = #tpu.dot_dimension_numbers<[1], [0], [0], [1], [0, 0, 1, 1], [], []>} : vector<8x8xbf16>, vector<8x8xbf16>, vector<8x8xf32> -> vector<8x8xf32>
    %247 = vector.extract_strided_slice %154 {offsets = [0, 16], sizes = [8, 8], strides = [1, 1]} : vector<8x32xf32> to vector<8x8xf32>
    %248 = vector.broadcast %228 : vector<8x1xf32> to vector<8x8xf32>
    %249 = arith.mulf %248, %247 : vector<8x8xf32>
    %250 = arith.addf %249, %246 : vector<8x8xf32>
    %251 = vector.extract_strided_slice %150 {offsets = [0, 24], sizes = [8, 8], strides = [1, 1]} : vector<8x32xbf16> to vector<8x8xbf16>
    %252 = vector.extract_strided_slice %151 {offsets = [0, 24], sizes = [8, 8], strides = [1, 1]} : vector<8x32xbf16> to vector<8x8xbf16>
    %cst_124 = arith.constant dense<0.000000e+00> : vector<8x8xf32>
    %253 = tpu.matmul %251, %252, %cst_124 {dimension_numbers = #tpu.dot_dimension_numbers<[1], [1], [0], [0], [0, 0, 1, 0], [], []>} : vector<8x8xbf16>, vector<8x8xbf16>, vector<8x8xf32> -> vector<8x8xf32>
    %c7 = arith.constant 7 : index
    %c0_125 = arith.constant 0 : index
    %c0_126 = arith.constant 0 : index
    %254 = vector.load %arg9[%c7, %c0_125, %c0_126] : memref<8x8x1xf32, #tpu.memory_space<vmem>>, vector<1x8x1xf32>
    %255 = vector.shape_cast %254 : vector<1x8x1xf32> to vector<8x1xf32>
    %cst_127 = arith.constant dense<0xFF800000> : vector<8xf32>
    %256 = vector.multi_reduction <maximumf>, %253, %cst_127 [1] : vector<8x8xf32> to vector<8xf32>
    %257 = vector.shape_cast %256 : vector<8xf32> to vector<8x1xf32>
    %258 = arith.maximumf %255, %257 : vector<8x1xf32>
    %259 = arith.subf %255, %258 : vector<8x1xf32>
    %260 = math.exp %259 : vector<8x1xf32>
    %261 = vector.broadcast %258 : vector<8x1xf32> to vector<8x8xf32>
    %262 = arith.subf %253, %261 : vector<8x8xf32>
    %263 = math.exp %262 : vector<8x8xf32>
    %c7_128 = arith.constant 7 : index
    %c0_129 = arith.constant 0 : index
    %c0_130 = arith.constant 0 : index
    %264 = vector.load %arg10[%c7_128, %c0_129, %c0_130] : memref<8x8x1xf32, #tpu.memory_space<vmem>>, vector<1x8x1xf32>
    %265 = vector.shape_cast %264 : vector<1x8x1xf32> to vector<8x1xf32>
    %266 = arith.mulf %260, %265 : vector<8x1xf32>
    %cst_131 = arith.constant dense<0.000000e+00> : vector<8xf32>
    %267 = vector.multi_reduction <add>, %263, %cst_131 [1] : vector<8x8xf32> to vector<8xf32>
    %268 = vector.shape_cast %267 : vector<8xf32> to vector<8x1xf32>
    %269 = arith.addf %266, %268 : vector<8x1xf32>
    %c7_132 = arith.constant 7 : index
    %c0_133 = arith.constant 0 : index
    %c0_134 = arith.constant 0 : index
    %270 = vector.load %arg10[%c7_132, %c0_133, %c0_134] : memref<8x8x1xf32, #tpu.memory_space<vmem>>, vector<1x8x1xf32>
    %271 = vector.shape_cast %270 : vector<1x8x1xf32> to vector<8x1xf32>
    %272 = vector.shape_cast %269 : vector<8x1xf32> to vector<1x8x1xf32>
    tpu.vector_store %arg10[%c7_132, %c0_133, %c0_134], %272 {strides = array<i32>} : memref<8x8x1xf32, #tpu.memory_space<vmem>>, vector<1x8x1xf32>,
    %c7_135 = arith.constant 7 : index
    %c0_136 = arith.constant 0 : index
    %c0_137 = arith.constant 0 : index
    %273 = vector.load %arg9[%c7_135, %c0_136, %c0_137] : memref<8x8x1xf32, #tpu.memory_space<vmem>>, vector<1x8x1xf32>
    %274 = vector.shape_cast %273 : vector<1x8x1xf32> to vector<8x1xf32>
    %275 = vector.shape_cast %258 : vector<8x1xf32> to vector<1x8x1xf32>
    tpu.vector_store %arg9[%c7_135, %c0_136, %c0_137], %275 {strides = array<i32>} : memref<8x8x1xf32, #tpu.memory_space<vmem>>, vector<1x8x1xf32>,
    %276 = arith.truncf %263 : vector<8x8xf32> to vector<8x8xbf16>
    %277 = vector.extract_strided_slice %152 {offsets = [0, 24], sizes = [8, 8], strides = [1, 1]} : vector<8x32xbf16> to vector<8x8xbf16>
    %cst_138 = arith.constant dense<0.000000e+00> : vector<8x8xf32>
    %278 = tpu.matmul %276, %277, %cst_138 {dimension_numbers = #tpu.dot_dimension_numbers<[1], [0], [0], [1], [0, 0, 1, 1], [], []>} : vector<8x8xbf16>, vector<8x8xbf16>, vector<8x8xf32> -> vector<8x8xf32>
    %279 = vector.extract_strided_slice %154 {offsets = [0, 24], sizes = [8, 8], strides = [1, 1]} : vector<8x32xf32> to vector<8x8xf32>
    %280 = vector.broadcast %260 : vector<8x1xf32> to vector<8x8xf32>
    %281 = arith.mulf %280, %279 : vector<8x8xf32>
    %282 = arith.addf %281, %278 : vector<8x8xf32>
    %283 = tpu.concatenate %186, %218, %250, %282 in 1 : vector<8x8xf32>, vector<8x8xf32>, vector<8x8xf32>, vector<8x8xf32> -> vector<8x32xf32>
    %c1_139 = arith.constant 1 : index
    %c0_140 = arith.constant 0 : index
    %c0_141 = arith.constant 0 : index
    %284 = vector.load %arg11[%c1_139, %c0_140, %c0_141] : memref<2x8x32xf32, #tpu.memory_space<vmem>>, vector<1x8x32xf32>
    %285 = vector.shape_cast %284 : vector<1x8x32xf32> to vector<8x32xf32>
    %286 = vector.shape_cast %283 : vector<8x32xf32> to vector<1x8x32xf32>
    tpu.vector_store %arg11[%c1_139, %c0_140, %c0_141], %286 {strides = array<i32>} : memref<2x8x32xf32, #tpu.memory_space<vmem>>, vector<1x8x32xf32>,
    %c1_i32 = arith.constant 1 : i32
    %287 = arith.cmpi eq, %arg2, %c1_i32 : i32
    %288 = arith.extui %287 : i1 to i32
    %c0_i32_142 = arith.constant 0 : i32
    %289 = arith.cmpi ne, %288, %c0_i32_142 : i32
    scf.if %289 {
      %c0_143 = arith.constant 0 : index
      %c0_144 = arith.constant 0 : index
      %c0_145 = arith.constant 0 : index
      %290 = vector.load %arg11[%c0_143, %c0_144, %c0_145] : memref<2x8x32xf32, #tpu.memory_space<vmem>>, vector<1x8x32xf32>
      %291 = vector.shape_cast %290 : vector<1x8x32xf32> to vector<8x32xf32>
      %c0_146 = arith.constant 0 : index
      %c0_147 = arith.constant 0 : index
      %c0_148 = arith.constant 0 : index
      %292 = vector.load %arg10[%c0_146, %c0_147, %c0_148] : memref<8x8x1xf32, #tpu.memory_space<vmem>>, vector<1x8x1xf32>
      %293 = vector.shape_cast %292 : vector<1x8x1xf32> to vector<8x1xf32>
      %294 = tpu.reciprocal %293 : vector<8x1xf32> -> vector<8x1xf32>
      %295 = vector.extract_strided_slice %291 {offsets = [0, 0], sizes = [8, 8], strides = [1, 1]} : vector<8x32xf32> to vector<8x8xf32>
      %296 = vector.broadcast %294 : vector<8x1xf32> to vector<8x8xf32>
      %297 = arith.mulf %295, %296 : vector<8x8xf32>
      %c1_149 = arith.constant 1 : index
      %c0_150 = arith.constant 0 : index
      %c0_151 = arith.constant 0 : index
      %298 = vector.load %arg10[%c1_149, %c0_150, %c0_151] : memref<8x8x1xf32, #tpu.memory_space<vmem>>, vector<1x8x1xf32>
      %299 = vector.shape_cast %298 : vector<1x8x1xf32> to vector<8x1xf32>
      %300 = tpu.reciprocal %299 : vector<8x1xf32> -> vector<8x1xf32>
      %301 = vector.extract_strided_slice %291 {offsets = [0, 8], sizes = [8, 8], strides = [1, 1]} : vector<8x32xf32> to vector<8x8xf32>
      %302 = vector.broadcast %300 : vector<8x1xf32> to vector<8x8xf32>
      %303 = arith.mulf %301, %302 : vector<8x8xf32>
      %c2_152 = arith.constant 2 : index
      %c0_153 = arith.constant 0 : index
      %c0_154 = arith.constant 0 : index
      %304 = vector.load %arg10[%c2_152, %c0_153, %c0_154] : memref<8x8x1xf32, #tpu.memory_space<vmem>>, vector<1x8x1xf32>
      %305 = vector.shape_cast %304 : vector<1x8x1xf32> to vector<8x1xf32>
      %306 = tpu.reciprocal %305 : vector<8x1xf32> -> vector<8x1xf32>
      %307 = vector.extract_strided_slice %291 {offsets = [0, 16], sizes = [8, 8], strides = [1, 1]} : vector<8x32xf32> to vector<8x8xf32>
      %308 = vector.broadcast %306 : vector<8x1xf32> to vector<8x8xf32>
      %309 = arith.mulf %307, %308 : vector<8x8xf32>
      %c3_155 = arith.constant 3 : index
      %c0_156 = arith.constant 0 : index
      %c0_157 = arith.constant 0 : index
      %310 = vector.load %arg10[%c3_155, %c0_156, %c0_157] : memref<8x8x1xf32, #tpu.memory_space<vmem>>, vector<1x8x1xf32>
      %311 = vector.shape_cast %310 : vector<1x8x1xf32> to vector<8x1xf32>
      %312 = tpu.reciprocal %311 : vector<8x1xf32> -> vector<8x1xf32>
      %313 = vector.extract_strided_slice %291 {offsets = [0, 24], sizes = [8, 8], strides = [1, 1]} : vector<8x32xf32> to vector<8x8xf32>
      %314 = vector.broadcast %312 : vector<8x1xf32> to vector<8x8xf32>
      %315 = arith.mulf %313, %314 : vector<8x8xf32>
      %316 = tpu.concatenate %297, %303, %309, %315 in 1 : vector<8x8xf32>, vector<8x8xf32>, vector<8x8xf32>, vector<8x8xf32> -> vector<8x32xf32>
      %c0_158 = arith.constant 0 : index
      %c0_159 = arith.constant 0 : index
      %c0_160 = arith.constant 0 : index
      %317 = vector.load %arg7[%c0_158, %c0_159, %c0_160] : memref<2x8x32xf32, #tpu.memory_space<vmem>>, vector<1x8x32xf32>
      %318 = vector.shape_cast %317 : vector<1x8x32xf32> to vector<8x32xf32>
      %319 = vector.shape_cast %316 : vector<8x32xf32> to vector<1x8x32xf32>
      tpu.vector_store %arg7[%c0_158, %c0_159, %c0_160], %319 {strides = array<i32>} : memref<2x8x32xf32, #tpu.memory_space<vmem>>, vector<1x8x32xf32>,
      %c1_161 = arith.constant 1 : index
      %c0_162 = arith.constant 0 : index
      %c0_163 = arith.constant 0 : index
      %320 = vector.load %arg11[%c1_161, %c0_162, %c0_163] : memref<2x8x32xf32, #tpu.memory_space<vmem>>, vector<1x8x32xf32>
      %321 = vector.shape_cast %320 : vector<1x8x32xf32> to vector<8x32xf32>
      %c4_164 = arith.constant 4 : index
      %c0_165 = arith.constant 0 : index
      %c0_166 = arith.constant 0 : index
      %322 = vector.load %arg10[%c4_164, %c0_165, %c0_166] : memref<8x8x1xf32, #tpu.memory_space<vmem>>, vector<1x8x1xf32>
      %323 = vector.shape_cast %322 : vector<1x8x1xf32> to vector<8x1xf32>
      %324 = tpu.reciprocal %323 : vector<8x1xf32> -> vector<8x1xf32>
      %325 = vector.extract_strided_slice %321 {offsets = [0, 0], sizes = [8, 8], strides = [1, 1]} : vector<8x32xf32> to vector<8x8xf32>
      %326 = vector.broadcast %324 : vector<8x1xf32> to vector<8x8xf32>
      %327 = arith.mulf %325, %326 : vector<8x8xf32>
      %c5_167 = arith.constant 5 : index
      %c0_168 = arith.constant 0 : index
      %c0_169 = arith.constant 0 : index
      %328 = vector.load %arg10[%c5_167, %c0_168, %c0_169] : memref<8x8x1xf32, #tpu.memory_space<vmem>>, vector<1x8x1xf32>
      %329 = vector.shape_cast %328 : vector<1x8x1xf32> to vector<8x1xf32>
      %330 = tpu.reciprocal %329 : vector<8x1xf32> -> vector<8x1xf32>
      %331 = vector.extract_strided_slice %321 {offsets = [0, 8], sizes = [8, 8], strides = [1, 1]} : vector<8x32xf32> to vector<8x8xf32>
      %332 = vector.broadcast %330 : vector<8x1xf32> to vector<8x8xf32>
      %333 = arith.mulf %331, %332 : vector<8x8xf32>
      %c6_170 = arith.constant 6 : index
      %c0_171 = arith.constant 0 : index
      %c0_172 = arith.constant 0 : index
      %334 = vector.load %arg10[%c6_170, %c0_171, %c0_172] : memref<8x8x1xf32, #tpu.memory_space<vmem>>, vector<1x8x1xf32>
      %335 = vector.shape_cast %334 : vector<1x8x1xf32> to vector<8x1xf32>
      %336 = tpu.reciprocal %335 : vector<8x1xf32> -> vector<8x1xf32>
      %337 = vector.extract_strided_slice %321 {offsets = [0, 16], sizes = [8, 8], strides = [1, 1]} : vector<8x32xf32> to vector<8x8xf32>
      %338 = vector.broadcast %336 : vector<8x1xf32> to vector<8x8xf32>
      %339 = arith.mulf %337, %338 : vector<8x8xf32>
      %c7_173 = arith.constant 7 : index
      %c0_174 = arith.constant 0 : index
      %c0_175 = arith.constant 0 : index
      %340 = vector.load %arg10[%c7_173, %c0_174, %c0_175] : memref<8x8x1xf32, #tpu.memory_space<vmem>>, vector<1x8x1xf32>
      %341 = vector.shape_cast %340 : vector<1x8x1xf32> to vector<8x1xf32>
      %342 = tpu.reciprocal %341 : vector<8x1xf32> -> vector<8x1xf32>
      %343 = vector.extract_strided_slice %321 {offsets = [0, 24], sizes = [8, 8], strides = [1, 1]} : vector<8x32xf32> to vector<8x8xf32>
      %344 = vector.broadcast %342 : vector<8x1xf32> to vector<8x8xf32>
      %345 = arith.mulf %343, %344 : vector<8x8xf32>
      %346 = tpu.concatenate %327, %333, %339, %345 in 1 : vector<8x8xf32>, vector<8x8xf32>, vector<8x8xf32>, vector<8x8xf32> -> vector<8x32xf32>
      %c1_176 = arith.constant 1 : index
      %c0_177 = arith.constant 0 : index
      %c0_178 = arith.constant 0 : index
      %347 = vector.load %arg7[%c1_176, %c0_177, %c0_178] : memref<2x8x32xf32, #tpu.memory_space<vmem>>, vector<1x8x32xf32>
      %348 = vector.shape_cast %347 : vector<1x8x32xf32> to vector<8x32xf32>
      %349 = vector.shape_cast %346 : vector<8x32xf32> to vector<1x8x32xf32>
      tpu.vector_store %arg7[%c1_176, %c0_177, %c0_178], %349 {strides = array<i32>} : memref<2x8x32xf32, #tpu.memory_space<vmem>>, vector<1x8x32xf32>,
    } else {
    }
    return
  }
  func.func @transform_0(%arg0: i32, %arg1: i32, %arg2: i32) -> (i32, i32, i32) {
    %c0_i32 = arith.constant 0 : i32
    %c0_i32_0 = arith.constant 0 : i32
    return %arg0, %arg1, %c0_i32 : i32, i32, i32
  }
  func.func @transform_1(%arg0: i32, %arg1: i32, %arg2: i32) -> (i32, i32, i32) {
    %c0_i32 = arith.constant 0 : i32
    %c0_i32_0 = arith.constant 0 : i32
    return %arg0, %arg2, %c0_i32 : i32, i32, i32
  }
  func.func @transform_2(%arg0: i32, %arg1: i32, %arg2: i32) -> (i32, i32) {
    %c0_i32 = arith.constant 0 : i32
    %c0_i32_0 = arith.constant 0 : i32
    %c0_i32_1 = arith.constant 0 : i32
    return %c0_i32, %c0_i32_0 : i32, i32
  }
  func.func @transform_3(%arg0: i32, %arg1: i32, %arg2: i32) -> (i32, i32) {
    %c0_i32 = arith.constant 0 : i32
    %c0_i32_0 = arith.constant 0 : i32
    %c0_i32_1 = arith.constant 0 : i32
    return %c0_i32, %c0_i32_0 : i32, i32
  }
  func.func @transform_4(%arg0: i32, %arg1: i32, %arg2: i32) -> (i32, i32, i32) {
    %c0_i32 = arith.constant 0 : i32
    %c0_i32_0 = arith.constant 0 : i32
    return %arg0, %arg1, %c0_i32 : i32, i32, i32
  }
}

</mosaic_0001>

<bundles_post_ra>
// kernel: tpu_custom_call.1
= control target key start
LH: loop header
LB: loop body
LE: loop exit
PB: predicated region body
PF: predicated region fallthrough
CT: control target
= control target key end

     0   :  { %s2502_s0 = inlined_call_operand.hbm [shape: f32[2,16,32], index: 0, kind: input, shape index: {}]   ;;  %s2503_s1 = inlined_call_operand.hbm [shape: f32[2,16,32], index: 1, kind: input, shape index: {}]   ;;  %s2504_s2 = inlined_call_operand.hbm [shape: bf16[32,32], index: 2, kind: input, shape index: {}]   ;;  %s2505_s3 = inlined_call_operand.vmem [shape: f32[1,32], index: 3, kind: input, shape index: {}]   ;;  %s2506_s4 = inlined_call_operand.hbm [shape: f32[2,16,32], index: 4, kind: output, shape index: {}]  }
   0x1   :  { %2517 = sst [smem:[#allocation24_spill]] %s2502_s0 }
   0x2   :  { %2518 = sst [smem:[#allocation25_spill]] %s2504_s2 }
   0x3   :  { %2519 = sst [smem:[#allocation26_spill]] %s2506_s4 }
   0x4   :  { %9 = vsyncpa [#allocation7], 0 }
   0x5   :  { %11 = vsyncpa [#allocation7 + $0x1], 0 }
   0x6   :  { %12 = vsyncpa [#allocation10], 0 }
   0x7   :  { %14 = vsyncpa [#allocation10 + $0x1], 0 }
   0x8   :  { %15 = vsyncpa [#allocation8], 0 }
   0x9   :  { %17 = vsyncpa [#allocation8 + $0x1], 0  ;;  %s1876_s15 = smov 0   ;;  %s1878_s16 = smov 0  }
   0xa   :  { %s1880_s17 = smov 0   ;;  %s1882_s18 = smov 0  }
   0xb   :  { %s1884_s19 = smov 0   ;;  %s1886_s20 = smov 0  }
   0xc   :  { %s1888_s21 = smov 0   ;;  %s1890_s22 = smov 0  }
   0xd   :  { %s1892_s23 = smov 0   ;;  %s1894_s24 = smov 0  }
   0xe   :  { %s1896_s25 = smov 0  }
   0xf LB: > { %2520 = sst [smem:[#allocation17_spill]] %s1803_s18  ;;  %s1930_s26 = sadd.s32 4294967295, %s1831_s25   ;;  %s1831_s25 = sphi %s1896_s25, %s23_s25   ;;  %s1827_s24 = sphi %s1894_s24, %s2578_s24   ;;  %s1823_s23 = sphi %s1892_s23, %s2569_s23   ;;  %s1819_s22 = sphi %s1890_s22, %s2577_s22   ;;  %s1815_s21 = sphi %s1888_s21, %s2576_s21   ;;  %s1811_s20 = sphi %s1886_s20, %s2575_s20   ;;  %s1807_s19 = sphi %s1884_s19, %s2574_s19   ;;  %s1803_s18 = sphi %s1882_s18, %s2573_s18   ;;  %s1799_s17 = sphi %s1880_s17, %s2572_s17   ;;  %s1795_s16 = sphi %s1878_s16, %s2571_s16   ;;  %s1791_s15 = sphi %s1876_s15, %s2570_s15  }
  0x10   : > { %2521 = sst [smem:[#allocation18_spill]] %s1815_s21  ;;  %s1373_s27 = sadd.s32 4294967294, %s1831_s25  }
  0x11   : > { %2522 = sst [smem:[#allocation19_spill]] %s1819_s22  ;;  %p64_p0 = scmp.ne.s32.totalorder %s1807_s19, %s1803_s18 }
  0x12   : > { %2523 = sst [smem:[#allocation20_spill]] %s1823_s23  ;;  %p65_p1 = scmp.eq.s32.totalorder %s1930_s26, 0 }
  0x13   : > { %p92_p2 = scmp.ne.s32.totalorder %s1795_s16, %s1791_s15  ;;  %p160_p3 = scmp.eq.s32.totalorder %s1930_s26, 3 }
  0x14   : > { %p1940_p4 = por %p65_p1, %p64_p0  ;;  %p166_p5 = scmp.eq.s32.totalorder %s1373_s27, 3 }
  0x15   : > { %p1946_p6 = por %p92_p2, %p65_p1  ;;  %p1374_p7 = scmp.ge.s32.totalorder %s1831_s25, 1 }
  0x16   : > { %p1951_p8 = por %p166_p5, %p64_p0  ;;  %p173_p9 = scmp.lt.s32.totalorder %s1831_s25, 5 }
  0x17   : > { %s2528_s2 = sld [smem:[#allocation25_spill]]  ;;  %s1833_s9 = smov [#allocation11]  }
  0x18   : > { %s2526_s30 = scalar_select %p1951_p8, 1, 0 }
  0x19   : > { %p1959_p10 = pnand %p1374_p7, %p173_p9  ;;  %s186_s10 = sshll.u32 %s1833_s9, 4  ;;  %s187_s10 = int_to_ptr.vmem [resolvable:$true] %s186_s10 }
  0x1a   : > { %2527 = sst [smem:[#allocation21_spill]] %s2526_s30  ;;  %s1834_s11 = smov 64  }
  0x1b   : > { %p1431_p11 = pneg %p1959_p10  ;;  %s1835_s12 = smov 4  }
  0x1c   : > { %p58_p13 = scmp.ne.s32.totalorder %s1811_s20, %s1807_s19  ;;  %p59_p0 = scmp.eq.s32.totalorder %s1831_s25, 0 }
  0x1d   : > { %s184_s7 = sshll.u32 %s2528_s2, 4  ;;  %p1432_p12 = pnand %p1431_p11, %p65_p1  ;;  %s185_s7 = int_to_ptr.hbm [resolvable:$true] %s184_s7 }
  0x1e   : > { %p1447_p2 = scmp.lt.s32.totalorder %s1831_s25, 4  ;;  %p1974_p5 = por %p160_p3, %p58_p13 }
  0x1f   : > { %1434 = dma.hbm_to_vmem [thread:$0]  (!%p1432_p12), %s185_s7, 256, %s187_s10, [#allocation10], %s1834_s11, %s1834_s11, %s1835_s12  }
  0x20   : > { %s2530_s14 = scalar_select %p1974_p5, 1, 0 }
  0x21   : > { %s203_s15 = sand.u32 1, %s1811_s20   ;;  %p60_p7 = por %p59_p0, %p58_p13 }
  0x22   : > { %2531 = sst [smem:[#allocation22_spill]] %s2530_s14  ;;  %s1377_s27 = sshll.u32 %s203_s15, 4 }
  0x23   : > { %s1378_s5 = sshll.u32 %s1827_s24, 3  ;;  %s2532_s0 = sld [smem:[#allocation24_spill]] }
  0x24   : > { %s207_s11 = scalar_lea.vmem [#allocation6], %s1377_s27  ;;  %p1436_p3 = pnand %p1447_p2, %p60_p7 }
  0x25   : > { %s217_s12 = sshll.u32 %s207_s11, 4  ;;  %s204_s13 = scalar_lea.sflag [#allocation7], %s203_s15  ;;  %s218_s12 = int_to_ptr.vmem [resolvable:$true] %s217_s12 }
  0x26   : > { %s2509_s2 = smov 256   ;;  %s2510_s30 = smov 128  }
  0x27   : > { %s2511_s18 = smov 8   ;;  %s51_s27 = sadd.s32 1, %s1811_s20 }
  0x28   : > { %p86_p9 = scmp.ne.s32.totalorder %s1799_s17, %s1795_s16  ;;  %s79_s6 = sadd.s32 1, %s1799_s17 }
  0x29   : > { %s214_s9 = scalar_lea.hbm %s2532_s0, %s1378_s5  ;;  %s35_s5 = sadd.s32 1, %s1823_s23 }
  0x2a   : > { %s215_s10 = sshll.u32 %s214_s9, 4  ;;  %p36_p11 = scmp.ge.s32.totalorder %s35_s5, 2  ;;  %s216_s10 = int_to_ptr.hbm [resolvable:$true] %s215_s10 }
  0x2b   : > { %1438 = dma.hbm_to_vmem [thread:$0]  (!%p1436_p3), %s216_s10, 256, %s218_s12, %s204_s13, %s2509_s2, %s2510_s30, %s2511_s18  }
  0x2c   : > { %p1997_p12 = por %p86_p9, %p59_p0  ;;  %s227_s15 = sand.u32 1, %s1831_s25  }
  0x2d   : > { %s2580_s5 = smov (%p36_p11, %s35_s5), 0  ;;  %s2535_s9 = sadd.s32 1, %s1827_s24 }
  0x2e   : > { %2534 = sst [smem:[#allocation23_spill]] %s2580_s5  ;;  %s2582_s9 = smov (!%p36_p11, %s2535_s9), %s1827_s24 }
  0x2f   : > { %s75_s13 = ssub.s32 %s1823_s23, %s2580_s5  ;;  %s229_s10 = sand.u32 1, %s1799_s17  }
  0x30   : > { %p40_p13 = scmp.ge.s32.totalorder %s2582_s9, 2  ;;  %p77_p7 = scmp.eq.s32.totalorder %s75_s13, 0 }
  0x31   : > { %s1379_s11 = sshll.u32 %s229_s10, 4  ;;  %s1380_s12 = sshll.u32 %s1823_s23, 3 }
  0x32   : > { %s2584_s9 = smov (%p40_p13, %s2582_s9), 0  ;;  %s238_s4 = scalar_lea.hbm %s2503_s1, %s1380_s12 }
  0x33   : > { %s2014_s2 = scalar_select %p77_p7, %s1799_s17, %s79_s6  }
  0x34   : > { %s47_s30 = ssub.s32 %s1827_s24, %s2584_s9  ;;  %s239_s14 = sshll.u32 %s238_s4, 4  ;;  %s240_s14 = int_to_ptr.hbm [resolvable:$true] %s239_s14 }
  0x35   : > { %p49_p0 = scmp.eq.s32.totalorder %s47_s30, 0  ;;  %s231_s5 = scalar_lea.vmem [#allocation9], %s1379_s11 }
  0x36   : > { %s241_s22 = sshll.u32 %s231_s5, 4  ;;  %p1439_p3 = pnand %p1447_p2, %p1997_p12  ;;  %s242_s22 = int_to_ptr.vmem [resolvable:$true] %s241_s22 }
  0x37   : > { %s2022_s21 = scalar_select %p49_p0, %s1811_s20, %s51_s27  }
  0x38   : > { %s228_s13 = scalar_lea.sflag [#allocation10], %s227_s15  ;;  %s2536_s10 = smov 8  }
  0x39   : > { %s2537_s6 = smov 128   ;;  %s2538_s23 = smov 256  }
  0x3a   : > { %1441 = dma.hbm_to_vmem [thread:$0]  (!%p1439_p3), %s240_s14, 256, %s242_s22, %s228_s13, %s2538_s23, %s2537_s6, %s2536_s10  }
  0x3b   : > { %253 = sbr.rel (%p1959_p10) target bundleno = 1998 (0x7ce), region = 36  ;;  %s2034_s0 = sand.u32 (!%p1959_p10), 1, %s1807_s19  }
  0x3c   : > { %s1382_s4 = sshll.u32 (!%p1959_p10), %s2034_s0, 4  ;;  %s256_s18 = scalar_lea.sflag (!%p1959_p10), [#allocation7], %s2034_s0 }
  0x3d   : > { %s2038_s30 = scalar_lea.vmem (!%p1959_p10), [#allocation6], %s1382_s4 }
  0x40   : > { %1774 = dma.done.wait (%p1940_p4), %s256_s18, 256  }
  0x41   : > { %1776 = vsyncadd (%p1940_p4), %s256_s18, 4294967040  ;;  %s265_s22 = sand.u32 1, %s1930_s26   ;;  %s267_s23 = sand.u32 1, %s1795_s16  }
  0x42   : > { %s1383_s8 = sshll.u32 %s267_s23, 4  ;;  %s266_s14 = scalar_lea.sflag [#allocation10], %s265_s22 }
  0x43   : > { %s269_s27 = scalar_lea.vmem [#allocation9], %s1383_s8 }
  0x44   : > { %1778 = dma.done.wait (%p1946_p6), %s266_s14, 256  }
  0x45   : > { %1780 = vsyncadd (%p1946_p6), %s266_s14, 4294967040 }
  0x46   : > { %1782 = dma.done.wait (%p65_p1), [#allocation10], 256  }
  0x47   : > { %1784 = vsyncadd (%p65_p1), [#allocation10], 4294967040  ;;  %v1420_v0 = vld [vmem:[#allocation11 + $0x8] sm:$0xff]  ;;  %v1419_v1 = vld [vmem:[#allocation11] sm:$0xff]  ;;  %vm332_vm0 = vcmask 261120   ;;  %s2058_s26 = scalar_lea.vmem [#allocation12], %s1382_s4 }
  0x48   : > { %342 = vmatpush.bf16.msra.mxu0 %v1420_v0  ;;  %v314_v2 = vld [vmem:[%s269_s27] sm:$0xff]  ;;  %v315_v3 = vld [vmem:[%s269_s27 + $0x8] sm:$0xff]  ;;  %s2539_s29 = sld [smem:[#allocation18_spill]] }
  0x49   : > { %v316_v4 = vpack.c.bf16 %v315_v3, %v314_v2  ;;  %v1556_v5 = vld [vmem:[%s2505_s3] ss:$0 sm:$0xff] }
  0x4c   : > { %343 = vmatpush.bf16.msra.mxu0 %v1419_v1 }
  0x4e   : > { %p1395_p1 = scmp.ne.s32.totalorder %s2539_s29, 0 }
  0x4f   : > { %1394 = vmatmul.msk.bf16.vlgmr.msra.gmra.mxu0 %vm332_vm0, %v316_v4 }
  0xcc   : > { %v345_v6 = vpop.f32.mrf.mxu0 }
  0xcd   : > { %v346_v7 = vadd.f32 %v1556_v5, %v345_v6 }
  0xd1   : > { %353 = sbr.rel (%p1395_p1) target bundleno = 362 (0x16a), region = 52 }
  0xd4   : > { %v347_v8 = vpop.f32.mrf.mxu0 }
  0xd5   : > { %v348_v9 = vadd.f32 %v1556_v5, %v347_v8 }
  0xd6   : > { %366 = vmatpush.bf16.msra.mxu0 %v1420_v0  ;;  %v354_v10 = vld [vmem:[%s2038_s30] sm:$0xff]  ;;  %v355_v11 = vld [vmem:[%s2038_s30 + $0x8] sm:$0xff]  ;;  %vm381_vm1 = vcmask 7168   ;;  %v1839_v13 = vmov -inf   ;;  %v1840_v14 = vmov 0.0   ;;  %vm378_vm2 = vcmask 257024  }
  0xd7   : > { %v356_v12 = vpack.c.bf16 %v355_v11, %v354_v10  ;;  %382 = vst.msk [vmem:[#allocation3] sm:$0xff] %vm381_vm1, %v1839_v13 }
  0xd8   : > { %383 = vst.msk [vmem:[#allocation3 + $0x8] sm:$0xff] %vm381_vm1, %v1839_v13 }
  0xd9   : > { %384 = vst.msk [vmem:[#allocation3 + $0x10] sm:$0xff] %vm381_vm1, %v1839_v13 }
  0xda   : > { %367 = vmatpush.bf16.msra.mxu0 %v1419_v1  ;;  %385 = vst.msk [vmem:[#allocation3 + $0x18] sm:$0xff] %vm381_vm1, %v1839_v13 }
  0xdb   : > { %386 = vst.msk [vmem:[#allocation3 + $0x20] sm:$0xff] %vm381_vm1, %v1839_v13 }
  0xdc   : > { %387 = vst.msk [vmem:[#allocation3 + $0x28] sm:$0xff] %vm381_vm1, %v1839_v13 }
  0xdd   : > { %1396 = vmatmul.msk.bf16.vlgmr.msra.gmra.mxu0 %vm332_vm0, %v356_v12  ;;  %388 = vst.msk [vmem:[#allocation3 + $0x30] sm:$0xff] %vm381_vm1, %v1839_v13 }
  0xde   : > { %389 = vst.msk [vmem:[#allocation3 + $0x38] sm:$0xff] %vm381_vm1, %v1839_v13 }
  0xdf   : > { %390 = vst.msk [vmem:[#allocation4] sm:$0xff] %vm381_vm1, %v1840_v14 }
  0xe0   : > { %391 = vst.msk [vmem:[#allocation4 + $0x8] sm:$0xff] %vm381_vm1, %v1840_v14 }
  0xe1   : > { %392 = vst.msk [vmem:[#allocation4 + $0x10] sm:$0xff] %vm381_vm1, %v1840_v14 }
  0xe2   : > { %393 = vst.msk [vmem:[#allocation4 + $0x18] sm:$0xff] %vm381_vm1, %v1840_v14 }
  0xe3   : > { %394 = vst.msk [vmem:[#allocation4 + $0x20] sm:$0xff] %vm381_vm1, %v1840_v14 }
  0xe4   : > { %395 = vst.msk [vmem:[#allocation4 + $0x28] sm:$0xff] %vm381_vm1, %v1840_v14 }
  0xe5   : > { %396 = vst.msk [vmem:[#allocation4 + $0x30] sm:$0xff] %vm381_vm1, %v1840_v14 }
  0xe6   : > { %397 = vst.msk [vmem:[#allocation4 + $0x38] sm:$0xff] %vm381_vm1, %v1840_v14 }
  0xe7   : > { %398 = vst.msk [vmem:[#allocation5] sm:$0xff] %vm332_vm0, %v1840_v14 }
  0xe8   : > { %399 = vst.msk [vmem:[#allocation5 + $0x8] sm:$0xff] %vm332_vm0, %v1840_v14 }
 0x15a   : > { %v369_v15 = vpop.f32.mrf.mxu0 }
 0x15b   : > { %v370_v16 = vadd.f32 %v1556_v5, %v369_v15 }
 0x15d   : > { %v374_v17 = vmul.f32 0.17677669, %v370_v16 }
 0x15f   : > { %v376_v18 = vpack.c.bf16 %v374_v17, %v374_v17 }
 0x161   : > { %379 = vst.msk [vmem:[#allocation2] sm:$0xf] %vm378_vm2, %v376_v18 }
 0x162   : > { %v371_v19 = vpop.f32.mrf.mxu0 }
 0x163   : > { %v372_v20 = vadd.f32 %v1556_v5, %v371_v19 }
 0x165   : > { %v375_v21 = vmul.f32 0.17677669, %v372_v20 }
 0x167   : > { %v377_v22 = vpack.c.bf16 %v375_v21, %v375_v21 }
 0x169   : > { %380 = vst.msk [vmem:[#allocation2 + $0x4] sm:$0xf] %vm378_vm2, %v377_v22 }
 0x16a PF: > { %v400_v23 = vpack.c.bf16 %v346_v7, %v346_v7  ;;  %vm405_vm3 = vcmask 64512   ;;  %v402_v25 = vld [vmem:[#allocation2] sm:$0xf]  ;;  %s1841_s7 = smov 112   ;;  %s1842_s15 = smov 104   ;;  %v2085_v30 = vpack.c.bf16 %v348_v9, %v348_v9  ;;  %v1844_v37 = vmov 0  }
 0x16b   : > { %v478_v28 = vunpack.c.l.b16 %v402_v25  ;;  %s1843_s11 = smov 120   ;;  %1557 = vset.pattern.permute.xlu1 %v1844_v37  ;;  %1558 = vset.pattern.permute.xlu2 %v1844_v37  ;;  %v425_v40 = vld [vmem:[#allocation3] sm:$0xff]  ;;  %vm447_vm4 = vcmask 7168   ;;  %vm454_vm5 = vcmask 1043456   ;;  %s1845_s12 = smov 8   ;;  %vm721_vm6 = vcmask 130048  }
 0x16c   : > { %v410_v24 = vsel %vm405_vm3, %v400_v23, 0  ;;  %v483_v26 = vunpack.c.l.b16 %v400_v23  ;;  %v805_v31 = vunpack.c.l.b16 %v2085_v30  ;;  %1559 = vset.pattern.permute.xlu0 %v1844_v37  ;;  %v455_v52 = vsel %vm454_vm5, %v400_v23, 0  ;;  %s1846_s13 = smov 24   ;;  %s1847_s10 = smov 16  }
 0x16d   : > { %419 = vmatpush.bf16.xpose.msra.mxu0 %v410_v24  ;;  %v479_v29 = vpack.c.b16 %v478_v28, %v478_v28  ;;  %464 = vmatpush.bf16.msra.mxu1 %v455_v52  ;;  %v732_v5 = vsel %vm405_vm3, %v2085_v30, 0  ;;  %v507_v24 = vld [vmem:[#allocation3 + $0x8] sm:$0xff]  ;;  %vm723_vm7 = vcmask 195584   ;;  %s2540_s6 = sld [smem:[#allocation18_spill]] }
 0x16e   : > { %v484_v27 = vpack.c.b16 %v483_v26, %v483_v26  ;;  %v806_v33 = vpack.c.b16 %v805_v31, %v805_v31 }
 0x170   : > { %564 = vrot.lane.b32.xlu2 %v484_v27, %s1841_s7  ;;  %v2090_v36 = vld [vmem:[#allocation2 + $0x4] sm:$0xf] }
 0x171   : > { %v800_v38 = vunpack.c.l.b16 %v2090_v36 }
 0x173   : > { %v801_v39 = vpack.c.b16 %v800_v38, %v800_v38  ;;  %p1413_p4 = scmp.ne.s32.totalorder %s2540_s6, 1 }
 0x174   : > { %1397 = vmatmul.msk.bf16.vlgmr.msra.gmra.mxu0 %vm405_vm3, %v402_v25 }
 0x178   : > { %643 = vrot.lane.b32.xlu2 %v484_v27, %s1842_s15 }
 0x180   : > { %641 = vrot.lane.b32.xlu2 %v479_v29, %s1842_s15 }
 0x188   : > { %807 = vrot.lane.b32.xlu2 %v806_v33, %s1843_s11 }
 0x190   : > { %886 = vrot.lane.b32.xlu2 %v806_v33, %s1841_s7 }
 0x198   : > { %884 = vrot.lane.b32.xlu2 %v801_v39, %s1841_s7 }
 0x1ca   : > { %v565_v46 = vpop.permute.xlu2 %564 }
 0x1cb   : > { %v570_v56 = vsel %vm405_vm3, %v565_v46, 0  ;;  %v615_v4 = vsel %vm454_vm5, %v565_v46, 0  ;;  %v586_v46 = vld [vmem:[#allocation3 + $0x10] sm:$0xff] }
 0x1cc   : > { %579 = vmatpush.bf16.xpose.msrb.mxu1 %v570_v56 }
 0x1d2   : > { %v644_v47 = vpop.permute.xlu2 %643 }
 0x1d3   : > { %v649_v55 = vsel %vm405_vm3, %v644_v47, 0  ;;  %v694_v6 = vsel %vm454_vm5, %v644_v47, 0 }
 0x1d4   : > { %658 = vmatpush.bf16.xpose.msrb.mxu0 %v649_v55  ;;  %v748_v55 = vld [vmem:[#allocation3 + $0x20] sm:$0xff] }
 0x1da   : > { %v642_v51 = vpop.permute.xlu2 %641 }
 0x1db   : > { %1403 = vmatmul.msk.bf16.vlgmr.msrb.gmra.mxu0 %vm405_vm3, %v642_v51 }
 0x1e2   : > { %v808_v53 = vpop.permute.xlu2 %807 }
 0x1e3   : > { %v813_v54 = vsel %vm405_vm3, %v808_v53, 0  ;;  %v858_v3 = vsel %vm454_vm5, %v808_v53, 0 }
 0x1e4   : > { %822 = vmatpush.bf16.xpose.msra.mxu0 %v813_v54 }
 0x1ea   : > { %v2113_v0 = vpop.permute.xlu2 %886 }
 0x1eb   : > { %v892_v2 = vsel %vm405_vm3, %v2113_v0, 0 }
 0x1f1   : > { %v421_v32 = vpop.f32.mrf.mxu0 }
 0x1f2   : > { %v426_v34 = vsel %vm405_vm3, %v421_v32, -inf  ;;  %v885_v14 = vpop.permute.xlu2 %884 }
 0x1f3   : > { %427 = vmax.xlane.f32.xlu0 %v426_v34 }
 0x1f9   : > { %v423_v35 = vpop.f32.mrf.mxu0 }
 0x207   : > { %485 = vrot.lane.b32.xlu0 %v484_v27, %s1843_s11 }
 0x20f   : > { %802 = vrot.lane.b32.xlu0 %v801_v39, %s1843_s11 }
 0x217   : > { %965 = vrot.lane.b32.xlu0 %v806_v33, %s1842_s15 }
 0x21f   : > { %963 = vrot.lane.b32.xlu0 %v801_v39, %s1842_s15 }
 0x258   : > { %v2115_v1 = vpop.f32.mrf.mxu0 }
 0x259   : > { %v666_v17 = vsel %vm405_vm3, %v2115_v1, -inf }
 0x260   : > { %v662_v8 = vpop.f32.mrf.mxu0 }
 0x266   : > { %v428_v41 = vpop.xlane.xlu0 %427 }
 0x267   : > { %v429_v42 = vmax.f32 %v425_v40, %v428_v41 }
 0x269   : > { %v430_v43 = vsub.f32 %v425_v40, %v429_v42  ;;  %449 = vst.msk [vmem:[#allocation3] sm:$0xff] %vm447_vm4, %v429_v42  ;;  %435 = vperm.xlu1 %1557, %v429_v42  }
 0x26b   : > { %v431_v44 = vmul.f32 1.442695, %v430_v43 }
 0x26d   : > { %1560 = vpow2.f32 %v431_v44 }
 0x271   : > { %480 = vrot.lane.b32.xlu1 %v479_v29, %s1843_s11 }
 0x273   : > { %v2095_v45 = vpop.eup %1560 }
 0x274   : > { %472 = vperm.xlu2 %1558, %v2095_v45  }
 0x279   : > { %562 = vrot.lane.b32.xlu1 %v479_v29, %s1841_s7  ;;  %v486_v48 = vpop.permute.xlu0 %485  ;;  %v665_v29 = vld [vmem:[#allocation3 + $0x18] sm:$0xff] }
 0x27a   : > { %v491_v49 = vsel %vm405_vm3, %v486_v48, 0  ;;  %v536_v50 = vsel %vm454_vm5, %v486_v48, 0 }
 0x27b   : > { %500 = vmatpush.bf16.xpose.msra.mxu2 %v491_v49  ;;  %545 = vmatpush.bf16.msra.mxu3 %v536_v50 }
 0x27f   : > { %624 = vmatpush.bf16.msrb.mxu3 %v615_v4 }
 0x281   : > { %v803_v7 = vpop.permute.xlu0 %802 }
 0x282   : > { %1407 = vmatmul.msk.bf16.vlgmr.msra.gmra.mxu0 %vm405_vm3, %v803_v7 }
 0x283   : > { %703 = vmatpush.bf16.msrb.mxu2 %v694_v6 }
 0x289   : > { %v2127_v9 = vpop.permute.xlu0 %965 }
 0x28a   : > { %v971_v10 = vsel %vm405_vm3, %v2127_v9, 0 }
 0x28b   : > { %980 = vmatpush.bf16.xpose.msrb.mxu0 %v971_v10  ;;  %v1016_v10 = vsel %vm454_vm5, %v2127_v9, 0 }
 0x291   : > { %v964_v11 = vpop.permute.xlu0 %963 }
 0x292   : > { %1411 = vmatmul.msk.bf16.vlgmr.msrb.gmra.mxu0 %vm405_vm3, %v964_v11 }
 0x2ce   : > { %v2158_v44 = vpop.permute.xlu2 %472 }
 0x2db   : > { %v436_v57 = vpop.permute.xlu1 %435 }
 0x2dc   : > { %v438_v58 = vsub.f32 %v421_v32, %v436_v57 }
 0x2de   : > { %v439_v59 = vmul.f32 1.442695, %v438_v58 }
 0x2e0   : > { %1562 = vpow2.f32 %v439_v59 }
 0x2e3   : > { %v481_v60 = vpop.permute.xlu1 %480 }
 0x2e4   : > { %1399 = vmatmul.msk.bf16.vlgmr.msra.gmra.mxu2 %vm405_vm3, %v481_v60 }
 0x2e5   : > { %867 = vmatpush.bf16.msra.mxu2 %v858_v3 }
 0x2e6   : > { %v2107_v61 = vpop.eup %1562 }
 0x2e7   : > { %v450_v62 = vpack.c.bf16 %v2107_v61, %v2107_v61  ;;  %v443_v41 = vsel %vm405_vm3, %v2107_v61, 0.0 }
 0x2e9   : > { %1398 = vmatmul.msk.bf16.vlgmr.msra.gmra.mxu1 %vm405_vm3, %v450_v62 }
 0x2ea   : > { %741 = vmatpush.bf16.xpose.msra.mxu1 %v732_v5 }
 0x2eb   : > { %v563_v63 = vpop.permute.xlu1 %562 }
 0x2f9   : > { %1401 = vmatmul.msk.bf16.vlgmr.msrb.gmra.mxu1 %vm405_vm3, %v563_v63  ;;  %v2174_v63 = vld [vmem:[#allocation3 + $0x30] sm:$0xff] }
 0x2fa   : > { %901 = vmatpush.bf16.xpose.msrb.mxu1 %v892_v2 }
 0x2ff   : > { %v2152_v37 = vpop.f32.mrf.mxu0 }
 0x307   : > { %v826_v38 = vpop.f32.mrf.mxu0 }
 0x309   : > { %1405 = vmatmul.msk.bf16.vlgmr.msra.gmra.mxu1 %vm405_vm3, %v2090_v36 }
 0x30f   : > { %v2154_v39 = vpop.f32.mrf.mxu0 }
 0x310   : > { %v988_v58 = vsel %vm405_vm3, %v2154_v39, -inf }
 0x317   : > { %v984_v40 = vpop.f32.mrf.mxu0 }
 0x319   : > { %1409 = vmatmul.msk.bf16.vlgmr.msrb.gmra.mxu1 %vm405_vm3, %v885_v14  ;;  %v441_v14 = vld [vmem:[#allocation4] sm:$0xff] }
 0x366   : > { %v2132_v12 = vpop.f32.mrf.mxu1 }
 0x367   : > { %v502_v13 = vpop.f32.mrf.mxu2 }
 0x368   : > { %v508_v15 = vsel %vm405_vm3, %v502_v13, -inf }
 0x369   : > { %509 = vmax.xlane.f32.xlu0 %v508_v15  ;;  %v442_v15 = vmul.f32 %v2095_v45, %v441_v14 }
 0x36e   : > { %v468_v16 = vpop.f32.mrf.mxu1 }
 0x36f   : > { %v504_v18 = vpop.f32.mrf.mxu2 }
 0x370   : > { %v524_v18 = vld [vmem:[#allocation4 + $0x8] sm:$0xff] }
 0x371   : > { %667 = vmax.xlane.f32.xlu0 %v666_v17 }
 0x376   : > { %v2138_v19 = vpop.f32.mrf.mxu1 }
 0x377   : > { %v587_v20 = vsel %vm405_vm3, %v2138_v19, -inf }
 0x379   : > { %588 = vmax.xlane.f32.xlu0 %v587_v20 }
 0x37e   : > { %v583_v21 = vpop.f32.mrf.mxu1 }
 0x386   : > { %v2142_v22 = vpop.f32.mrf.mxu1 }
 0x387   : > { %v749_v23 = vsel %vm405_vm3, %v2142_v22, -inf }
 0x388   : > { %750 = vmax.xlane.f32.xlu0 %v749_v23 }
 0x38e   : > { %v745_v27 = vpop.f32.mrf.mxu1 }
 0x396   : > { %v2147_v33 = vpop.f32.mrf.mxu1 }
 0x397   : > { %v909_v35 = vsel %vm405_vm3, %v2147_v33, -inf }
 0x398   : > { %910 = vmax.xlane.f32.xlu0 %v909_v35 }
 0x39e   : > { %v905_v36 = vpop.f32.mrf.mxu1 }
 0x3dc   : > { %v510_v25 = vpop.xlane.xlu0 %509 }
 0x3dd   : > { %v511_v26 = vmax.f32 %v507_v24, %v510_v25  ;;  %v2195_v25 = vld [vmem:[#allocation3 + $0x38] sm:$0xff] }
 0x3df   : > { %v512_v28 = vsub.f32 %v507_v24, %v511_v26  ;;  %531 = vst.msk [vmem:[#allocation3 + $0x8] sm:$0xff] %vm447_vm4, %v511_v26  ;;  %517 = vperm.xlu2 %1558, %v511_v26  }
 0x3e1   : > { %v513_v42 = vmul.f32 1.442695, %v512_v28 }
 0x3e3   : > { %1564 = vpow2.f32 %v513_v42  ;;  %v777_v42 = vsel %vm454_vm5, %v2085_v30, 0 }
 0x3e4   : > { %v668_v31 = vpop.xlane.xlu0 %667 }
 0x3e5   : > { %v669_v32 = vmax.f32 %v665_v29, %v668_v31 }
 0x3e7   : > { %v670_v34 = vsub.f32 %v665_v29, %v669_v32  ;;  %689 = vst.msk [vmem:[#allocation3 + $0x18] sm:$0xff] %vm447_vm4, %v669_v32  ;;  %675 = vperm.xlu1 %1557, %v669_v32   ;;  %v682_v32 = vld [vmem:[#allocation4 + $0x18] sm:$0xff] }
 0x3e9   : > { %v1565_v43 = vpop.eup %1564  ;;  %v671_v11 = vmul.f32 1.442695, %v670_v34 }
 0x3ea   : > { %v525_v20 = vmul.f32 %v1565_v43, %v524_v18 }
 0x3ec   : > { %v589_v47 = vpop.xlane.xlu0 %588 }
 0x3ed   : > { %v2160_v49 = vmax.f32 %v586_v46, %v589_v47 }
 0x3ef   : > { %610 = vst.msk [vmem:[#allocation3 + $0x10] sm:$0xff] %vm447_vm4, %v2160_v49  ;;  %v591_v59 = vsub.f32 %v586_v46, %v2160_v49  ;;  %v2217_v46 = vld [vmem:[#allocation5] sm:$0xff] }
 0x3f0   : > { %v475_v47 = vmul.f32 %v2158_v44, %v2217_v46  ;;  %v937_v44 = vsel %vm454_vm5, %v2113_v0, 0 }
 0x3f1   : > { %v592_v60 = vmul.f32 1.442695, %v591_v59 }
 0x3fb   : > { %v751_v56 = vpop.xlane.xlu0 %750 }
 0x3fc   : > { %v2166_v57 = vmax.f32 %v748_v55, %v751_v56 }
 0x3fe   : > { %772 = vst.msk [vmem:[#allocation3 + $0x20] sm:$0xff] %vm447_vm4, %v2166_v57  ;;  %v753_v23 = vsub.f32 %v748_v55, %v2166_v57 }
 0x400   : > { %v754_v24 = vmul.f32 1.442695, %v753_v23 }
 0x40b   : > { %v911_v2 = vpop.xlane.xlu0 %910 }
 0x40c   : > { %v2177_v4 = vmax.f32 %v2174_v63, %v911_v2 }
 0x40e   : > { %v913_v5 = vsub.f32 %v2174_v63, %v2177_v4  ;;  %932 = vst.msk [vmem:[#allocation3 + $0x30] sm:$0xff] %vm447_vm4, %v2177_v4 }
 0x411   : > { %444 = vadd.xlane.f32.xlu1 %v443_v41  ;;  %v830_v41 = vsel %vm405_vm3, %v2152_v37, -inf }
 0x42a   : > { %553 = vperm.xlu1 %1557, %v1565_v43  }
 0x439   : > { %v518_v48 = vpop.permute.xlu2 %517 }
 0x43a   : > { %v520_v50 = vsub.f32 %v502_v13, %v518_v48 }
 0x43c   : > { %v521_v51 = vmul.f32 1.442695, %v520_v50  ;;  %v476_v50 = vadd.f32 %v475_v47, %v2132_v12  ;;  %v829_v12 = vld [vmem:[#allocation3 + $0x28] sm:$0xff] }
 0x43e   : > { %1566 = vpow2.f32 %v521_v51 }
 0x43f   : > { %1568 = vpow2.f32 %v592_v60 }
 0x444   : > { %v1567_v52 = vpop.eup %1566 }
 0x445   : > { %v526_v53 = vsel %vm405_vm3, %v1567_v52, 0.0  ;;  %v532_v54 = vpack.c.bf16 %v1567_v52, %v1567_v52  ;;  %v2183_v6 = vpop.eup %1568 }
 0x446   : > { %527 = vadd.xlane.f32.xlu2 %v526_v53 }
 0x447   : > { %1400 = vmatmul.msk.bf16.vlgmr.msra.gmra.mxu3 %vm405_vm3, %v532_v54 }
 0x448   : > { %786 = vmatpush.bf16.msra.mxu3 %v777_v42 }
 0x44e   : > { %989 = vmax.xlane.f32.xlu2 %v988_v58 }
 0x459   : > { %v676_v61 = vpop.permute.xlu1 %675 }
 0x45a   : > { %v678_v62 = vsub.f32 %v2115_v1, %v676_v61 }
 0x45c   : > { %v679_v3 = vmul.f32 1.442695, %v678_v62 }
 0x45e   : > { %1570 = vpow2.f32 %v679_v3 }
 0x45f   : > { %1572 = vpow2.f32 %v671_v11 }
 0x460   : > { %1574 = vpow2.f32 %v754_v24 }
 0x464   : > { %v1571_v7 = vpop.eup %1570 }
 0x465   : > { %v684_v1 = vsel %vm405_vm3, %v1571_v7, 0.0  ;;  %v690_v8 = vpack.c.bf16 %v1571_v7, %v1571_v7  ;;  %v1573_v13 = vpop.eup %1572 }
 0x466   : > { %685 = vadd.xlane.f32.xlu0 %v684_v1  ;;  %632 = vperm.xlu2 %1558, %v2183_v6   ;;  %v2205_v28 = vpop.eup %1574  ;;  %v683_v34 = vmul.f32 %v1573_v13, %v682_v32  ;;  %v765_v32 = vld [vmem:[#allocation4 + $0x20] sm:$0xff] }
 0x467   : > { %1404 = vmatmul.msk.bf16.vlgmr.msrb.gmra.mxu2 %vm405_vm3, %v690_v8 }
 0x468   : > { %1025 = vmatpush.bf16.msrb.mxu2 %v1016_v10 }
 0x47a   : > { %711 = vperm.xlu0 %1559, %v1573_v13  }
 0x482   : > { %918 = vperm.xlu0 %1559, %v2177_v4  }
 0x484   : > { %v445_v16 = vpop.xlane.xlu1 %444 }
 0x485   : > { %v446_v17 = vadd.f32 %v445_v16, %v442_v15 }
 0x487   : > { %448 = vst.msk [vmem:[#allocation4] sm:$0xff] %vm447_vm4, %v446_v17 }
 0x49c   : > { %v554_v43 = vpop.permute.xlu1 %553 }
 0x49d   : > { %v556_v48 = vmul.f32 %v554_v43, %v2217_v46 }
 0x4b9   : > { %v528_v21 = vpop.xlane.xlu2 %527 }
 0x4ba   : > { %v529_v9 = vadd.f32 %v528_v21, %v525_v20 }
 0x4bc   : > { %530 = vst.msk [vmem:[#allocation4 + $0x8] sm:$0xff] %vm447_vm4, %v529_v9 }
 0x4c1   : > { %v990_v26 = vpop.xlane.xlu2 %989 }
 0x4c2   : > { %v2198_v27 = vmax.f32 %v2195_v25, %v990_v26 }
 0x4c4   : > { %v992_v45 = vsub.f32 %v2195_v25, %v2198_v27  ;;  %1011 = vst.msk [vmem:[#allocation3 + $0x38] sm:$0xff] %vm447_vm4, %v2198_v27  ;;  %997 = vperm.xlu0 %1559, %v2198_v27  }
 0x4c9   : > { %v633_v17 = vpop.permute.xlu2 %632 }
 0x4ca   : > { %v547_v29 = vpop.f32.mrf.mxu3 }
 0x4cb   : > { %558 = vrot.lane.b32.xlu1 %v547_v29, %s1845_s12 }
 0x4cc   : > { %794 = vperm.xlu0 %1559, %v2205_v28  }
 0x4d2   : > { %v549_v31 = vpop.f32.mrf.mxu3 }
 0x4d3   : > { %596 = vperm.xlu1 %1557, %v2160_v49  }
 0x4d9   : > { %v686_v35 = vpop.xlane.xlu0 %685 }
 0x4da   : > { %v687_v36 = vadd.f32 %v686_v35, %v683_v34  ;;  %v766_v34 = vmul.f32 %v2205_v28, %v765_v32 }
 0x4dc   : > { %688 = vst.msk [vmem:[#allocation4 + $0x18] sm:$0xff] %vm447_vm4, %v687_v36 }
 0x4ea   : > { %v705_v38 = vpop.f32.mrf.mxu2 }
 0x4ec   : > { %v2244_v62 = vpop.permute.xlu0 %711 }
 0x4f2   : > { %v707_v40 = vpop.f32.mrf.mxu2 }
 0x4f4   : > { %v919_v4 = vpop.permute.xlu0 %918 }
 0x4f5   : > { %v921_v7 = vsub.f32 %v2147_v33, %v919_v4 }
 0x4f7   : > { %v922_v8 = vmul.f32 1.442695, %v921_v7  ;;  %v925_v7 = vld [vmem:[#allocation4 + $0x30] sm:$0xff] }
 0x4fd   : > { %831 = vmax.xlane.f32.xlu1 %v830_v41  ;;  %v1004_v41 = vld [vmem:[#allocation4 + $0x38] sm:$0xff] }
 0x516   : > { %758 = vperm.xlu1 %1557, %v2166_v57   ;;  %v914_v57 = vmul.f32 1.442695, %v913_v5 }
 0x51e   : > { %716 = vrot.lane.b32.xlu1 %v705_v38, %s1846_s13 }
 0x536   : > { %v998_v10 = vpop.permute.xlu0 %997 }
 0x537   : > { %v1000_v11 = vsub.f32 %v2154_v39, %v998_v10  ;;  %v727_v10 = vld [vmem:[#allocation5 + $0x8] sm:$0xff] }
 0x539   : > { %v1001_v13 = vmul.f32 1.442695, %v1000_v11 }
 0x53d   : > { %v559_v49 = vpop.permute.xlu1 %558 }
 0x53e   : > { %v561_v51 = vadd.f32 %v559_v49, %v556_v48 }
 0x540   : > { %v2224_v52 = vsel %vm405_vm3, %v476_v50, %v561_v51 }
 0x545   : > { %v597_v53 = vpop.permute.xlu1 %596 }
 0x546   : > { %v599_v54 = vsub.f32 %v2138_v19, %v597_v53 }
 0x548   : > { %v600_v30 = vmul.f32 1.442695, %v599_v54  ;;  %v635_v54 = vmul.f32 %v633_v17, %v2217_v46 }
 0x54a   : > { %1576 = vpow2.f32 %v600_v30  ;;  %v714_v30 = vmul.f32 %v2244_v62, %v2217_v46  ;;  %v795_v62 = vpop.permute.xlu0 %794 }
 0x54b   : > { %1578 = vpow2.f32 %v914_v57 }
 0x550   : > { %v2227_v55 = vpop.eup %1576 }
 0x551   : > { %v611_v56 = vpack.c.bf16 %v2227_v55, %v2227_v55  ;;  %v2238_v61 = vpop.eup %1578  ;;  %v605_v46 = vsel %vm405_vm3, %v2227_v55, 0.0 }
 0x553   : > { %1402 = vmatmul.msk.bf16.vlgmr.msrb.gmra.mxu3 %vm405_vm3, %v611_v56 }
 0x554   : > { %946 = vmatpush.bf16.msrb.mxu3 %v937_v44 }
 0x570   : > { %v832_v58 = vpop.xlane.xlu1 %831 }
 0x571   : > { %v833_v19 = vmax.f32 %v829_v12, %v832_v58 }
 0x573   : > { %v834_v59 = vsub.f32 %v829_v12, %v833_v19  ;;  %853 = vst.msk [vmem:[#allocation3 + $0x28] sm:$0xff] %vm447_vm4, %v833_v19  ;;  %839 = vperm.xlu2 %1558, %v833_v19  }
 0x575   : > { %v835_v60 = vmul.f32 1.442695, %v834_v59 }
 0x577   : > { %1580 = vpow2.f32 %v835_v60 }
 0x57b   : > { %954 = vperm.xlu2 %1558, %v2238_v61  }
 0x57d   : > { %v2241_v0 = vpop.eup %1580 }
 0x57e   : > { %875 = vperm.xlu0 %1559, %v2241_v0  }
 0x588   : > { %v759_v63 = vpop.permute.xlu1 %758 }
 0x589   : > { %v761_v2 = vsub.f32 %v2142_v22, %v759_v63 }
 0x58b   : > { %v762_v3 = vmul.f32 1.442695, %v761_v2  ;;  %v603_v2 = vld [vmem:[#allocation4 + $0x10] sm:$0xff] }
 0x58d   : > { %1582 = vpow2.f32 %v762_v3  ;;  %v604_v3 = vmul.f32 %v2183_v6, %v603_v2 }
 0x58e   : > { %1584 = vpow2.f32 %v922_v8 }
 0x58f   : > { %1586 = vpow2.f32 %v1001_v13 }
 0x590   : > { %v717_v27 = vpop.permute.xlu1 %716 }
 0x591   : > { %v719_v57 = vadd.f32 %v717_v27, %v714_v30 }
 0x593   : > { %v1583_v5 = vpop.eup %1582 }
 0x594   : > { %v773_v1 = vpack.c.bf16 %v1583_v5, %v1583_v5  ;;  %v2250_v14 = vpop.eup %1584  ;;  %v767_v22 = vsel %vm405_vm3, %v1583_v5, 0.0 }
 0x595   : > { %v933_v15 = vpack.c.bf16 %v2250_v14, %v2250_v14  ;;  %v1587_v33 = vpop.eup %1586 }
 0x596   : > { %1406 = vmatmul.msk.bf16.vlgmr.msra.gmra.mxu3 %vm405_vm3, %v773_v1  ;;  %v1006_v16 = vsel %vm405_vm3, %v1587_v33, 0.0  ;;  %v1012_v29 = vpack.c.bf16 %v1587_v33, %v1587_v33  ;;  %v926_v1 = vmul.f32 %v2238_v61, %v925_v7 }
 0x5a4   : > { %768 = vadd.xlane.f32.xlu2 %v767_v22 }
 0x5a6   : > { %1410 = vmatmul.msk.bf16.vlgmr.msrb.gmra.mxu3 %vm405_vm3, %v933_v15 }
 0x5ac   : > { %1007 = vadd.xlane.f32.xlu2 %v1006_v16 }
 0x5cd   : > { %v840_v18 = vpop.permute.xlu2 %839 }
 0x5ce   : > { %v842_v39 = vsub.f32 %v2152_v37, %v840_v18  ;;  %v993_v37 = vmul.f32 1.442695, %v992_v45  ;;  %v846_v45 = vld [vmem:[#allocation4 + $0x28] sm:$0xff] }
 0x5cf   : > { %v847_v28 = vmul.f32 %v2241_v0, %v846_v45  ;;  %v927_v0 = vsel %vm405_vm3, %v2250_v14, 0.0  ;;  %v797_v14 = vmul.f32 %v795_v62, %v727_v10 }
 0x5d0   : > { %v843_v20 = vmul.f32 1.442695, %v842_v39 }
 0x5d2   : > { %1588 = vpow2.f32 %v843_v20 }
 0x5d3   : > { %1590 = vpow2.f32 %v993_v37 }
 0x5d5   : > { %v2261_v31 = vpop.permute.xlu2 %954 }
 0x5d6   : > { %v626_v21 = vpop.f32.mrf.mxu3  ;;  %v957_v33 = vmul.f32 %v2261_v31, %v727_v10 }
 0x5d8   : > { %v1589_v9 = vpop.eup %1588 }
 0x5d9   : > { %v854_v23 = vpack.c.bf16 %v1589_v9, %v1589_v9  ;;  %v848_v24 = vsel %vm405_vm3, %v1589_v9, 0.0  ;;  %v1591_v40 = vpop.eup %1590 }
 0x5da   : > { %849 = vadd.xlane.f32.xlu1 %v848_v24  ;;  %v1005_v42 = vmul.f32 %v1591_v40, %v1004_v41 }
 0x5db   : > { %1408 = vmatmul.msk.bf16.vlgmr.msra.gmra.mxu2 %vm405_vm3, %v854_v23 }
 0x5de   : > { %v628_v26 = vpop.f32.mrf.mxu3 }
 0x5eb   : > { %1412 = vmatmul.msk.bf16.vlgmr.msrb.gmra.mxu2 %vm405_vm3, %v1012_v29 }
 0x5f0   : > { %v876_v63 = vpop.permute.xlu0 %875 }
 0x5f1   : > { %v878_v13 = vmul.f32 %v876_v63, %v727_v10 }
 0x5f3   : > { %637 = vrot.lane.b32.xlu1 %v626_v21, %s1847_s10 }
 0x617   : > { %v769_v35 = vpop.xlane.xlu2 %768 }
 0x618   : > { %v770_v36 = vadd.f32 %v769_v35, %v766_v34 }
 0x619   : > { %v788_v38 = vpop.f32.mrf.mxu3 }
 0x61a   : > { %771 = vst.msk [vmem:[#allocation4 + $0x20] sm:$0xff] %vm447_vm4, %v770_v36  ;;  %v798_v15 = vadd.f32 %v797_v14, %v788_v38 }
 0x61f   : > { %v1008_v43 = vpop.xlane.xlu2 %1007 }
 0x620   : > { %v1009_v47 = vadd.f32 %v1008_v43, %v1005_v42 }
 0x621   : > { %v790_v48 = vpop.f32.mrf.mxu3 }
 0x622   : > { %1010 = vst.msk [vmem:[#allocation4 + $0x38] sm:$0xff] %vm447_vm4, %v1009_v47 }
 0x629   : > { %v948_v49 = vpop.f32.mrf.mxu3 }
 0x62a   : > { %959 = vrot.lane.b32.xlu1 %v948_v49, %s1847_s10 }
 0x631   : > { %v950_v25 = vpop.f32.mrf.mxu3 }
 0x64d   : > { %v850_v50 = vpop.xlane.xlu1 %849 }
 0x64e   : > { %v851_v51 = vadd.f32 %v850_v50, %v847_v28 }
 0x650   : > { %852 = vst.msk [vmem:[#allocation4 + $0x28] sm:$0xff] %vm447_vm4, %v851_v51 }
 0x65e   : > { %v869_v53 = vpop.f32.mrf.mxu2 }
 0x65f   : > { %880 = vrot.lane.b32.xlu0 %v869_v53, %s1845_s12 }
 0x665   : > { %v638_v56 = vpop.permute.xlu1 %637 }
 0x666   : > { %v640_v44 = vadd.f32 %v638_v56, %v635_v54  ;;  %v871_v12 = vpop.f32.mrf.mxu2 }
 0x668   : > { %v722_v58 = vsel %vm721_vm6, %v2224_v52, %v640_v44 }
 0x669   : > { %v724_v19 = vsel %vm723_vm7, %v722_v58, %v719_v57 }
 0x66a   : > { %725 = vst.msk [vmem:[#allocation5] sm:$0xff] %vm332_vm0, %v724_v19 }
 0x66e   : > { %v1027_v59 = vpop.f32.mrf.mxu2 }
 0x66f   : > { %1038 = vrot.lane.b32.xlu1 %v1027_v59, %s1846_s13 }
 0x676   : > { %v1029_v60 = vpop.f32.mrf.mxu2 }
 0x689   : > { %606 = vadd.xlane.f32.xlu0 %v605_v46 }
 0x691   : > { %928 = vadd.xlane.f32.xlu0 %v927_v0 }
 0x69c   : > { %v960_v11 = vpop.permute.xlu1 %959 }
 0x69d   : > { %v962_v18 = vadd.f32 %v960_v11, %v957_v33 }
 0x6a5   : > { %1033 = vperm.xlu0 %1559, %v1591_v40  }
 0x6d1   : > { %v881_v52 = vpop.permute.xlu0 %880 }
 0x6d2   : > { %v883_v22 = vadd.f32 %v881_v52, %v878_v13 }
 0x6d4   : > { %v1042_v16 = vsel %vm405_vm3, %v798_v15, %v883_v22 }
 0x6d5   : > { %v1043_v61 = vsel %vm721_vm6, %v1042_v16, %v962_v18 }
 0x6e1   : > { %v1039_v39 = vpop.permute.xlu1 %1038 }
 0x6fc   : > { %v607_v4 = vpop.xlane.xlu0 %606 }
 0x6fd   : > { %v608_v5 = vadd.f32 %v607_v4, %v604_v3 }
 0x6ff   : > { %609 = vst.msk [vmem:[#allocation4 + $0x10] sm:$0xff] %vm447_vm4, %v608_v5 }
 0x704   : > { %v929_v55 = vpop.xlane.xlu0 %928 }
 0x705   : > { %v930_v8 = vadd.f32 %v929_v55, %v926_v1 }
 0x707   : > { %931 = vst.msk [vmem:[#allocation4 + $0x30] sm:$0xff] %vm447_vm4, %v930_v8 }
 0x717   : > { %v1034_v6 = vpop.permute.xlu0 %1033 }
 0x718   : > { %v1036_v17 = vmul.f32 %v1034_v6, %v727_v10 }
 0x719   : > { %1049 = sbr.rel (%p1413_p4) target bundleno = 1976 (0x7b8), region = 56 }
 0x71a   : > { %v1041_v20 = vadd.f32 %v1039_v39, %v1036_v17 }
 0x71c   : > { %v1044_v21 = vsel %vm723_vm7, %v1043_v61, %v1041_v20 }
 0x71d   : > { %1045 = vst.msk [vmem:[#allocation5 + $0x8] sm:$0xff] %vm332_vm0, %v1044_v21 }
 0x71e   : > { %v1140_v9 = vld [vmem:[#allocation4 + $0x20] sm:$0xff]  ;;  %v2294_v24 = vld [vmem:[#allocation4 + $0x28] sm:$0xff]  ;;  %v1848_v26 = vmov 0   ;;  %v2299_v37 = vld [vmem:[#allocation4 + $0x38] sm:$0xff] }
 0x71f   : > { %v1051_v23 = vld [vmem:[#allocation4] sm:$0xff]  ;;  %1593 = vset.pattern.permute.xlu1 %v1848_v26  ;;  %1592 = vset.pattern.permute.xlu0 %v1848_v26  ;;  %1595 = vrcp.f32 %v1140_v9  ;;  %v2296_v29 = vld [vmem:[#allocation4 + $0x8] sm:$0xff]  ;;  %v1150_v31 = vand.u32 2147483647, %v1140_v9  ;;  %v1152_v32 = vand.u32 2147483648, %v1140_v9  ;;  %v2302_v36 = vld [vmem:[#allocation4 + $0x18] sm:$0xff]  ;;  %vm1146_vm8 = vweird.f32 %v1140_v9 }
 0x720   : > { %1597 = vrcp.f32 %v1051_v23  ;;  %1594 = vset.pattern.permute.xlu2 %v1848_v26  ;;  %v1061_v34 = vand.u32 2147483647, %v1051_v23  ;;  %v1063_v35 = vand.u32 2147483648, %v1051_v23  ;;  %vm1057_vm10 = vweird.f32 %v1051_v23  ;;  %v2311_v47 = vld [vmem:[#allocation4 + $0x10] sm:$0xff] }
 0x721   : > { %1599 = vrcp.f32 %v2294_v24  ;;  %vm2305_vm9 = vcmp.eq.f32.partialorder %v1150_v31, 8.507059e+37  ;;  %v1153_v43 = vor.u32 1.1754944e-38, %v1152_v32  ;;  %vm1167_vm11 = vweird.f32 %v2294_v24  ;;  %v1182_v18 = vld [vmem:[#allocation4 + $0x30] sm:$0xff] }
 0x722   : > { %1601 = vrcp.f32 %v2296_v29  ;;  %vm2315_vm12 = vcmp.eq.f32.partialorder %v1061_v34, 8.507059e+37  ;;  %v1064_v27 = vor.u32 1.1754944e-38, %v1063_v35  ;;  %v1171_v45 = vand.u32 2147483647, %v2294_v24 }
 0x723   : > { %1603 = vrcp.f32 %v2299_v37  ;;  %v1173_v51 = vand.u32 2147483648, %v2294_v24  ;;  %vm1078_vm15 = vweird.f32 %v2296_v29  ;;  %v1082_v57 = vand.u32 2147483647, %v2296_v29 }
 0x724   : > { %1605 = vrcp.f32 %v2302_v36  ;;  %vm2337_vm2 = vcmp.eq.f32.partialorder %v1171_v45, 8.507059e+37  ;;  %v1084_v60 = vand.u32 2147483648, %v2296_v29  ;;  %v1103_v61 = vand.u32 2147483647, %v2311_v47 }
 0x725   : > { %v1596_v38 = vpop.eup %1595  ;;  %1607 = vrcp.f32 %v2311_v47  ;;  %v1174_v55 = vor.u32 1.1754944e-38, %v1173_v51  ;;  %v1213_v26 = vand.u32 2147483647, %v2299_v37  ;;  %v1215_v31 = vand.u32 2147483648, %v2299_v37 }
 0x726   : > { %v1598_v41 = vpop.eup %1597  ;;  %v1142_v42 = vmul.f32 %v1596_v38, %v1140_v9  ;;  %vm1147_vm13 = vweird.f32 %v1596_v38  ;;  %v1085_v39 = vor.u32 1.1754944e-38, %v1084_v60  ;;  %1609 = vrcp.f32 %v1182_v18 }
 0x727   : > { %v2313_v48 = vpop.eup %1599  ;;  %v1053_v49 = vmul.f32 %v1598_v41, %v1051_v23  ;;  %vm1058_vm14 = vweird.f32 %v1598_v41  ;;  %vm2333_vm1 = vmor %vm1146_vm8, %vm1147_vm13  ;;  %vm1209_vm13 = vweird.f32 %v2299_v37  ;;  %v1105_v23 = vand.u32 2147483648, %v2311_v47 }
 0x728   : > { %v1143_v28 = vsub.f32 1.0, %v1142_v42  ;;  %v1163_v50 = vmul.f32 %v2313_v48, %v2294_v24  ;;  %v2323_v53 = vpop.eup %1601  ;;  %vm2348_vm4 = vmor %vm1057_vm10, %vm1058_vm14  ;;  %vm1168_vm5 = vweird.f32 %v2313_v48  ;;  %v1126_v35 = vand.u32 2147483648, %v2302_v36 }
 0x729   : > { %v1054_v54 = vsub.f32 1.0, %v1053_v49  ;;  %v2327_v30 = vpop.eup %1603  ;;  %v1074_v12 = vmul.f32 %v2323_v53, %v2296_v29  ;;  %vm1079_vm8 = vweird.f32 %v2323_v53  ;;  %vm2367_vm10 = vmor %vm1167_vm11, %vm1168_vm5  ;;  %vm2383_vm11 = vcmp.eq.f32.partialorder %v1082_v57, 8.507059e+37 }
 0x72a   : > { %v1144_v56 = vmul.f32 %v1596_v38, %v1143_v28  ;;  %v1164_v44 = vsub.f32 1.0, %v1163_v50  ;;  %v1205_v46 = vmul.f32 %v2327_v30, %v2299_v37  ;;  %v2344_v0 = vpop.eup %1605  ;;  %v1106_v40 = vor.u32 1.1754944e-38, %v1105_v23 }
 0x72b   : > { %v1055_v19 = vmul.f32 %v1598_v41, %v1054_v54  ;;  %v1075_v2 = vsub.f32 1.0, %v1074_v12  ;;  %v1116_v5 = vmul.f32 %v2344_v0, %v2302_v36  ;;  %v1608_v10 = vpop.eup %1607  ;;  %v1124_v49 = vand.u32 2147483647, %v2302_v36 }
 0x72c   : > { %v1145_v62 = vadd.f32 %v1596_v38, %v1144_v56  ;;  %v1165_v52 = vmul.f32 %v2313_v48, %v1164_v44  ;;  %v1206_v4 = vsub.f32 1.0, %v1205_v46  ;;  %v1095_v17 = vmul.f32 %v1608_v10, %v2311_v47  ;;  %v1610_v45 = vpop.eup %1609 }
 0x72d   : > { %v1056_v3 = vadd.f32 %v1598_v41, %v1055_v19  ;;  %v1076_v8 = vmul.f32 %v2323_v53, %v1075_v2  ;;  %v1117_v22 = vsub.f32 1.0, %v1116_v5  ;;  %vm1100_vm14 = vweird.f32 %v1608_v10  ;;  %v1139_v2 = vld [vmem:[#allocation5 + $0x8] sm:$0xff] }
 0x72e   : > { %v1149_v7 = vsel %vm2333_vm1, %v1596_v38, %v1145_v62  ;;  %v1166_v1 = vadd.f32 %v2313_v48, %v1165_v52  ;;  %v1207_v20 = vmul.f32 %v2327_v30, %v1206_v4  ;;  %v1096_v9 = vsub.f32 1.0, %v1095_v17 }
 0x72f   : > { %v1154_v11 = vsel %vm2305_vm9, %v1153_v43, %v1149_v7  ;;  %v1060_v13 = vsel %vm2348_vm4, %v1598_v41, %v1056_v3  ;;  %v1077_v33 = vadd.f32 %v2323_v53, %v1076_v8  ;;  %vm2379_vm9 = vmor %vm1078_vm15, %vm1079_vm8  ;;  %v1118_v29 = vmul.f32 %v2344_v0, %v1117_v22  ;;  %v1050_v3 = vld [vmem:[#allocation5] sm:$0xff] }
 0x730   : > { %1157 = vperm.xlu1 %1593, %v1154_v11   ;;  %v1065_v15 = vsel %vm2315_vm12, %v1064_v27, %v1060_v13  ;;  %vm1099_vm12 = vweird.f32 %v2311_v47  ;;  %v1170_v21 = vsel %vm2367_vm10, %v2313_v48, %v1166_v1  ;;  %vm1210_vm15 = vweird.f32 %v2327_v30 }
 0x731   : > { %1068 = vperm.xlu0 %1592, %v1065_v15   ;;  %v1081_v24 = vsel %vm2379_vm9, %v2323_v53, %v1077_v33  ;;  %vm1120_vm1 = vweird.f32 %v2302_v36  ;;  %v1097_v32 = vmul.f32 %v1608_v10, %v1096_v9  ;;  %v1175_v34 = vsel %vm2337_vm2, %v1174_v55, %v1170_v21  ;;  %vm2409_vm5 = vmor %vm1099_vm12, %vm1100_vm14 }
 0x732   : > { %vm1121_vm4 = vweird.f32 %v2344_v0  ;;  %v1086_v41 = vsel %vm2383_vm11, %v1085_v39, %v1081_v24  ;;  %v1208_v42 = vadd.f32 %v2327_v30, %v1207_v20  ;;  %vm1104_vm8 = vcmp.eq.f32.partialorder %v1103_v61, 8.507059e+37  ;;  %vm2418_vm2 = vmor %vm1209_vm13, %vm1210_vm15 }
 0x733   : > { %v1098_v43 = vadd.f32 %v1608_v10, %v1097_v32  ;;  %v1119_v47 = vadd.f32 %v2344_v0, %v1118_v29  ;;  %vm2426_vm10 = vmor %vm1120_vm1, %vm1121_vm4  ;;  %v1216_v37 = vor.u32 1.1754944e-38, %v1215_v31  ;;  %vm1214_vm13 = vcmp.eq.f32.partialorder %v1213_v26, 8.507059e+37 }
 0x734   : > { %v1212_v50 = vsel %vm2418_vm2, %v2327_v30, %v1208_v42  ;;  %v1127_v51 = vor.u32 1.1754944e-38, %v1126_v35  ;;  %v1184_v53 = vmul.f32 %v1610_v45, %v1182_v18  ;;  %vm1125_vm9 = vcmp.eq.f32.partialorder %v1124_v49, 8.507059e+37 }
 0x735   : > { %v1102_v27 = vsel %vm2409_vm5, %v1608_v10, %v1098_v43  ;;  %v1123_v36 = vsel %vm2426_vm10, %v2344_v0, %v1119_v47  ;;  %v1194_v54 = vand.u32 2147483648, %v1182_v18  ;;  %vm1188_vm11 = vweird.f32 %v1182_v18 }
 0x736   : > { %v1107_v28 = vsel %vm1104_vm8, %v1106_v40, %v1102_v27  ;;  %v1185_v56 = vsub.f32 1.0, %v1184_v53  ;;  %vm1189_vm12 = vweird.f32 %v1610_v45  ;;  %v1192_v44 = vand.u32 2147483647, %v1182_v18 }
 0x737   : > { %1110 = vperm.xlu2 %1594, %v1107_v28   ;;  %v1217_v12 = vsel %vm1214_vm13, %v1216_v37, %v1212_v50  ;;  %v1128_v57 = vsel %vm1125_vm9, %v1127_v51, %v1123_v36  ;;  %vm1190_vm14 = vmor %vm1188_vm11, %vm1189_vm12  ;;  %v1195_v19 = vor.u32 1.1754944e-38, %v1194_v54 }
 0x738   : > { %1178 = vperm.xlu1 %1593, %v1175_v34   ;;  %v1186_v58 = vmul.f32 %v1610_v45, %v1185_v56  ;;  %vm1193_vm15 = vcmp.eq.f32.partialorder %v1192_v44, 8.507059e+37 }
 0x739   : > { %1089 = vperm.xlu0 %1592, %v1086_v41  }
 0x73a   : > { %v1187_v30 = vadd.f32 %v1610_v45, %v1186_v58 }
 0x73c   : > { %v1191_v59 = vsel %vm1190_vm14, %v1610_v45, %v1187_v30 }
 0x73d   : > { %v1196_v60 = vsel %vm1193_vm15, %v1195_v19, %v1191_v59 }
 0x73f   : > { %1199 = vperm.xlu2 %1594, %v1196_v60  }
 0x740   : > { %1220 = vperm.xlu1 %1593, %v1217_v12  }
 0x741   : > { %1131 = vperm.xlu0 %1592, %v1128_v57  }
 0x791   : > { %v1111_v62 = vpop.permute.xlu2 %1110 }
 0x792   : > { %v1113_v14 = vmul.f32 %v1111_v62, %v1050_v3 }
 0x799   : > { %v1200_v1 = vpop.permute.xlu2 %1199 }
 0x79a   : > { %v1202_v10 = vmul.f32 %v1200_v1, %v1139_v2 }
 0x7a2   : > { %v1158_v46 = vpop.permute.xlu1 %1157 }
 0x7a3   : > { %v1069_v0 = vpop.permute.xlu0 %1068  ;;  %v1160_v7 = vmul.f32 %v1158_v46, %v1139_v2 }
 0x7a4   : > { %v1071_v55 = vmul.f32 %v1069_v0, %v1050_v3 }
 0x7aa   : > { %v1179_v63 = vpop.permute.xlu1 %1178 }
 0x7ab   : > { %v1090_v52 = vpop.permute.xlu0 %1089  ;;  %v1181_v4 = vmul.f32 %v1179_v63, %v1139_v2 }
 0x7ac   : > { %v1092_v5 = vmul.f32 %v1090_v52, %v1050_v3 }
 0x7ad   : > { %v1224_v8 = vsel %vm405_vm3, %v1160_v7, %v1181_v4 }
 0x7ae   : > { %v1135_v11 = vsel %vm405_vm3, %v1071_v55, %v1092_v5  ;;  %v1225_v33 = vsel %vm721_vm6, %v1224_v8, %v1202_v10 }
 0x7af   : > { %v1136_v17 = vsel %vm721_vm6, %v1135_v11, %v1113_v14 }
 0x7b2   : > { %v1221_v13 = vpop.permute.xlu1 %1220 }
 0x7b3   : > { %v1223_v22 = vmul.f32 %v1221_v13, %v1139_v2  ;;  %v1132_v15 = vpop.permute.xlu0 %1131 }
 0x7b4   : > { %v1134_v6 = vmul.f32 %v1132_v15, %v1050_v3 }
 0x7b5   : > { %v1226_v16 = vsel %vm723_vm7, %v1225_v33, %v1223_v22 }
 0x7b6   : > { %1414 = vst.msk [vmem:[%s2058_s26 + $0x8] sm:$0xff] %vm332_vm0, %v1226_v16  ;;  %v1137_v18 = vsel %vm723_vm7, %v1136_v17, %v1134_v6 }
 0x7b7   : > { %1138 = vst.msk [vmem:[%s2058_s26] sm:$0xff] %vm332_vm0, %v1137_v18 }
 0x7b8 PF: > { %s2563_s4 = sld [smem:[#allocation19_spill]]  ;;  %s1244_s27 = sshll.u32 %s2058_s26, 4  ;;  %s1245_s27 = int_to_ptr.vmem [resolvable:$true] %s1244_s27 }
 0x7b9   : > { %s2565_s8 = sld [smem:[#allocation26_spill]]  ;;  %s1230_s5 = scalar_lea.sflag [#allocation8], %s2034_s0 }
 0x7be   : > { %s1416_s30 = sshll.u32 %s2563_s4, 3 }
 0x7bf   : > { %s1243_s14 = scalar_lea.hbm %s2565_s8, %s1416_s30  ;;  %s1721_s13 = scalar_lea.hbm %s2565_s8, 32 }
 0x7c0   : > { %s1246_s28 = sshll.u32 %s1243_s14, 4  ;;  %s1247_s28 = int_to_ptr.hbm [resolvable:$true] %s1246_s28 }
 0x7c1   : > { %s1715_s29 = sshra.s32 %s1247_s28, 4  ;;  %s1716_s29 = int_to_ptr.hbm [resolvable:$true] %s1715_s29 }
 0x7c2   : > { %s1717_s7 = scalar_lea.hbm %s1716_s29, 16  ;;  %p1722_p9 = scmp.lt.s32.totalorder %s1716_s29, %s2565_s8 }
 0x7c3   : > { %p1718_p6 = scmp.ne.s32.totalorder %s1716_s29, %s1717_s7  ;;  %p1723_p11 = scmp.lt.s32.totalorder %s1721_s13, %s1717_s7 }
 0x7c5   : > { %p1719_p10 = pnand %p1718_p6, %p1974_p5  ;;  %p1724_p12 = por %p1723_p11, %p1722_p9 }
 0x7c7   : > { %p1720_p2 = pneg %p1719_p10 }
 0x7c9   : > { %p1725_p13 = pnand %p1724_p12, %p1720_p2 }
 0x7cb   : > { %1728 = shalt.err (!%p1725_p13)
}
 0x7cc   : > { %s1849_s0 = smov 128   ;;  %s1850_s26 = smov 256  }
 0x7cd   : > { %1429 = dma.vmem_to_hbm [thread:$0]  (%p1974_p5), %s1245_s27, 256, %s1247_s28, %s1230_s5, %s1849_s0, %s1850_s26, %s1845_s12  }
 0x7ce PF: > { %s2566_s4 = sld [smem:[#allocation17_spill]]  ;;  %p1449_p7 = scmp.ge.s32.totalorder %s1831_s25, 2 }
 0x7d0   : > { %p1443_p0 = pnand %p1449_p7, %p1951_p8 }
 0x7d2   : > { %p1444_p3 = pneg %p1443_p0 }
 0x7d4   : > { %s1261_s22 = sand.u32 1, %s2566_s4  }
 0x7d5   : > { %s1262_s23 = scalar_lea.sflag [#allocation8], %s1261_s22 }
 0x7d6   : > { %1786 = dma.done.wait (%p1444_p3), %s1262_s23, 256  }
 0x7d7   : > { %1788 = vsyncadd (%p1444_p3), %s1262_s23, 4294967040  ;;  %s23_s25 = sadd.s32 1, %s1831_s25   ;;  %s2568_s12 = sld [smem:[#allocation20_spill]] }
 0x7d8   : > { %p20_p1 = scmp.ge.s32.totalorder %s23_s25, 6   ;;  %s2569_s23 = sld [smem:[#allocation23_spill]] }
 0x7d9   : > { %s2570_s15 = smov %s1795_s16  ;;  %s2571_s16 = smov %s1799_s17 }
 0x7da   : > { %s2572_s17 = smov %s2014_s2  ;;  %s2573_s18 = smov %s1807_s19 }
 0x7db   : > { %s2574_s19 = smov %s1811_s20  ;;  %s2575_s20 = smov %s2022_s21 }
 0x7dc   : > { %s2577_s22 = smov %s1827_s24  ;;  %s2578_s24 = smov %s2584_s9 }
 0x7dd   : > { %s2576_s21 = smov %s2568_s12  ;;  %22 = sbr.rel (!%p20_p1) target bundleno = 15 (0xf), region = 122 }
 0x7e2   :  { %1268 = vsyncpa [#allocation7], 1 }
 0x7e3   :  { %1270 = vsyncpa [#allocation7 + $0x1], 1 }
 0x7e4   :  { %1271 = vsyncpa [#allocation10], 1 }
 0x7e5   :  { %1273 = vsyncpa [#allocation10 + $0x1], 1 }
 0x7e6   :  { %1274 = vsyncpa [#allocation8], 1 }
 0x7e7   :  { %1276 = vsyncpa [#allocation8 + $0x1], 1 }

// kernel: tpu_custom_call.1
= control target key start
LH: loop header
LB: loop body
LE: loop exit
PB: predicated region body
PF: predicated region fallthrough
CT: control target
= control target key end

     0   :  { %s2502_s0 = inlined_call_operand.hbm [shape: f32[2,16,32], index: 0, kind: input, shape index: {}]   ;;  %s2503_s1 = inlined_call_operand.hbm [shape: f32[2,16,32], index: 1, kind: input, shape index: {}]   ;;  %s2504_s2 = inlined_call_operand.hbm [shape: bf16[32,32], index: 2, kind: input, shape index: {}]   ;;  %s2505_s3 = inlined_call_operand.vmem [shape: f32[1,32], index: 3, kind: input, shape index: {}]   ;;  %s2506_s4 = inlined_call_operand.hbm [shape: f32[2,16,32], index: 4, kind: output, shape index: {}]  }
   0x1   :  { %2517 = sst [smem:[#allocation24_spill]] %s2502_s0 }
   0x2   :  { %2518 = sst [smem:[#allocation25_spill]] %s2504_s2 }
   0x3   :  { %2519 = sst [smem:[#allocation26_spill]] %s2506_s4 }
   0x4   :  { %9 = vsyncpa [#allocation7], 0 }
   0x5   :  { %11 = vsyncpa [#allocation7 + $0x1], 0 }
   0x6   :  { %12 = vsyncpa [#allocation10], 0 }
   0x7   :  { %14 = vsyncpa [#allocation10 + $0x1], 0 }
   0x8   :  { %15 = vsyncpa [#allocation8], 0 }
   0x9   :  { %17 = vsyncpa [#allocation8 + $0x1], 0  ;;  %s1876_s15 = smov 0   ;;  %s1878_s16 = smov 0  }
   0xa   :  { %s1880_s17 = smov 0   ;;  %s1882_s18 = smov 0  }
   0xb   :  { %s1884_s19 = smov 0   ;;  %s1886_s20 = smov 0  }
   0xc   :  { %s1888_s21 = smov 0   ;;  %s1890_s22 = smov 0  }
   0xd   :  { %s1892_s23 = smov 0   ;;  %s1894_s24 = smov 0  }
   0xe   :  { %s1896_s25 = smov 0  }
   0xf LB: > { %2520 = sst [smem:[#allocation17_spill]] %s1803_s18  ;;  %s1930_s26 = sadd.s32 4294967295, %s1831_s25   ;;  %s1831_s25 = sphi %s1896_s25, %s23_s25   ;;  %s1827_s24 = sphi %s1894_s24, %s2578_s24   ;;  %s1823_s23 = sphi %s1892_s23, %s2569_s23   ;;  %s1819_s22 = sphi %s1890_s22, %s2577_s22   ;;  %s1815_s21 = sphi %s1888_s21, %s2576_s21   ;;  %s1811_s20 = sphi %s1886_s20, %s2575_s20   ;;  %s1807_s19 = sphi %s1884_s19, %s2574_s19   ;;  %s1803_s18 = sphi %s1882_s18, %s2573_s18   ;;  %s1799_s17 = sphi %s1880_s17, %s2572_s17   ;;  %s1795_s16 = sphi %s1878_s16, %s2571_s16   ;;  %s1791_s15 = sphi %s1876_s15, %s2570_s15  }
  0x10   : > { %2521 = sst [smem:[#allocation18_spill]] %s1815_s21  ;;  %s1373_s27 = sadd.s32 4294967294, %s1831_s25  }
  0x11   : > { %2522 = sst [smem:[#allocation19_spill]] %s1819_s22  ;;  %p64_p0 = scmp.ne.s32.totalorder %s1807_s19, %s1803_s18 }
  0x12   : > { %2523 = sst [smem:[#allocation20_spill]] %s1823_s23  ;;  %p65_p1 = scmp.eq.s32.totalorder %s1930_s26, 0 }
  0x13   : > { %p92_p2 = scmp.ne.s32.totalorder %s1795_s16, %s1791_s15  ;;  %p160_p3 = scmp.eq.s32.totalorder %s1930_s26, 3 }
  0x14   : > { %p1940_p4 = por %p65_p1, %p64_p0  ;;  %p166_p5 = scmp.eq.s32.totalorder %s1373_s27, 3 }
  0x15   : > { %p1946_p6 = por %p92_p2, %p65_p1  ;;  %p1374_p7 = scmp.ge.s32.totalorder %s1831_s25, 1 }
  0x16   : > { %p1951_p8 = por %p166_p5, %p64_p0  ;;  %p173_p9 = scmp.lt.s32.totalorder %s1831_s25, 5 }
  0x17   : > { %s2528_s2 = sld [smem:[#allocation25_spill]]  ;;  %s1833_s9 = smov [#allocation11]  }
  0x18   : > { %s2526_s30 = scalar_select %p1951_p8, 1, 0 }
  0x19   : > { %p1959_p10 = pnand %p1374_p7, %p173_p9  ;;  %s186_s10 = sshll.u32 %s1833_s9, 4  ;;  %s187_s10 = int_to_ptr.vmem [resolvable:$true] %s186_s10 }
  0x1a   : > { %2527 = sst [smem:[#allocation21_spill]] %s2526_s30  ;;  %s1834_s11 = smov 64  }
  0x1b   : > { %p1431_p11 = pneg %p1959_p10  ;;  %s1835_s12 = smov 4  }
  0x1c   : > { %p58_p13 = scmp.ne.s32.totalorder %s1811_s20, %s1807_s19  ;;  %p59_p0 = scmp.eq.s32.totalorder %s1831_s25, 0 }
  0x1d   : > { %s184_s7 = sshll.u32 %s2528_s2, 4  ;;  %p1432_p12 = pnand %p1431_p11, %p65_p1  ;;  %s185_s7 = int_to_ptr.hbm [resolvable:$true] %s184_s7 }
  0x1e   : > { %p1447_p2 = scmp.lt.s32.totalorder %s1831_s25, 4  ;;  %p1974_p5 = por %p160_p3, %p58_p13 }
  0x1f   : > { %1434 = dma.hbm_to_vmem [thread:$0]  (!%p1432_p12), %s185_s7, 256, %s187_s10, [#allocation10], %s1834_s11, %s1834_s11, %s1835_s12  }
  0x20   : > { %s2530_s14 = scalar_select %p1974_p5, 1, 0 }
  0x21   : > { %s203_s15 = sand.u32 1, %s1811_s20   ;;  %p60_p7 = por %p59_p0, %p58_p13 }
  0x22   : > { %2531 = sst [smem:[#allocation22_spill]] %s2530_s14  ;;  %s1377_s27 = sshll.u32 %s203_s15, 4 }
  0x23   : > { %s1378_s5 = sshll.u32 %s1827_s24, 3  ;;  %s2532_s0 = sld [smem:[#allocation24_spill]] }
  0x24   : > { %s207_s11 = scalar_lea.vmem [#allocation6], %s1377_s27  ;;  %p1436_p3 = pnand %p1447_p2, %p60_p7 }
  0x25   : > { %s217_s12 = sshll.u32 %s207_s11, 4  ;;  %s204_s13 = scalar_lea.sflag [#allocation7], %s203_s15  ;;  %s218_s12 = int_to_ptr.vmem [resolvable:$true] %s217_s12 }
  0x26   : > { %s2509_s2 = smov 256   ;;  %s2510_s30 = smov 128  }
  0x27   : > { %s2511_s18 = smov 8   ;;  %s51_s27 = sadd.s32 1, %s1811_s20 }
  0x28   : > { %p86_p9 = scmp.ne.s32.totalorder %s1799_s17, %s1795_s16  ;;  %s79_s6 = sadd.s32 1, %s1799_s17 }
  0x29   : > { %s214_s9 = scalar_lea.hbm %s2532_s0, %s1378_s5  ;;  %s35_s5 = sadd.s32 1, %s1823_s23 }
  0x2a   : > { %s215_s10 = sshll.u32 %s214_s9, 4  ;;  %p36_p11 = scmp.ge.s32.totalorder %s35_s5, 2  ;;  %s216_s10 = int_to_ptr.hbm [resolvable:$true] %s215_s10 }
  0x2b   : > { %1438 = dma.hbm_to_vmem [thread:$0]  (!%p1436_p3), %s216_s10, 256, %s218_s12, %s204_s13, %s2509_s2, %s2510_s30, %s2511_s18  }
  0x2c   : > { %p1997_p12 = por %p86_p9, %p59_p0  ;;  %s227_s15 = sand.u32 1, %s1831_s25  }
  0x2d   : > { %s2580_s5 = smov (%p36_p11, %s35_s5), 0  ;;  %s2535_s9 = sadd.s32 1, %s1827_s24 }
  0x2e   : > { %2534 = sst [smem:[#allocation23_spill]] %s2580_s5  ;;  %s2582_s9 = smov (!%p36_p11, %s2535_s9), %s1827_s24 }
  0x2f   : > { %s75_s13 = ssub.s32 %s1823_s23, %s2580_s5  ;;  %s229_s10 = sand.u32 1, %s1799_s17  }
  0x30   : > { %p40_p13 = scmp.ge.s32.totalorder %s2582_s9, 2  ;;  %p77_p7 = scmp.eq.s32.totalorder %s75_s13, 0 }
  0x31   : > { %s1379_s11 = sshll.u32 %s229_s10, 4  ;;  %s1380_s12 = sshll.u32 %s1823_s23, 3 }
  0x32   : > { %s2584_s9 = smov (%p40_p13, %s2582_s9), 0  ;;  %s238_s4 = scalar_lea.hbm %s2503_s1, %s1380_s12 }
  0x33   : > { %s2014_s2 = scalar_select %p77_p7, %s1799_s17, %s79_s6  }
  0x34   : > { %s47_s30 = ssub.s32 %s1827_s24, %s2584_s9  ;;  %s239_s14 = sshll.u32 %s238_s4, 4  ;;  %s240_s14 = int_to_ptr.hbm [resolvable:$true] %s239_s14 }
  0x35   : > { %p49_p0 = scmp.eq.s32.totalorder %s47_s30, 0  ;;  %s231_s5 = scalar_lea.vmem [#allocation9], %s1379_s11 }
  0x36   : > { %s241_s22 = sshll.u32 %s231_s5, 4  ;;  %p1439_p3 = pnand %p1447_p2, %p1997_p12  ;;  %s242_s22 = int_to_ptr.vmem [resolvable:$true] %s241_s22 }
  0x37   : > { %s2022_s21 = scalar_select %p49_p0, %s1811_s20, %s51_s27  }
  0x38   : > { %s228_s13 = scalar_lea.sflag [#allocation10], %s227_s15  ;;  %s2536_s10 = smov 8  }
  0x39   : > { %s2537_s6 = smov 128   ;;  %s2538_s23 = smov 256  }
  0x3a   : > { %1441 = dma.hbm_to_vmem [thread:$0]  (!%p1439_p3), %s240_s14, 256, %s242_s22, %s228_s13, %s2538_s23, %s2537_s6, %s2536_s10  }
  0x3b   : > { %253 = sbr.rel (%p1959_p10) target bundleno = 1998 (0x7ce), region = 36  ;;  %s2034_s0 = sand.u32 (!%p1959_p10), 1, %s1807_s19  }
  0x3c   : > { %s1382_s4 = sshll.u32 (!%p1959_p10), %s2034_s0, 4  ;;  %s256_s18 = scalar_lea.sflag (!%p1959_p10), [#allocation7], %s2034_s0 }
  0x3d   : > { %s2038_s30 = scalar_lea.vmem (!%p1959_p10), [#allocation6], %s1382_s4 }
  0x40   : > { %1774 = dma.done.wait (%p1940_p4), %s256_s18, 256  }
  0x41   : > { %1776 = vsyncadd (%p1940_p4), %s256_s18, 4294967040  ;;  %s265_s22 = sand.u32 1, %s1930_s26   ;;  %s267_s23 = sand.u32 1, %s1795_s16  }
  0x42   : > { %s1383_s8 = sshll.u32 %s267_s23, 4  ;;  %s266_s14 = scalar_lea.sflag [#allocation10], %s265_s22 }
  0x43   : > { %s269_s27 = scalar_lea.vmem [#allocation9], %s1383_s8 }
  0x44   : > { %1778 = dma.done.wait (%p1946_p6), %s266_s14, 256  }
  0x45   : > { %1780 = vsyncadd (%p1946_p6), %s266_s14, 4294967040 }
  0x46   : > { %1782 = dma.done.wait (%p65_p1), [#allocation10], 256  }
  0x47   : > { %1784 = vsyncadd (%p65_p1), [#allocation10], 4294967040  ;;  %v1420_v0 = vld [vmem:[#allocation11 + $0x8] sm:$0xff]  ;;  %v1419_v1 = vld [vmem:[#allocation11] sm:$0xff]  ;;  %vm332_vm0 = vcmask 261120   ;;  %s2058_s26 = scalar_lea.vmem [#allocation12], %s1382_s4 }
  0x48   : > { %342 = vmatpush.bf16.msra.mxu0 %v1420_v0  ;;  %v314_v2 = vld [vmem:[%s269_s27] sm:$0xff]  ;;  %v315_v3 = vld [vmem:[%s269_s27 + $0x8] sm:$0xff]  ;;  %s2539_s29 = sld [smem:[#allocation18_spill]] }
  0x49   : > { %v316_v4 = vpack.c.bf16 %v315_v3, %v314_v2  ;;  %v1556_v5 = vld [vmem:[%s2505_s3] ss:$0 sm:$0xff] }
  0x4c   : > { %343 = vmatpush.bf16.msra.mxu0 %v1419_v1 }
  0x4e   : > { %p1395_p1 = scmp.ne.s32.totalorder %s2539_s29, 0 }
  0x4f   : > { %1394 = vmatmul.msk.bf16.vlgmr.msra.gmra.mxu0 %vm332_vm0, %v316_v4 }
  0xcc   : > { %v345_v6 = vpop.f32.mrf.mxu0 }
  0xcd   : > { %v346_v7 = vadd.f32 %v1556_v5, %v345_v6 }
  0xd1   : > { %353 = sbr.rel (%p1395_p1) target bundleno = 362 (0x16a), region = 52 }
  0xd4   : > { %v347_v8 = vpop.f32.mrf.mxu0 }
  0xd5   : > { %v348_v9 = vadd.f32 %v1556_v5, %v347_v8 }
  0xd6   : > { %366 = vmatpush.bf16.msra.mxu0 %v1420_v0  ;;  %v354_v10 = vld [vmem:[%s2038_s30] sm:$0xff]  ;;  %v355_v11 = vld [vmem:[%s2038_s30 + $0x8] sm:$0xff]  ;;  %vm381_vm1 = vcmask 7168   ;;  %v1839_v13 = vmov -inf   ;;  %v1840_v14 = vmov 0.0   ;;  %vm378_vm2 = vcmask 257024  }
  0xd7   : > { %v356_v12 = vpack.c.bf16 %v355_v11, %v354_v10  ;;  %382 = vst.msk [vmem:[#allocation3] sm:$0xff] %vm381_vm1, %v1839_v13 }
  0xd8   : > { %383 = vst.msk [vmem:[#allocation3 + $0x8] sm:$0xff] %vm381_vm1, %v1839_v13 }
  0xd9   : > { %384 = vst.msk [vmem:[#allocation3 + $0x10] sm:$0xff] %vm381_vm1, %v1839_v13 }
  0xda   : > { %367 = vmatpush.bf16.msra.mxu0 %v1419_v1  ;;  %385 = vst.msk [vmem:[#allocation3 + $0x18] sm:$0xff] %vm381_vm1, %v1839_v13 }
  0xdb   : > { %386 = vst.msk [vmem:[#allocation3 + $0x20] sm:$0xff] %vm381_vm1, %v1839_v13 }
  0xdc   : > { %387 = vst.msk [vmem:[#allocation3 + $0x28] sm:$0xff] %vm381_vm1, %v1839_v13 }
  0xdd   : > { %1396 = vmatmul.msk.bf16.vlgmr.msra.gmra.mxu0 %vm332_vm0, %v356_v12  ;;  %388 = vst.msk [vmem:[#allocation3 + $0x30] sm:$0xff] %vm381_vm1, %v1839_v13 }
  0xde   : > { %389 = vst.msk [vmem:[#allocation3 + $0x38] sm:$0xff] %vm381_vm1, %v1839_v13 }
  0xdf   : > { %390 = vst.msk [vmem:[#allocation4] sm:$0xff] %vm381_vm1, %v1840_v14 }
  0xe0   : > { %391 = vst.msk [vmem:[#allocation4 + $0x8] sm:$0xff] %vm381_vm1, %v1840_v14 }
  0xe1   : > { %392 = vst.msk [vmem:[#allocation4 + $0x10] sm:$0xff] %vm381_vm1, %v1840_v14 }
  0xe2   : > { %393 = vst.msk [vmem:[#allocation4 + $0x18] sm:$0xff] %vm381_vm1, %v1840_v14 }
  0xe3   : > { %394 = vst.msk [vmem:[#allocation4 + $0x20] sm:$0xff] %vm381_vm1, %v1840_v14 }
  0xe4   : > { %395 = vst.msk [vmem:[#allocation4 + $0x28] sm:$0xff] %vm381_vm1, %v1840_v14 }
  0xe5   : > { %396 = vst.msk [vmem:[#allocation4 + $0x30] sm:$0xff] %vm381_vm1, %v1840_v14 }
  0xe6   : > { %397 = vst.msk [vmem:[#allocation4 + $0x38] sm:$0xff] %vm381_vm1, %v1840_v14 }
  0xe7   : > { %398 = vst.msk [vmem:[#allocation5] sm:$0xff] %vm332_vm0, %v1840_v14 }
  0xe8   : > { %399 = vst.msk [vmem:[#allocation5 + $0x8] sm:$0xff] %vm332_vm0, %v1840_v14 }
 0x15a   : > { %v369_v15 = vpop.f32.mrf.mxu0 }
 0x15b   : > { %v370_v16 = vadd.f32 %v1556_v5, %v369_v15 }
 0x15d   : > { %v374_v17 = vmul.f32 0.17677669, %v370_v16 }
 0x15f   : > { %v376_v18 = vpack.c.bf16 %v374_v17, %v374_v17 }
 0x161   : > { %379 = vst.msk [vmem:[#allocation2] sm:$0xf] %vm378_vm2, %v376_v18 }
 0x162   : > { %v371_v19 = vpop.f32.mrf.mxu0 }
 0x163   : > { %v372_v20 = vadd.f32 %v1556_v5, %v371_v19 }
 0x165   : > { %v375_v21 = vmul.f32 0.17677669, %v372_v20 }
 0x167   : > { %v377_v22 = vpack.c.bf16 %v375_v21, %v375_v21 }
 0x169   : > { %380 = vst.msk [vmem:[#allocation2 + $0x4] sm:$0xf] %vm378_vm2, %v377_v22 }
 0x16a PF: > { %v400_v23 = vpack.c.bf16 %v346_v7, %v346_v7  ;;  %vm405_vm3 = vcmask 64512   ;;  %v402_v25 = vld [vmem:[#allocation2] sm:$0xf]  ;;  %s1841_s7 = smov 112   ;;  %s1842_s15 = smov 104   ;;  %v2085_v30 = vpack.c.bf16 %v348_v9, %v348_v9  ;;  %v1844_v37 = vmov 0  }
 0x16b   : > { %v478_v28 = vunpack.c.l.b16 %v402_v25  ;;  %s1843_s11 = smov 120   ;;  %1557 = vset.pattern.permute.xlu1 %v1844_v37  ;;  %1558 = vset.pattern.permute.xlu2 %v1844_v37  ;;  %v425_v40 = vld [vmem:[#allocation3] sm:$0xff]  ;;  %vm447_vm4 = vcmask 7168   ;;  %vm454_vm5 = vcmask 1043456   ;;  %s1845_s12 = smov 8   ;;  %vm721_vm6 = vcmask 130048  }
 0x16c   : > { %v410_v24 = vsel %vm405_vm3, %v400_v23, 0  ;;  %v483_v26 = vunpack.c.l.b16 %v400_v23  ;;  %v805_v31 = vunpack.c.l.b16 %v2085_v30  ;;  %1559 = vset.pattern.permute.xlu0 %v1844_v37  ;;  %v455_v52 = vsel %vm454_vm5, %v400_v23, 0  ;;  %s1846_s13 = smov 24   ;;  %s1847_s10 = smov 16  }
 0x16d   : > { %419 = vmatpush.bf16.xpose.msra.mxu0 %v410_v24  ;;  %v479_v29 = vpack.c.b16 %v478_v28, %v478_v28  ;;  %464 = vmatpush.bf16.msra.mxu1 %v455_v52  ;;  %v732_v5 = vsel %vm405_vm3, %v2085_v30, 0  ;;  %v507_v24 = vld [vmem:[#allocation3 + $0x8] sm:$0xff]  ;;  %vm723_vm7 = vcmask 195584   ;;  %s2540_s6 = sld [smem:[#allocation18_spill]] }
 0x16e   : > { %v484_v27 = vpack.c.b16 %v483_v26, %v483_v26  ;;  %v806_v33 = vpack.c.b16 %v805_v31, %v805_v31 }
 0x170   : > { %564 = vrot.lane.b32.xlu2 %v484_v27, %s1841_s7  ;;  %v2090_v36 = vld [vmem:[#allocation2 + $0x4] sm:$0xf] }
 0x171   : > { %v800_v38 = vunpack.c.l.b16 %v2090_v36 }
 0x173   : > { %v801_v39 = vpack.c.b16 %v800_v38, %v800_v38  ;;  %p1413_p4 = scmp.ne.s32.totalorder %s2540_s6, 1 }
 0x174   : > { %1397 = vmatmul.msk.bf16.vlgmr.msra.gmra.mxu0 %vm405_vm3, %v402_v25 }
 0x178   : > { %643 = vrot.lane.b32.xlu2 %v484_v27, %s1842_s15 }
 0x180   : > { %641 = vrot.lane.b32.xlu2 %v479_v29, %s1842_s15 }
 0x188   : > { %807 = vrot.lane.b32.xlu2 %v806_v33, %s1843_s11 }
 0x190   : > { %886 = vrot.lane.b32.xlu2 %v806_v33, %s1841_s7 }
 0x198   : > { %884 = vrot.lane.b32.xlu2 %v801_v39, %s1841_s7 }
 0x1ca   : > { %v565_v46 = vpop.permute.xlu2 %564 }
 0x1cb   : > { %v570_v56 = vsel %vm405_vm3, %v565_v46, 0  ;;  %v615_v4 = vsel %vm454_vm5, %v565_v46, 0  ;;  %v586_v46 = vld [vmem:[#allocation3 + $0x10] sm:$0xff] }
 0x1cc   : > { %579 = vmatpush.bf16.xpose.msrb.mxu1 %v570_v56 }
 0x1d2   : > { %v644_v47 = vpop.permute.xlu2 %643 }
 0x1d3   : > { %v649_v55 = vsel %vm405_vm3, %v644_v47, 0  ;;  %v694_v6 = vsel %vm454_vm5, %v644_v47, 0 }
 0x1d4   : > { %658 = vmatpush.bf16.xpose.msrb.mxu0 %v649_v55  ;;  %v748_v55 = vld [vmem:[#allocation3 + $0x20] sm:$0xff] }
 0x1da   : > { %v642_v51 = vpop.permute.xlu2 %641 }
 0x1db   : > { %1403 = vmatmul.msk.bf16.vlgmr.msrb.gmra.mxu0 %vm405_vm3, %v642_v51 }
 0x1e2   : > { %v808_v53 = vpop.permute.xlu2 %807 }
 0x1e3   : > { %v813_v54 = vsel %vm405_vm3, %v808_v53, 0  ;;  %v858_v3 = vsel %vm454_vm5, %v808_v53, 0 }
 0x1e4   : > { %822 = vmatpush.bf16.xpose.msra.mxu0 %v813_v54 }
 0x1ea   : > { %v2113_v0 = vpop.permute.xlu2 %886 }
 0x1eb   : > { %v892_v2 = vsel %vm405_vm3, %v2113_v0, 0 }
 0x1f1   : > { %v421_v32 = vpop.f32.mrf.mxu0 }
 0x1f2   : > { %v426_v34 = vsel %vm405_vm3, %v421_v32, -inf  ;;  %v885_v14 = vpop.permute.xlu2 %884 }
 0x1f3   : > { %427 = vmax.xlane.f32.xlu0 %v426_v34 }
 0x1f9   : > { %v423_v35 = vpop.f32.mrf.mxu0 }
 0x207   : > { %485 = vrot.lane.b32.xlu0 %v484_v27, %s1843_s11 }
 0x20f   : > { %802 = vrot.lane.b32.xlu0 %v801_v39, %s1843_s11 }
 0x217   : > { %965 = vrot.lane.b32.xlu0 %v806_v33, %s1842_s15 }
 0x21f   : > { %963 = vrot.lane.b32.xlu0 %v801_v39, %s1842_s15 }
 0x258   : > { %v2115_v1 = vpop.f32.mrf.mxu0 }
 0x259   : > { %v666_v17 = vsel %vm405_vm3, %v2115_v1, -inf }
 0x260   : > { %v662_v8 = vpop.f32.mrf.mxu0 }
 0x266   : > { %v428_v41 = vpop.xlane.xlu0 %427 }
 0x267   : > { %v429_v42 = vmax.f32 %v425_v40, %v428_v41 }
 0x269   : > { %v430_v43 = vsub.f32 %v425_v40, %v429_v42  ;;  %449 = vst.msk [vmem:[#allocation3] sm:$0xff] %vm447_vm4, %v429_v42  ;;  %435 = vperm.xlu1 %1557, %v429_v42  }
 0x26b   : > { %v431_v44 = vmul.f32 1.442695, %v430_v43 }
 0x26d   : > { %1560 = vpow2.f32 %v431_v44 }
 0x271   : > { %480 = vrot.lane.b32.xlu1 %v479_v29, %s1843_s11 }
 0x273   : > { %v2095_v45 = vpop.eup %1560 }
 0x274   : > { %472 = vperm.xlu2 %1558, %v2095_v45  }
 0x279   : > { %562 = vrot.lane.b32.xlu1 %v479_v29, %s1841_s7  ;;  %v486_v48 = vpop.permute.xlu0 %485  ;;  %v665_v29 = vld [vmem:[#allocation3 + $0x18] sm:$0xff] }
 0x27a   : > { %v491_v49 = vsel %vm405_vm3, %v486_v48, 0  ;;  %v536_v50 = vsel %vm454_vm5, %v486_v48, 0 }
 0x27b   : > { %500 = vmatpush.bf16.xpose.msra.mxu2 %v491_v49  ;;  %545 = vmatpush.bf16.msra.mxu3 %v536_v50 }
 0x27f   : > { %624 = vmatpush.bf16.msrb.mxu3 %v615_v4 }
 0x281   : > { %v803_v7 = vpop.permute.xlu0 %802 }
 0x282   : > { %1407 = vmatmul.msk.bf16.vlgmr.msra.gmra.mxu0 %vm405_vm3, %v803_v7 }
 0x283   : > { %703 = vmatpush.bf16.msrb.mxu2 %v694_v6 }
 0x289   : > { %v2127_v9 = vpop.permute.xlu0 %965 }
 0x28a   : > { %v971_v10 = vsel %vm405_vm3, %v2127_v9, 0 }
 0x28b   : > { %980 = vmatpush.bf16.xpose.msrb.mxu0 %v971_v10  ;;  %v1016_v10 = vsel %vm454_vm5, %v2127_v9, 0 }
 0x291   : > { %v964_v11 = vpop.permute.xlu0 %963 }
 0x292   : > { %1411 = vmatmul.msk.bf16.vlgmr.msrb.gmra.mxu0 %vm405_vm3, %v964_v11 }
 0x2ce   : > { %v2158_v44 = vpop.permute.xlu2 %472 }
 0x2db   : > { %v436_v57 = vpop.permute.xlu1 %435 }
 0x2dc   : > { %v438_v58 = vsub.f32 %v421_v32, %v436_v57 }
 0x2de   : > { %v439_v59 = vmul.f32 1.442695, %v438_v58 }
 0x2e0   : > { %1562 = vpow2.f32 %v439_v59 }
 0x2e3   : > { %v481_v60 = vpop.permute.xlu1 %480 }
 0x2e4   : > { %1399 = vmatmul.msk.bf16.vlgmr.msra.gmra.mxu2 %vm405_vm3, %v481_v60 }
 0x2e5   : > { %867 = vmatpush.bf16.msra.mxu2 %v858_v3 }
 0x2e6   : > { %v2107_v61 = vpop.eup %1562 }
 0x2e7   : > { %v450_v62 = vpack.c.bf16 %v2107_v61, %v2107_v61  ;;  %v443_v41 = vsel %vm405_vm3, %v2107_v61, 0.0 }
 0x2e9   : > { %1398 = vmatmul.msk.bf16.vlgmr.msra.gmra.mxu1 %vm405_vm3, %v450_v62 }
 0x2ea   : > { %741 = vmatpush.bf16.xpose.msra.mxu1 %v732_v5 }
 0x2eb   : > { %v563_v63 = vpop.permute.xlu1 %562 }
 0x2f9   : > { %1401 = vmatmul.msk.bf16.vlgmr.msrb.gmra.mxu1 %vm405_vm3, %v563_v63  ;;  %v2174_v63 = vld [vmem:[#allocation3 + $0x30] sm:$0xff] }
 0x2fa   : > { %901 = vmatpush.bf16.xpose.msrb.mxu1 %v892_v2 }
 0x2ff   : > { %v2152_v37 = vpop.f32.mrf.mxu0 }
 0x307   : > { %v826_v38 = vpop.f32.mrf.mxu0 }
 0x309   : > { %1405 = vmatmul.msk.bf16.vlgmr.msra.gmra.mxu1 %vm405_vm3, %v2090_v36 }
 0x30f   : > { %v2154_v39 = vpop.f32.mrf.mxu0 }
 0x310   : > { %v988_v58 = vsel %vm405_vm3, %v2154_v39, -inf }
 0x317   : > { %v984_v40 = vpop.f32.mrf.mxu0 }
 0x319   : > { %1409 = vmatmul.msk.bf16.vlgmr.msrb.gmra.mxu1 %vm405_vm3, %v885_v14  ;;  %v441_v14 = vld [vmem:[#allocation4] sm:$0xff] }
 0x366   : > { %v2132_v12 = vpop.f32.mrf.mxu1 }
 0x367   : > { %v502_v13 = vpop.f32.mrf.mxu2 }
 0x368   : > { %v508_v15 = vsel %vm405_vm3, %v502_v13, -inf }
 0x369   : > { %509 = vmax.xlane.f32.xlu0 %v508_v15  ;;  %v442_v15 = vmul.f32 %v2095_v45, %v441_v14 }
 0x36e   : > { %v468_v16 = vpop.f32.mrf.mxu1 }
 0x36f   : > { %v504_v18 = vpop.f32.mrf.mxu2 }
 0x370   : > { %v524_v18 = vld [vmem:[#allocation4 + $0x8] sm:$0xff] }
 0x371   : > { %667 = vmax.xlane.f32.xlu0 %v666_v17 }
 0x376   : > { %v2138_v19 = vpop.f32.mrf.mxu1 }
 0x377   : > { %v587_v20 = vsel %vm405_vm3, %v2138_v19, -inf }
 0x379   : > { %588 = vmax.xlane.f32.xlu0 %v587_v20 }
 0x37e   : > { %v583_v21 = vpop.f32.mrf.mxu1 }
 0x386   : > { %v2142_v22 = vpop.f32.mrf.mxu1 }
 0x387   : > { %v749_v23 = vsel %vm405_vm3, %v2142_v22, -inf }
 0x388   : > { %750 = vmax.xlane.f32.xlu0 %v749_v23 }
 0x38e   : > { %v745_v27 = vpop.f32.mrf.mxu1 }
 0x396   : > { %v2147_v33 = vpop.f32.mrf.mxu1 }
 0x397   : > { %v909_v35 = vsel %vm405_vm3, %v2147_v33, -inf }
 0x398   : > { %910 = vmax.xlane.f32.xlu0 %v909_v35 }
 0x39e   : > { %v905_v36 = vpop.f32.mrf.mxu1 }
 0x3dc   : > { %v510_v25 = vpop.xlane.xlu0 %509 }
 0x3dd   : > { %v511_v26 = vmax.f32 %v507_v24, %v510_v25  ;;  %v2195_v25 = vld [vmem:[#allocation3 + $0x38] sm:$0xff] }
 0x3df   : > { %v512_v28 = vsub.f32 %v507_v24, %v511_v26  ;;  %531 = vst.msk [vmem:[#allocation3 + $0x8] sm:$0xff] %vm447_vm4, %v511_v26  ;;  %517 = vperm.xlu2 %1558, %v511_v26  }
 0x3e1   : > { %v513_v42 = vmul.f32 1.442695, %v512_v28 }
 0x3e3   : > { %1564 = vpow2.f32 %v513_v42  ;;  %v777_v42 = vsel %vm454_vm5, %v2085_v30, 0 }
 0x3e4   : > { %v668_v31 = vpop.xlane.xlu0 %667 }
 0x3e5   : > { %v669_v32 = vmax.f32 %v665_v29, %v668_v31 }
 0x3e7   : > { %v670_v34 = vsub.f32 %v665_v29, %v669_v32  ;;  %689 = vst.msk [vmem:[#allocation3 + $0x18] sm:$0xff] %vm447_vm4, %v669_v32  ;;  %675 = vperm.xlu1 %1557, %v669_v32   ;;  %v682_v32 = vld [vmem:[#allocation4 + $0x18] sm:$0xff] }
 0x3e9   : > { %v1565_v43 = vpop.eup %1564  ;;  %v671_v11 = vmul.f32 1.442695, %v670_v34 }
 0x3ea   : > { %v525_v20 = vmul.f32 %v1565_v43, %v524_v18 }
 0x3ec   : > { %v589_v47 = vpop.xlane.xlu0 %588 }
 0x3ed   : > { %v2160_v49 = vmax.f32 %v586_v46, %v589_v47 }
 0x3ef   : > { %610 = vst.msk [vmem:[#allocation3 + $0x10] sm:$0xff] %vm447_vm4, %v2160_v49  ;;  %v591_v59 = vsub.f32 %v586_v46, %v2160_v49  ;;  %v2217_v46 = vld [vmem:[#allocation5] sm:$0xff] }
 0x3f0   : > { %v475_v47 = vmul.f32 %v2158_v44, %v2217_v46  ;;  %v937_v44 = vsel %vm454_vm5, %v2113_v0, 0 }
 0x3f1   : > { %v592_v60 = vmul.f32 1.442695, %v591_v59 }
 0x3fb   : > { %v751_v56 = vpop.xlane.xlu0 %750 }
 0x3fc   : > { %v2166_v57 = vmax.f32 %v748_v55, %v751_v56 }
 0x3fe   : > { %772 = vst.msk [vmem:[#allocation3 + $0x20] sm:$0xff] %vm447_vm4, %v2166_v57  ;;  %v753_v23 = vsub.f32 %v748_v55, %v2166_v57 }
 0x400   : > { %v754_v24 = vmul.f32 1.442695, %v753_v23 }
 0x40b   : > { %v911_v2 = vpop.xlane.xlu0 %910 }
 0x40c   : > { %v2177_v4 = vmax.f32 %v2174_v63, %v911_v2 }
 0x40e   : > { %v913_v5 = vsub.f32 %v2174_v63, %v2177_v4  ;;  %932 = vst.msk [vmem:[#allocation3 + $0x30] sm:$0xff] %vm447_vm4, %v2177_v4 }
 0x411   : > { %444 = vadd.xlane.f32.xlu1 %v443_v41  ;;  %v830_v41 = vsel %vm405_vm3, %v2152_v37, -inf }
 0x42a   : > { %553 = vperm.xlu1 %1557, %v1565_v43  }
 0x439   : > { %v518_v48 = vpop.permute.xlu2 %517 }
 0x43a   : > { %v520_v50 = vsub.f32 %v502_v13, %v518_v48 }
 0x43c   : > { %v521_v51 = vmul.f32 1.442695, %v520_v50  ;;  %v476_v50 = vadd.f32 %v475_v47, %v2132_v12  ;;  %v829_v12 = vld [vmem:[#allocation3 + $0x28] sm:$0xff] }
 0x43e   : > { %1566 = vpow2.f32 %v521_v51 }
 0x43f   : > { %1568 = vpow2.f32 %v592_v60 }
 0x444   : > { %v1567_v52 = vpop.eup %1566 }
 0x445   : > { %v526_v53 = vsel %vm405_vm3, %v1567_v52, 0.0  ;;  %v532_v54 = vpack.c.bf16 %v1567_v52, %v1567_v52  ;;  %v2183_v6 = vpop.eup %1568 }
 0x446   : > { %527 = vadd.xlane.f32.xlu2 %v526_v53 }
 0x447   : > { %1400 = vmatmul.msk.bf16.vlgmr.msra.gmra.mxu3 %vm405_vm3, %v532_v54 }
 0x448   : > { %786 = vmatpush.bf16.msra.mxu3 %v777_v42 }
 0x44e   : > { %989 = vmax.xlane.f32.xlu2 %v988_v58 }
 0x459   : > { %v676_v61 = vpop.permute.xlu1 %675 }
 0x45a   : > { %v678_v62 = vsub.f32 %v2115_v1, %v676_v61 }
 0x45c   : > { %v679_v3 = vmul.f32 1.442695, %v678_v62 }
 0x45e   : > { %1570 = vpow2.f32 %v679_v3 }
 0x45f   : > { %1572 = vpow2.f32 %v671_v11 }
 0x460   : > { %1574 = vpow2.f32 %v754_v24 }
 0x464   : > { %v1571_v7 = vpop.eup %1570 }
 0x465   : > { %v684_v1 = vsel %vm405_vm3, %v1571_v7, 0.0  ;;  %v690_v8 = vpack.c.bf16 %v1571_v7, %v1571_v7  ;;  %v1573_v13 = vpop.eup %1572 }
 0x466   : > { %685 = vadd.xlane.f32.xlu0 %v684_v1  ;;  %632 = vperm.xlu2 %1558, %v2183_v6   ;;  %v2205_v28 = vpop.eup %1574  ;;  %v683_v34 = vmul.f32 %v1573_v13, %v682_v32  ;;  %v765_v32 = vld [vmem:[#allocation4 + $0x20] sm:$0xff] }
 0x467   : > { %1404 = vmatmul.msk.bf16.vlgmr.msrb.gmra.mxu2 %vm405_vm3, %v690_v8 }
 0x468   : > { %1025 = vmatpush.bf16.msrb.mxu2 %v1016_v10 }
 0x47a   : > { %711 = vperm.xlu0 %1559, %v1573_v13  }
 0x482   : > { %918 = vperm.xlu0 %1559, %v2177_v4  }
 0x484   : > { %v445_v16 = vpop.xlane.xlu1 %444 }
 0x485   : > { %v446_v17 = vadd.f32 %v445_v16, %v442_v15 }
 0x487   : > { %448 = vst.msk [vmem:[#allocation4] sm:$0xff] %vm447_vm4, %v446_v17 }
 0x49c   : > { %v554_v43 = vpop.permute.xlu1 %553 }
 0x49d   : > { %v556_v48 = vmul.f32 %v554_v43, %v2217_v46 }
 0x4b9   : > { %v528_v21 = vpop.xlane.xlu2 %527 }
 0x4ba   : > { %v529_v9 = vadd.f32 %v528_v21, %v525_v20 }
 0x4bc   : > { %530 = vst.msk [vmem:[#allocation4 + $0x8] sm:$0xff] %vm447_vm4, %v529_v9 }
 0x4c1   : > { %v990_v26 = vpop.xlane.xlu2 %989 }
 0x4c2   : > { %v2198_v27 = vmax.f32 %v2195_v25, %v990_v26 }
 0x4c4   : > { %v992_v45 = vsub.f32 %v2195_v25, %v2198_v27  ;;  %1011 = vst.msk [vmem:[#allocation3 + $0x38] sm:$0xff] %vm447_vm4, %v2198_v27  ;;  %997 = vperm.xlu0 %1559, %v2198_v27  }
 0x4c9   : > { %v633_v17 = vpop.permute.xlu2 %632 }
 0x4ca   : > { %v547_v29 = vpop.f32.mrf.mxu3 }
 0x4cb   : > { %558 = vrot.lane.b32.xlu1 %v547_v29, %s1845_s12 }
 0x4cc   : > { %794 = vperm.xlu0 %1559, %v2205_v28  }
 0x4d2   : > { %v549_v31 = vpop.f32.mrf.mxu3 }
 0x4d3   : > { %596 = vperm.xlu1 %1557, %v2160_v49  }
 0x4d9   : > { %v686_v35 = vpop.xlane.xlu0 %685 }
 0x4da   : > { %v687_v36 = vadd.f32 %v686_v35, %v683_v34  ;;  %v766_v34 = vmul.f32 %v2205_v28, %v765_v32 }
 0x4dc   : > { %688 = vst.msk [vmem:[#allocation4 + $0x18] sm:$0xff] %vm447_vm4, %v687_v36 }
 0x4ea   : > { %v705_v38 = vpop.f32.mrf.mxu2 }
 0x4ec   : > { %v2244_v62 = vpop.permute.xlu0 %711 }
 0x4f2   : > { %v707_v40 = vpop.f32.mrf.mxu2 }
 0x4f4   : > { %v919_v4 = vpop.permute.xlu0 %918 }
 0x4f5   : > { %v921_v7 = vsub.f32 %v2147_v33, %v919_v4 }
 0x4f7   : > { %v922_v8 = vmul.f32 1.442695, %v921_v7  ;;  %v925_v7 = vld [vmem:[#allocation4 + $0x30] sm:$0xff] }
 0x4fd   : > { %831 = vmax.xlane.f32.xlu1 %v830_v41  ;;  %v1004_v41 = vld [vmem:[#allocation4 + $0x38] sm:$0xff] }
 0x516   : > { %758 = vperm.xlu1 %1557, %v2166_v57   ;;  %v914_v57 = vmul.f32 1.442695, %v913_v5 }
 0x51e   : > { %716 = vrot.lane.b32.xlu1 %v705_v38, %s1846_s13 }
 0x536   : > { %v998_v10 = vpop.permute.xlu0 %997 }
 0x537   : > { %v1000_v11 = vsub.f32 %v2154_v39, %v998_v10  ;;  %v727_v10 = vld [vmem:[#allocation5 + $0x8] sm:$0xff] }
 0x539   : > { %v1001_v13 = vmul.f32 1.442695, %v1000_v11 }
 0x53d   : > { %v559_v49 = vpop.permute.xlu1 %558 }
 0x53e   : > { %v561_v51 = vadd.f32 %v559_v49, %v556_v48 }
 0x540   : > { %v2224_v52 = vsel %vm405_vm3, %v476_v50, %v561_v51 }
 0x545   : > { %v597_v53 = vpop.permute.xlu1 %596 }
 0x546   : > { %v599_v54 = vsub.f32 %v2138_v19, %v597_v53 }
 0x548   : > { %v600_v30 = vmul.f32 1.442695, %v599_v54  ;;  %v635_v54 = vmul.f32 %v633_v17, %v2217_v46 }
 0x54a   : > { %1576 = vpow2.f32 %v600_v30  ;;  %v714_v30 = vmul.f32 %v2244_v62, %v2217_v46  ;;  %v795_v62 = vpop.permute.xlu0 %794 }
 0x54b   : > { %1578 = vpow2.f32 %v914_v57 }
 0x550   : > { %v2227_v55 = vpop.eup %1576 }
 0x551   : > { %v611_v56 = vpack.c.bf16 %v2227_v55, %v2227_v55  ;;  %v2238_v61 = vpop.eup %1578  ;;  %v605_v46 = vsel %vm405_vm3, %v2227_v55, 0.0 }
 0x553   : > { %1402 = vmatmul.msk.bf16.vlgmr.msrb.gmra.mxu3 %vm405_vm3, %v611_v56 }
 0x554   : > { %946 = vmatpush.bf16.msrb.mxu3 %v937_v44 }
 0x570   : > { %v832_v58 = vpop.xlane.xlu1 %831 }
 0x571   : > { %v833_v19 = vmax.f32 %v829_v12, %v832_v58 }
 0x573   : > { %v834_v59 = vsub.f32 %v829_v12, %v833_v19  ;;  %853 = vst.msk [vmem:[#allocation3 + $0x28] sm:$0xff] %vm447_vm4, %v833_v19  ;;  %839 = vperm.xlu2 %1558, %v833_v19  }
 0x575   : > { %v835_v60 = vmul.f32 1.442695, %v834_v59 }
 0x577   : > { %1580 = vpow2.f32 %v835_v60 }
 0x57b   : > { %954 = vperm.xlu2 %1558, %v2238_v61  }
 0x57d   : > { %v2241_v0 = vpop.eup %1580 }
 0x57e   : > { %875 = vperm.xlu0 %1559, %v2241_v0  }
 0x588   : > { %v759_v63 = vpop.permute.xlu1 %758 }
 0x589   : > { %v761_v2 = vsub.f32 %v2142_v22, %v759_v63 }
 0x58b   : > { %v762_v3 = vmul.f32 1.442695, %v761_v2  ;;  %v603_v2 = vld [vmem:[#allocation4 + $0x10] sm:$0xff] }
 0x58d   : > { %1582 = vpow2.f32 %v762_v3  ;;  %v604_v3 = vmul.f32 %v2183_v6, %v603_v2 }
 0x58e   : > { %1584 = vpow2.f32 %v922_v8 }
 0x58f   : > { %1586 = vpow2.f32 %v1001_v13 }
 0x590   : > { %v717_v27 = vpop.permute.xlu1 %716 }
 0x591   : > { %v719_v57 = vadd.f32 %v717_v27, %v714_v30 }
 0x593   : > { %v1583_v5 = vpop.eup %1582 }
 0x594   : > { %v773_v1 = vpack.c.bf16 %v1583_v5, %v1583_v5  ;;  %v2250_v14 = vpop.eup %1584  ;;  %v767_v22 = vsel %vm405_vm3, %v1583_v5, 0.0 }
 0x595   : > { %v933_v15 = vpack.c.bf16 %v2250_v14, %v2250_v14  ;;  %v1587_v33 = vpop.eup %1586 }
 0x596   : > { %1406 = vmatmul.msk.bf16.vlgmr.msra.gmra.mxu3 %vm405_vm3, %v773_v1  ;;  %v1006_v16 = vsel %vm405_vm3, %v1587_v33, 0.0  ;;  %v1012_v29 = vpack.c.bf16 %v1587_v33, %v1587_v33  ;;  %v926_v1 = vmul.f32 %v2238_v61, %v925_v7 }
 0x5a4   : > { %768 = vadd.xlane.f32.xlu2 %v767_v22 }
 0x5a6   : > { %1410 = vmatmul.msk.bf16.vlgmr.msrb.gmra.mxu3 %vm405_vm3, %v933_v15 }
 0x5ac   : > { %1007 = vadd.xlane.f32.xlu2 %v1006_v16 }
 0x5cd   : > { %v840_v18 = vpop.permute.xlu2 %839 }
 0x5ce   : > { %v842_v39 = vsub.f32 %v2152_v37, %v840_v18  ;;  %v993_v37 = vmul.f32 1.442695, %v992_v45  ;;  %v846_v45 = vld [vmem:[#allocation4 + $0x28] sm:$0xff] }
 0x5cf   : > { %v847_v28 = vmul.f32 %v2241_v0, %v846_v45  ;;  %v927_v0 = vsel %vm405_vm3, %v2250_v14, 0.0  ;;  %v797_v14 = vmul.f32 %v795_v62, %v727_v10 }
 0x5d0   : > { %v843_v20 = vmul.f32 1.442695, %v842_v39 }
 0x5d2   : > { %1588 = vpow2.f32 %v843_v20 }
 0x5d3   : > { %1590 = vpow2.f32 %v993_v37 }
 0x5d5   : > { %v2261_v31 = vpop.permute.xlu2 %954 }
 0x5d6   : > { %v626_v21 = vpop.f32.mrf.mxu3  ;;  %v957_v33 = vmul.f32 %v2261_v31, %v727_v10 }
 0x5d8   : > { %v1589_v9 = vpop.eup %1588 }
 0x5d9   : > { %v854_v23 = vpack.c.bf16 %v1589_v9, %v1589_v9  ;;  %v848_v24 = vsel %vm405_vm3, %v1589_v9, 0.0  ;;  %v1591_v40 = vpop.eup %1590 }
 0x5da   : > { %849 = vadd.xlane.f32.xlu1 %v848_v24  ;;  %v1005_v42 = vmul.f32 %v1591_v40, %v1004_v41 }
 0x5db   : > { %1408 = vmatmul.msk.bf16.vlgmr.msra.gmra.mxu2 %vm405_vm3, %v854_v23 }
 0x5de   : > { %v628_v26 = vpop.f32.mrf.mxu3 }
 0x5eb   : > { %1412 = vmatmul.msk.bf16.vlgmr.msrb.gmra.mxu2 %vm405_vm3, %v1012_v29 }
 0x5f0   : > { %v876_v63 = vpop.permute.xlu0 %875 }
 0x5f1   : > { %v878_v13 = vmul.f32 %v876_v63, %v727_v10 }
 0x5f3   : > { %637 = vrot.lane.b32.xlu1 %v626_v21, %s1847_s10 }
 0x617   : > { %v769_v35 = vpop.xlane.xlu2 %768 }
 0x618   : > { %v770_v36 = vadd.f32 %v769_v35, %v766_v34 }
 0x619   : > { %v788_v38 = vpop.f32.mrf.mxu3 }
 0x61a   : > { %771 = vst.msk [vmem:[#allocation4 + $0x20] sm:$0xff] %vm447_vm4, %v770_v36  ;;  %v798_v15 = vadd.f32 %v797_v14, %v788_v38 }
 0x61f   : > { %v1008_v43 = vpop.xlane.xlu2 %1007 }
 0x620   : > { %v1009_v47 = vadd.f32 %v1008_v43, %v1005_v42 }
 0x621   : > { %v790_v48 = vpop.f32.mrf.mxu3 }
 0x622   : > { %1010 = vst.msk [vmem:[#allocation4 + $0x38] sm:$0xff] %vm447_vm4, %v1009_v47 }
 0x629   : > { %v948_v49 = vpop.f32.mrf.mxu3 }
 0x62a   : > { %959 = vrot.lane.b32.xlu1 %v948_v49, %s1847_s10 }
 0x631   : > { %v950_v25 = vpop.f32.mrf.mxu3 }
 0x64d   : > { %v850_v50 = vpop.xlane.xlu1 %849 }
 0x64e   : > { %v851_v51 = vadd.f32 %v850_v50, %v847_v28 }
 0x650   : > { %852 = vst.msk [vmem:[#allocation4 + $0x28] sm:$0xff] %vm447_vm4, %v851_v51 }
 0x65e   : > { %v869_v53 = vpop.f32.mrf.mxu2 }
 0x65f   : > { %880 = vrot.lane.b32.xlu0 %v869_v53, %s1845_s12 }
 0x665   : > { %v638_v56 = vpop.permute.xlu1 %637 }
 0x666   : > { %v640_v44 = vadd.f32 %v638_v56, %v635_v54  ;;  %v871_v12 = vpop.f32.mrf.mxu2 }
 0x668   : > { %v722_v58 = vsel %vm721_vm6, %v2224_v52, %v640_v44 }
 0x669   : > { %v724_v19 = vsel %vm723_vm7, %v722_v58, %v719_v57 }
 0x66a   : > { %725 = vst.msk [vmem:[#allocation5] sm:$0xff] %vm332_vm0, %v724_v19 }
 0x66e   : > { %v1027_v59 = vpop.f32.mrf.mxu2 }
 0x66f   : > { %1038 = vrot.lane.b32.xlu1 %v1027_v59, %s1846_s13 }
 0x676   : > { %v1029_v60 = vpop.f32.mrf.mxu2 }
 0x689   : > { %606 = vadd.xlane.f32.xlu0 %v605_v46 }
 0x691   : > { %928 = vadd.xlane.f32.xlu0 %v927_v0 }
 0x69c   : > { %v960_v11 = vpop.permute.xlu1 %959 }
 0x69d   : > { %v962_v18 = vadd.f32 %v960_v11, %v957_v33 }
 0x6a5   : > { %1033 = vperm.xlu0 %1559, %v1591_v40  }
 0x6d1   : > { %v881_v52 = vpop.permute.xlu0 %880 }
 0x6d2   : > { %v883_v22 = vadd.f32 %v881_v52, %v878_v13 }
 0x6d4   : > { %v1042_v16 = vsel %vm405_vm3, %v798_v15, %v883_v22 }
 0x6d5   : > { %v1043_v61 = vsel %vm721_vm6, %v1042_v16, %v962_v18 }
 0x6e1   : > { %v1039_v39 = vpop.permute.xlu1 %1038 }
 0x6fc   : > { %v607_v4 = vpop.xlane.xlu0 %606 }
 0x6fd   : > { %v608_v5 = vadd.f32 %v607_v4, %v604_v3 }
 0x6ff   : > { %609 = vst.msk [vmem:[#allocation4 + $0x10] sm:$0xff] %vm447_vm4, %v608_v5 }
 0x704   : > { %v929_v55 = vpop.xlane.xlu0 %928 }
 0x705   : > { %v930_v8 = vadd.f32 %v929_v55, %v926_v1 }
 0x707   : > { %931 = vst.msk [vmem:[#allocation4 + $0x30] sm:$0xff] %vm447_vm4, %v930_v8 }
 0x717   : > { %v1034_v6 = vpop.permute.xlu0 %1033 }
 0x718   : > { %v1036_v17 = vmul.f32 %v1034_v6, %v727_v10 }
 0x719   : > { %1049 = sbr.rel (%p1413_p4) target bundleno = 1976 (0x7b8), region = 56 }
 0x71a   : > { %v1041_v20 = vadd.f32 %v1039_v39, %v1036_v17 }
 0x71c   : > { %v1044_v21 = vsel %vm723_vm7, %v1043_v61, %v1041_v20 }
 0x71d   : > { %1045 = vst.msk [vmem:[#allocation5 + $0x8] sm:$0xff] %vm332_vm0, %v1044_v21 }
 0x71e   : > { %v1140_v9 = vld [vmem:[#allocation4 + $0x20] sm:$0xff]  ;;  %v2294_v24 = vld [vmem:[#allocation4 + $0x28] sm:$0xff]  ;;  %v1848_v26 = vmov 0   ;;  %v2299_v37 = vld [vmem:[#allocation4 + $0x38] sm:$0xff] }
 0x71f   : > { %v1051_v23 = vld [vmem:[#allocation4] sm:$0xff]  ;;  %1593 = vset.pattern.permute.xlu1 %v1848_v26  ;;  %1592 = vset.pattern.permute.xlu0 %v1848_v26  ;;  %1595 = vrcp.f32 %v1140_v9  ;;  %v2296_v29 = vld [vmem:[#allocation4 + $0x8] sm:$0xff]  ;;  %v1150_v31 = vand.u32 2147483647, %v1140_v9  ;;  %v1152_v32 = vand.u32 2147483648, %v1140_v9  ;;  %v2302_v36 = vld [vmem:[#allocation4 + $0x18] sm:$0xff]  ;;  %vm1146_vm8 = vweird.f32 %v1140_v9 }
 0x720   : > { %1597 = vrcp.f32 %v1051_v23  ;;  %1594 = vset.pattern.permute.xlu2 %v1848_v26  ;;  %v1061_v34 = vand.u32 2147483647, %v1051_v23  ;;  %v1063_v35 = vand.u32 2147483648, %v1051_v23  ;;  %vm1057_vm10 = vweird.f32 %v1051_v23  ;;  %v2311_v47 = vld [vmem:[#allocation4 + $0x10] sm:$0xff] }
 0x721   : > { %1599 = vrcp.f32 %v2294_v24  ;;  %vm2305_vm9 = vcmp.eq.f32.partialorder %v1150_v31, 8.507059e+37  ;;  %v1153_v43 = vor.u32 1.1754944e-38, %v1152_v32  ;;  %vm1167_vm11 = vweird.f32 %v2294_v24  ;;  %v1182_v18 = vld [vmem:[#allocation4 + $0x30] sm:$0xff] }
 0x722   : > { %1601 = vrcp.f32 %v2296_v29  ;;  %vm2315_vm12 = vcmp.eq.f32.partialorder %v1061_v34, 8.507059e+37  ;;  %v1064_v27 = vor.u32 1.1754944e-38, %v1063_v35  ;;  %v1171_v45 = vand.u32 2147483647, %v2294_v24 }
 0x723   : > { %1603 = vrcp.f32 %v2299_v37  ;;  %v1173_v51 = vand.u32 2147483648, %v2294_v24  ;;  %vm1078_vm15 = vweird.f32 %v2296_v29  ;;  %v1082_v57 = vand.u32 2147483647, %v2296_v29 }
 0x724   : > { %1605 = vrcp.f32 %v2302_v36  ;;  %vm2337_vm2 = vcmp.eq.f32.partialorder %v1171_v45, 8.507059e+37  ;;  %v1084_v60 = vand.u32 2147483648, %v2296_v29  ;;  %v1103_v61 = vand.u32 2147483647, %v2311_v47 }
 0x725   : > { %v1596_v38 = vpop.eup %1595  ;;  %1607 = vrcp.f32 %v2311_v47  ;;  %v1174_v55 = vor.u32 1.1754944e-38, %v1173_v51  ;;  %v1213_v26 = vand.u32 2147483647, %v2299_v37  ;;  %v1215_v31 = vand.u32 2147483648, %v2299_v37 }
 0x726   : > { %v1598_v41 = vpop.eup %1597  ;;  %v1142_v42 = vmul.f32 %v1596_v38, %v1140_v9  ;;  %vm1147_vm13 = vweird.f32 %v1596_v38  ;;  %v1085_v39 = vor.u32 1.1754944e-38, %v1084_v60  ;;  %1609 = vrcp.f32 %v1182_v18 }
 0x727   : > { %v2313_v48 = vpop.eup %1599  ;;  %v1053_v49 = vmul.f32 %v1598_v41, %v1051_v23  ;;  %vm1058_vm14 = vweird.f32 %v1598_v41  ;;  %vm2333_vm1 = vmor %vm1146_vm8, %vm1147_vm13  ;;  %vm1209_vm13 = vweird.f32 %v2299_v37  ;;  %v1105_v23 = vand.u32 2147483648, %v2311_v47 }
 0x728   : > { %v1143_v28 = vsub.f32 1.0, %v1142_v42  ;;  %v1163_v50 = vmul.f32 %v2313_v48, %v2294_v24  ;;  %v2323_v53 = vpop.eup %1601  ;;  %vm2348_vm4 = vmor %vm1057_vm10, %vm1058_vm14  ;;  %vm1168_vm5 = vweird.f32 %v2313_v48  ;;  %v1126_v35 = vand.u32 2147483648, %v2302_v36 }
 0x729   : > { %v1054_v54 = vsub.f32 1.0, %v1053_v49  ;;  %v2327_v30 = vpop.eup %1603  ;;  %v1074_v12 = vmul.f32 %v2323_v53, %v2296_v29  ;;  %vm1079_vm8 = vweird.f32 %v2323_v53  ;;  %vm2367_vm10 = vmor %vm1167_vm11, %vm1168_vm5  ;;  %vm2383_vm11 = vcmp.eq.f32.partialorder %v1082_v57, 8.507059e+37 }
 0x72a   : > { %v1144_v56 = vmul.f32 %v1596_v38, %v1143_v28  ;;  %v1164_v44 = vsub.f32 1.0, %v1163_v50  ;;  %v1205_v46 = vmul.f32 %v2327_v30, %v2299_v37  ;;  %v2344_v0 = vpop.eup %1605  ;;  %v1106_v40 = vor.u32 1.1754944e-38, %v1105_v23 }
 0x72b   : > { %v1055_v19 = vmul.f32 %v1598_v41, %v1054_v54  ;;  %v1075_v2 = vsub.f32 1.0, %v1074_v12  ;;  %v1116_v5 = vmul.f32 %v2344_v0, %v2302_v36  ;;  %v1608_v10 = vpop.eup %1607  ;;  %v1124_v49 = vand.u32 2147483647, %v2302_v36 }
 0x72c   : > { %v1145_v62 = vadd.f32 %v1596_v38, %v1144_v56  ;;  %v1165_v52 = vmul.f32 %v2313_v48, %v1164_v44  ;;  %v1206_v4 = vsub.f32 1.0, %v1205_v46  ;;  %v1095_v17 = vmul.f32 %v1608_v10, %v2311_v47  ;;  %v1610_v45 = vpop.eup %1609 }
 0x72d   : > { %v1056_v3 = vadd.f32 %v1598_v41, %v1055_v19  ;;  %v1076_v8 = vmul.f32 %v2323_v53, %v1075_v2  ;;  %v1117_v22 = vsub.f32 1.0, %v1116_v5  ;;  %vm1100_vm14 = vweird.f32 %v1608_v10  ;;  %v1139_v2 = vld [vmem:[#allocation5 + $0x8] sm:$0xff] }
 0x72e   : > { %v1149_v7 = vsel %vm2333_vm1, %v1596_v38, %v1145_v62  ;;  %v1166_v1 = vadd.f32 %v2313_v48, %v1165_v52  ;;  %v1207_v20 = vmul.f32 %v2327_v30, %v1206_v4  ;;  %v1096_v9 = vsub.f32 1.0, %v1095_v17 }
 0x72f   : > { %v1154_v11 = vsel %vm2305_vm9, %v1153_v43, %v1149_v7  ;;  %v1060_v13 = vsel %vm2348_vm4, %v1598_v41, %v1056_v3  ;;  %v1077_v33 = vadd.f32 %v2323_v53, %v1076_v8  ;;  %vm2379_vm9 = vmor %vm1078_vm15, %vm1079_vm8  ;;  %v1118_v29 = vmul.f32 %v2344_v0, %v1117_v22  ;;  %v1050_v3 = vld [vmem:[#allocation5] sm:$0xff] }
 0x730   : > { %1157 = vperm.xlu1 %1593, %v1154_v11   ;;  %v1065_v15 = vsel %vm2315_vm12, %v1064_v27, %v1060_v13  ;;  %vm1099_vm12 = vweird.f32 %v2311_v47  ;;  %v1170_v21 = vsel %vm2367_vm10, %v2313_v48, %v1166_v1  ;;  %vm1210_vm15 = vweird.f32 %v2327_v30 }
 0x731   : > { %1068 = vperm.xlu0 %1592, %v1065_v15   ;;  %v1081_v24 = vsel %vm2379_vm9, %v2323_v53, %v1077_v33  ;;  %vm1120_vm1 = vweird.f32 %v2302_v36  ;;  %v1097_v32 = vmul.f32 %v1608_v10, %v1096_v9  ;;  %v1175_v34 = vsel %vm2337_vm2, %v1174_v55, %v1170_v21  ;;  %vm2409_vm5 = vmor %vm1099_vm12, %vm1100_vm14 }
 0x732   : > { %vm1121_vm4 = vweird.f32 %v2344_v0  ;;  %v1086_v41 = vsel %vm2383_vm11, %v1085_v39, %v1081_v24  ;;  %v1208_v42 = vadd.f32 %v2327_v30, %v1207_v20  ;;  %vm1104_vm8 = vcmp.eq.f32.partialorder %v1103_v61, 8.507059e+37  ;;  %vm2418_vm2 = vmor %vm1209_vm13, %vm1210_vm15 }
 0x733   : > { %v1098_v43 = vadd.f32 %v1608_v10, %v1097_v32  ;;  %v1119_v47 = vadd.f32 %v2344_v0, %v1118_v29  ;;  %vm2426_vm10 = vmor %vm1120_vm1, %vm1121_vm4  ;;  %v1216_v37 = vor.u32 1.1754944e-38, %v1215_v31  ;;  %vm1214_vm13 = vcmp.eq.f32.partialorder %v1213_v26, 8.507059e+37 }
 0x734   : > { %v1212_v50 = vsel %vm2418_vm2, %v2327_v30, %v1208_v42  ;;  %v1127_v51 = vor.u32 1.1754944e-38, %v1126_v35  ;;  %v1184_v53 = vmul.f32 %v1610_v45, %v1182_v18  ;;  %vm1125_vm9 = vcmp.eq.f32.partialorder %v1124_v49, 8.507059e+37 }
 0x735   : > { %v1102_v27 = vsel %vm2409_vm5, %v1608_v10, %v1098_v43  ;;  %v1123_v36 = vsel %vm2426_vm10, %v2344_v0, %v1119_v47  ;;  %v1194_v54 = vand.u32 2147483648, %v1182_v18  ;;  %vm1188_vm11 = vweird.f32 %v1182_v18 }
 0x736   : > { %v1107_v28 = vsel %vm1104_vm8, %v1106_v40, %v1102_v27  ;;  %v1185_v56 = vsub.f32 1.0, %v1184_v53  ;;  %vm1189_vm12 = vweird.f32 %v1610_v45  ;;  %v1192_v44 = vand.u32 2147483647, %v1182_v18 }
 0x737   : > { %1110 = vperm.xlu2 %1594, %v1107_v28   ;;  %v1217_v12 = vsel %vm1214_vm13, %v1216_v37, %v1212_v50  ;;  %v1128_v57 = vsel %vm1125_vm9, %v1127_v51, %v1123_v36  ;;  %vm1190_vm14 = vmor %vm1188_vm11, %vm1189_vm12  ;;  %v1195_v19 = vor.u32 1.1754944e-38, %v1194_v54 }
 0x738   : > { %1178 = vperm.xlu1 %1593, %v1175_v34   ;;  %v1186_v58 = vmul.f32 %v1610_v45, %v1185_v56  ;;  %vm1193_vm15 = vcmp.eq.f32.partialorder %v1192_v44, 8.507059e+37 }
 0x739   : > { %1089 = vperm.xlu0 %1592, %v1086_v41  }
 0x73a   : > { %v1187_v30 = vadd.f32 %v1610_v45, %v1186_v58 }
 0x73c   : > { %v1191_v59 = vsel %vm1190_vm14, %v1610_v45, %v1187_v30 }
 0x73d   : > { %v1196_v60 = vsel %vm1193_vm15, %v1195_v19, %v1191_v59 }
 0x73f   : > { %1199 = vperm.xlu2 %1594, %v1196_v60  }
 0x740   : > { %1220 = vperm.xlu1 %1593, %v1217_v12  }
 0x741   : > { %1131 = vperm.xlu0 %1592, %v1128_v57  }
 0x791   : > { %v1111_v62 = vpop.permute.xlu2 %1110 }
 0x792   : > { %v1113_v14 = vmul.f32 %v1111_v62, %v1050_v3 }
 0x799   : > { %v1200_v1 = vpop.permute.xlu2 %1199 }
 0x79a   : > { %v1202_v10 = vmul.f32 %v1200_v1, %v1139_v2 }
 0x7a2   : > { %v1158_v46 = vpop.permute.xlu1 %1157 }
 0x7a3   : > { %v1069_v0 = vpop.permute.xlu0 %1068  ;;  %v1160_v7 = vmul.f32 %v1158_v46, %v1139_v2 }
 0x7a4   : > { %v1071_v55 = vmul.f32 %v1069_v0, %v1050_v3 }
 0x7aa   : > { %v1179_v63 = vpop.permute.xlu1 %1178 }
 0x7ab   : > { %v1090_v52 = vpop.permute.xlu0 %1089  ;;  %v1181_v4 = vmul.f32 %v1179_v63, %v1139_v2 }
 0x7ac   : > { %v1092_v5 = vmul.f32 %v1090_v52, %v1050_v3 }
 0x7ad   : > { %v1224_v8 = vsel %vm405_vm3, %v1160_v7, %v1181_v4 }
 0x7ae   : > { %v1135_v11 = vsel %vm405_vm3, %v1071_v55, %v1092_v5  ;;  %v1225_v33 = vsel %vm721_vm6, %v1224_v8, %v1202_v10 }
 0x7af   : > { %v1136_v17 = vsel %vm721_vm6, %v1135_v11, %v1113_v14 }
 0x7b2   : > { %v1221_v13 = vpop.permute.xlu1 %1220 }
 0x7b3   : > { %v1223_v22 = vmul.f32 %v1221_v13, %v1139_v2  ;;  %v1132_v15 = vpop.permute.xlu0 %1131 }
 0x7b4   : > { %v1134_v6 = vmul.f32 %v1132_v15, %v1050_v3 }
 0x7b5   : > { %v1226_v16 = vsel %vm723_vm7, %v1225_v33, %v1223_v22 }
 0x7b6   : > { %1414 = vst.msk [vmem:[%s2058_s26 + $0x8] sm:$0xff] %vm332_vm0, %v1226_v16  ;;  %v1137_v18 = vsel %vm723_vm7, %v1136_v17, %v1134_v6 }
 0x7b7   : > { %1138 = vst.msk [vmem:[%s2058_s26] sm:$0xff] %vm332_vm0, %v1137_v18 }
 0x7b8 PF: > { %s2563_s4 = sld [smem:[#allocation19_spill]]  ;;  %s1244_s27 = sshll.u32 %s2058_s26, 4  ;;  %s1245_s27 = int_to_ptr.vmem [resolvable:$true] %s1244_s27 }
 0x7b9   : > { %s2565_s8 = sld [smem:[#allocation26_spill]]  ;;  %s1230_s5 = scalar_lea.sflag [#allocation8], %s2034_s0 }
 0x7be   : > { %s1416_s30 = sshll.u32 %s2563_s4, 3 }
 0x7bf   : > { %s1243_s14 = scalar_lea.hbm %s2565_s8, %s1416_s30  ;;  %s1721_s13 = scalar_lea.hbm %s2565_s8, 32 }
 0x7c0   : > { %s1246_s28 = sshll.u32 %s1243_s14, 4  ;;  %s1247_s28 = int_to_ptr.hbm [resolvable:$true] %s1246_s28 }
 0x7c1   : > { %s1715_s29 = sshra.s32 %s1247_s28, 4  ;;  %s1716_s29 = int_to_ptr.hbm [resolvable:$true] %s1715_s29 }
 0x7c2   : > { %s1717_s7 = scalar_lea.hbm %s1716_s29, 16  ;;  %p1722_p9 = scmp.lt.s32.totalorder %s1716_s29, %s2565_s8 }
 0x7c3   : > { %p1718_p6 = scmp.ne.s32.totalorder %s1716_s29, %s1717_s7  ;;  %p1723_p11 = scmp.lt.s32.totalorder %s1721_s13, %s1717_s7 }
 0x7c5   : > { %p1719_p10 = pnand %p1718_p6, %p1974_p5  ;;  %p1724_p12 = por %p1723_p11, %p1722_p9 }
 0x7c7   : > { %p1720_p2 = pneg %p1719_p10 }
 0x7c9   : > { %p1725_p13 = pnand %p1724_p12, %p1720_p2 }
 0x7cb   : > { %1728 = shalt.err (!%p1725_p13)
}
 0x7cc   : > { %s1849_s0 = smov 128   ;;  %s1850_s26 = smov 256  }
 0x7cd   : > { %1429 = dma.vmem_to_hbm [thread:$0]  (%p1974_p5), %s1245_s27, 256, %s1247_s28, %s1230_s5, %s1849_s0, %s1850_s26, %s1845_s12  }
 0x7ce PF: > { %s2566_s4 = sld [smem:[#allocation17_spill]]  ;;  %p1449_p7 = scmp.ge.s32.totalorder %s1831_s25, 2 }
 0x7d0   : > { %p1443_p0 = pnand %p1449_p7, %p1951_p8 }
 0x7d2   : > { %p1444_p3 = pneg %p1443_p0 }
 0x7d4   : > { %s1261_s22 = sand.u32 1, %s2566_s4  }
 0x7d5   : > { %s1262_s23 = scalar_lea.sflag [#allocation8], %s1261_s22 }
 0x7d6   : > { %1786 = dma.done.wait (%p1444_p3), %s1262_s23, 256  }
 0x7d7   : > { %1788 = vsyncadd (%p1444_p3), %s1262_s23, 4294967040  ;;  %s23_s25 = sadd.s32 1, %s1831_s25   ;;  %s2568_s12 = sld [smem:[#allocation20_spill]] }
 0x7d8   : > { %p20_p1 = scmp.ge.s32.totalorder %s23_s25, 6   ;;  %s2569_s23 = sld [smem:[#allocation23_spill]] }
 0x7d9   : > { %s2570_s15 = smov %s1795_s16  ;;  %s2571_s16 = smov %s1799_s17 }
 0x7da   : > { %s2572_s17 = smov %s2014_s2  ;;  %s2573_s18 = smov %s1807_s19 }
 0x7db   : > { %s2574_s19 = smov %s1811_s20  ;;  %s2575_s20 = smov %s2022_s21 }
 0x7dc   : > { %s2577_s22 = smov %s1827_s24  ;;  %s2578_s24 = smov %s2584_s9 }
 0x7dd   : > { %s2576_s21 = smov %s2568_s12  ;;  %22 = sbr.rel (!%p20_p1) target bundleno = 15 (0xf), region = 122 }
 0x7e2   :  { %1268 = vsyncpa [#allocation7], 1 }
 0x7e3   :  { %1270 = vsyncpa [#allocation7 + $0x1], 1 }
 0x7e4   :  { %1271 = vsyncpa [#allocation10], 1 }
 0x7e5   :  { %1273 = vsyncpa [#allocation10 + $0x1], 1 }
 0x7e6   :  { %1274 = vsyncpa [#allocation8], 1 }
 0x7e7   :  { %1276 = vsyncpa [#allocation8 + $0x1], 1 }

</bundles_post_ra>
